<compile_context>
chip_gen: v7x
topology: tpu7x:2x2x1
jax: 0.10.0
libtpu: 0.0.40
codegen_flags: <defaults>
</compile_context>

<pallas_src>
import jax
import jax.numpy as jnp
from jax import lax
from jax.experimental import pallas as pl
from jax.experimental.pallas import tpu as pltpu


# ---------------------------------------------------------------------------
# Fused Pallas kernel: one image per grid step.
# ---------------------------------------------------------------------------
def _lenet_kernel(x_ref, m1_ref, b1_ref, m2_ref, b2_ref,
                  f1_ref, fb1_ref, f2_ref, fb2_ref, f3_ref, fb3_ref,
                  o_ref, h1_ref):
    f32 = jnp.float32
    b1 = b1_ref[...]          # (1, 256)
    b2 = b2_ref[...]          # (1, 256)

    # ---------------- conv1 (5x5, 3->6) + ReLU + 2x2 max-pool ----------------
    # x_ref is (32, 96) = (H, W*C) with rows regrouped by (row mod 4), so the
    # input rows feeding conv-output rows {4k+o} at kernel-row i are the
    # contiguous slice starting at 8*((i+o)%4) + (i+o)//4.
    acc = [jnp.zeros((7, 256), f32) for _ in range(4)]    # o -> conv rows 4k+o
    for i in range(5):                                     # kernel row (tap)
        mi = m1_ref[i]                                     # (96, 256) Toeplitz slab
        for o in range(4):
            s = 8 * ((i + o) % 4) + (i + o) // 4
            acc[o] = acc[o] + jnp.dot(x_ref[s:s + 7, :], mi,
                                      preferred_element_type=f32)
    y0, y1, y2, y3 = [jnp.maximum(a + b1, 0.0) for a in acc]
    pe = jnp.maximum(y0, y1)           # H-pool: pooled rows 0,2,...,12
    po = jnp.maximum(y2, y3)           # H-pool: pooled rows 1,3,...,13
    # W-pool = max over the even/odd output-column lane groups (each 128 wide).
    h1_ref[0:7, :] = jnp.maximum(pe[:, 0:128], pe[:, 128:256])    # pooled rows 0,2,..,12
    h1_ref[8:15, :] = jnp.maximum(po[:, 0:128], po[:, 128:256])   # pooled rows 1,3,..,13

    # ---------------- conv2 (5x5, 6->16) + ReLU + 2x2 max-pool ---------------
    # h1_ref holds pooled conv1 activations, parity-split by pooled row, so all
    # row windows needed below are contiguous static slices.
    acc_e = jnp.zeros((5, 256), f32)   # conv2 output rows 0,2,4,6,8
    acc_o = jnp.zeros((5, 256), f32)   # conv2 output rows 1,3,5,7,9
    for i in range(5):
        mi = m2_ref[i]                                     # (128, 256)
        se = i // 2 if i % 2 == 0 else 8 + i // 2          # rows {2t + i}
        so = 8 + i // 2 if i % 2 == 0 else i // 2 + 1      # rows {2t + 1 + i}
        acc_e = acc_e + jnp.dot(h1_ref[se:se + 5, :], mi, preferred_element_type=f32)
        acc_o = acc_o + jnp.dot(h1_ref[so:so + 5, :], mi, preferred_element_type=f32)
    ye = jnp.maximum(acc_e + b2, 0.0)
    yo = jnp.maximum(acc_o + b2, 0.0)
    h2 = jnp.maximum(jnp.maximum(ye[:, 0:128], ye[:, 128:256]),
                     jnp.maximum(yo[:, 0:128], yo[:, 128:256]))   # (5, 128), lanes 80.. = 0

    # ---------------- fc1 -> ReLU -> fc2 -> ReLU -> fc3 ----------------------
    # The PyTorch NCHW flatten is folded into the (pre-permuted) fc1 weights;
    # the flatten itself becomes 5 accumulated dots over h2's rows.
    z = jnp.zeros((1, 128), f32)
    for h in range(5):
        z = z + jnp.dot(h2[h:h + 1, :], f1_ref[h], preferred_element_type=f32)
    z = jnp.maximum(z + fb1_ref[...], 0.0)
    z = jnp.maximum(jnp.dot(z, f2_ref[...], preferred_element_type=f32) + fb2_ref[...], 0.0)
    o_ref[...] = jnp.dot(z, f3_ref[...], preferred_element_type=f32) + fb3_ref[...]


# ---------------------------------------------------------------------------
# Wrapper-side weight packing (tiny XLA transforms of the parameters).
# ---------------------------------------------------------------------------
def _conv_toeplitz(w, b, w_in, group_pad, row_pad):
    """Pack a 5x5 'valid' conv (PyTorch OIHW weights) into per-kernel-row
    Toeplitz matmul slabs for the (H, W*C) channel-fastest activation layout.

    Returns
      m:     (KH, row_pad, 2*group_pad) ; m[i] maps input row (r+i), flattened
             as w*IC+ic (zero-padded to row_pad rows), to the conv outputs at
             output row r: [even output cols | odd output cols], each group
             laid out as t*OC+oc and zero-padded to group_pad lanes.
      b_row: (1, 2*group_pad) matching bias row.
    """
    oc, ic, kh, kw = w.shape
    w_out = w_in - kw + 1
    half = w_out // 2
    lane_pad = group_pad - half * oc
    blocks = []
    for i in range(kh):
        acc = jnp.zeros((w_in, ic, w_out, oc), w.dtype)
        for j in range(kw):
            sel = jnp.eye(w_in, w_out, k=-j, dtype=w.dtype)   # sel[p, c] = 1 iff p == c + j
            acc = acc + sel[:, None, :, None] * w[:, :, i, j].T[None, :, None, :]
        even = acc[:, :, 0::2, :].reshape(w_in * ic, half * oc)
        odd = acc[:, :, 1::2, :].reshape(w_in * ic, half * oc)
        blk = jnp.concatenate([jnp.pad(even, ((0, 0), (0, lane_pad))),
                               jnp.pad(odd, ((0, 0), (0, lane_pad)))], axis=1)
        blocks.append(jnp.pad(blk, ((0, row_pad - w_in * ic), (0, 0))))
    m = jnp.stack(blocks, axis=0)
    b_half = jnp.pad(jnp.tile(b, half), (0, lane_pad))
    b_row = jnp.concatenate([b_half, b_half]).reshape(1, 2 * group_pad)
    return m, b_row


def _pack_fc(params):
    # fc1: permute rows from PyTorch flatten order (c*25 + h*5 + w) into the
    # kernel's (h, w*16 + c) order, then pad lane-dense.
    hh = jnp.arange(5)[:, None, None]
    ww = jnp.arange(5)[None, :, None]
    cc = jnp.arange(16)[None, None, :]
    old_idx = (cc * 25 + hh * 5 + ww).reshape(-1)              # (400,), (h, w, c) order
    f1 = params["fc1_w"].T[old_idx].reshape(5, 80, 120)
    f1 = jnp.pad(f1, ((0, 0), (0, 48), (0, 8)))                # (5, 128, 128)
    fb1 = jnp.pad(params["fc1_b"], (0, 8)).reshape(1, 128)
    f2 = jnp.pad(params["fc2_w"].T, ((0, 8), (0, 44)))         # (128, 128)
    fb2 = jnp.pad(params["fc2_b"], (0, 44)).reshape(1, 128)
    f3 = jnp.pad(params["fc3_w"].T, ((0, 44), (0, 118)))       # (128, 128)
    fb3 = jnp.pad(params["fc3_b"], (0, 118)).reshape(1, 128)
    return f1, fb1, f2, fb2, f3, fb3


# ---------------------------------------------------------------------------
# Forward pass (matches Net.forward)
# ---------------------------------------------------------------------------
def net_forward(x_nchw, params):
    bsz = x_nchw.shape[0]

    m1, b1 = _conv_toeplitz(params["conv1_w"], params["conv1_b"],
                            w_in=32, group_pad=128, row_pad=96)    # (5, 96, 256)
    m2, b2 = _conv_toeplitz(params["conv2_w"], params["conv2_b"],
                            w_in=14, group_pad=128, row_pad=128)   # (5, 128, 256)
    f1, fb1, f2, fb2, f3, fb3 = _pack_fc(params)

    # NCHW -> (B, H, W*C) channel-fastest, rows regrouped by (row mod 4) so all
    # in-kernel row windows are contiguous static slices.
    row_order = jnp.concatenate([jnp.arange(m, 32, 4) for m in range(4)])
    x_g = jnp.transpose(x_nchw, (0, 2, 3, 1)).reshape(bsz, 32, 96)[:, row_order, :]

    def _full(shape):
        return pl.BlockSpec(shape, lambda *_: (0,) * len(shape))

    out = pl.pallas_call(
        _lenet_kernel,
        out_shape=jax.ShapeDtypeStruct((bsz, 1, 128), jnp.float32),
        grid=(bsz,),
        in_specs=[
            pl.BlockSpec((None, 32, 96), lambda b: (b, 0, 0)),   # one image / grid step
            _full((5, 96, 256)), _full((1, 256)),                # conv1 Toeplitz + bias
            _full((5, 128, 256)), _full((1, 256)),               # conv2 Toeplitz + bias
            _full((5, 128, 128)), _full((1, 128)),               # fc1 (permuted + padded)
            _full((128, 128)), _full((1, 128)),                  # fc2
            _full((128, 128)), _full((1, 128)),                  # fc3
        ],
        out_specs=pl.BlockSpec((None, 1, 128), lambda b: (b, 0, 0)),
        scratch_shapes=[pltpu.VMEM((16, 128), jnp.float32)],     # pooled conv1 activations
        compiler_params=pltpu.CompilerParams(
            dimension_semantics=("parallel",),
        ),
    )(x_g, m1, b1, m2, b2, f1, fb1, f2, fb2, f3, fb3)

    return out.reshape(bsz, 128)[:, :10]


# ---------------------------------------------------------------------------
# Parameters (deterministic, PyTorch-default-style uniform init, PyTorch layouts)
# ---------------------------------------------------------------------------
def init_params(key):
    ks = jax.random.split(key, 10)

    def u(k, shape, fan_in):
        bound = 1.0 / float(fan_in) ** 0.5
        return jax.random.uniform(k, shape, jnp.float32, -bound, bound)

    return {
        "conv1_w": u(ks[0], (6, 3, 5, 5), 75),      # (OC, IC, KH, KW)
        "conv1_b": u(ks[1], (6,), 75),
        "conv2_w": u(ks[2], (16, 6, 5, 5), 150),
        "conv2_b": u(ks[3], (16,), 150),
        "fc1_w": u(ks[4], (120, 400), 400),         # (out, in)
        "fc1_b": u(ks[5], (120,), 400),
        "fc2_w": u(ks[6], (84, 120), 120),
        "fc2_b": u(ks[7], (84,), 120),
        "fc3_w": u(ks[8], (10, 84), 84),
        "fc3_b": u(ks[9], (10,), 84),
    }


# ---------------------------------------------------------------------------
# Pure-JAX reference (for a numerical sanity check)
# ---------------------------------------------------------------------------
def net_reference(x_nchw, params):
    hp = lax.Precision.HIGHEST
    y = lax.conv(x_nchw, params["conv1_w"], (1, 1), "VALID", precision=hp)
    y = jax.nn.relu(y + params["conv1_b"][None, :, None, None])
    y = lax.reduce_window(y, -jnp.inf, lax.max, (1, 1, 2, 2), (1, 1, 2, 2), "VALID")
    y = lax.conv(y, params["conv2_w"], (1, 1), "VALID", precision=hp)
    y = jax.nn.relu(y + params["conv2_b"][None, :, None, None])
    y = lax.reduce_window(y, -jnp.inf, lax.max, (1, 1, 2, 2), (1, 1, 2, 2), "VALID")
    y = y.reshape(y.shape[0], -1)                       # NCHW flatten, like x.view(-1, 400)
    y = jax.nn.relu(jnp.dot(y, params["fc1_w"].T, precision=hp) + params["fc1_b"])
    y = jax.nn.relu(jnp.dot(y, params["fc2_w"].T, precision=hp) + params["fc2_b"])
    return jnp.dot(y, params["fc3_w"].T, precision=hp) + params["fc3_b"]


if __name__ == "__main__":
    key = jax.random.PRNGKey(0)
    k_x, k_p = jax.random.split(key)
    # Input must be 32x32 so the 16*5*5 flatten matches the module.
    x = jax.random.normal(k_x, (2, 3, 32, 32), dtype=jnp.float32)
    params = init_params(k_p)

    fwd = jax.jit(net_forward)
    out = jax.block_until_ready(fwd(x, params))
    assert out.shape == (2, 10), out.shape

    ref = net_reference(x, params)
    err = float(jnp.max(jnp.abs(out - ref)))
    assert err < 2e-2, f"mismatch vs reference: max abs err = {err}"
    print("KERNEL_OK")
</pallas_src>

<mosaic_0001>
module attributes {stable_mosaic.version = 11 : i64} {
  func.func @_lenet_kernel(%arg0: i32, %arg1: memref<1x32x96xf32, #tpu.memory_space<vmem>>, %arg2: memref<5x96x256xf32, #tpu.memory_space<vmem>>, %arg3: memref<1x256xf32, #tpu.memory_space<vmem>>, %arg4: memref<5x128x256xf32, #tpu.memory_space<vmem>>, %arg5: memref<1x256xf32, #tpu.memory_space<vmem>>, %arg6: memref<5x128x128xf32, #tpu.memory_space<vmem>>, %arg7: memref<1x128xf32, #tpu.memory_space<vmem>>, %arg8: memref<128x128xf32, #tpu.memory_space<vmem>>, %arg9: memref<1x128xf32, #tpu.memory_space<vmem>>, %arg10: memref<128x128xf32, #tpu.memory_space<vmem>>, %arg11: memref<1x128xf32, #tpu.memory_space<vmem>>, %arg12: memref<1x1x128xf32, #tpu.memory_space<vmem>>, %arg13: memref<16x128xf32, #tpu.memory_space<vmem>>) attributes {dimension_semantics = [#tpu.dimension_semantics<parallel>], iteration_bounds = array<i64: 2>, scalar_prefetch = 0 : i64, scratch_operands = 1 : i64, tpu.core_type = #tpu.core_type<tc>, window_params = [{transform_indices = @transform_0, window_bounds = array<i64: 1, 32, 96>}, {pipeline_mode = #tpu.pipeline_mode<synchronous>, transform_indices = @transform_1, window_bounds = array<i64: 5, 96, 256>}, {pipeline_mode = #tpu.pipeline_mode<synchronous>, transform_indices = @transform_2, window_bounds = array<i64: 1, 256>}, {pipeline_mode = #tpu.pipeline_mode<synchronous>, transform_indices = @transform_3, window_bounds = array<i64: 5, 128, 256>}, {pipeline_mode = #tpu.pipeline_mode<synchronous>, transform_indices = @transform_4, window_bounds = array<i64: 1, 256>}, {pipeline_mode = #tpu.pipeline_mode<synchronous>, transform_indices = @transform_5, window_bounds = array<i64: 5, 128, 128>}, {pipeline_mode = #tpu.pipeline_mode<synchronous>, transform_indices = @transform_6, window_bounds = array<i64: 1, 128>}, {pipeline_mode = #tpu.pipeline_mode<synchronous>, transform_indices = @transform_7, window_bounds = array<i64: 128, 128>}, {pipeline_mode = #tpu.pipeline_mode<synchronous>, transform_indices = @transform_8, window_bounds = array<i64: 1, 128>}, {pipeline_mode = #tpu.pipeline_mode<synchronous>, transform_indices = @transform_9, window_bounds = array<i64: 128, 128>}, {pipeline_mode = #tpu.pipeline_mode<synchronous>, transform_indices = @transform_10, window_bounds = array<i64: 1, 128>}, {transform_indices = @transform_11, window_bounds = array<i64: 1, 1, 128>}]} {
    %c0 = arith.constant 0 : index
    %c0_0 = arith.constant 0 : index
    %0 = vector.load %arg3[%c0, %c0_0] : memref<1x256xf32, #tpu.memory_space<vmem>>, vector<1x256xf32>
    %c0_1 = arith.constant 0 : index
    %c0_2 = arith.constant 0 : index
    %1 = vector.load %arg5[%c0_1, %c0_2] : memref<1x256xf32, #tpu.memory_space<vmem>>, vector<1x256xf32>
    %cst = arith.constant 0.000000e+00 : f32
    %2 = vector.broadcast %cst : f32 to vector<7x256xf32>
    %cst_3 = arith.constant 0.000000e+00 : f32
    %3 = vector.broadcast %cst_3 : f32 to vector<7x256xf32>
    %cst_4 = arith.constant 0.000000e+00 : f32
    %4 = vector.broadcast %cst_4 : f32 to vector<7x256xf32>
    %cst_5 = arith.constant 0.000000e+00 : f32
    %5 = vector.broadcast %cst_5 : f32 to vector<7x256xf32>
    %c0_6 = arith.constant 0 : index
    %c0_7 = arith.constant 0 : index
    %c0_8 = arith.constant 0 : index
    %6 = vector.load %arg2[%c0_6, %c0_7, %c0_8] : memref<5x96x256xf32, #tpu.memory_space<vmem>>, vector<1x96x256xf32>
    %7 = vector.shape_cast %6 : vector<1x96x256xf32> to vector<96x256xf32>
    %c0_9 = arith.constant 0 : index
    %c0_10 = arith.constant 0 : index
    %c0_11 = arith.constant 0 : index
    %8 = vector.load %arg1[%c0_9, %c0_10, %c0_11] : memref<1x32x96xf32, #tpu.memory_space<vmem>>, vector<1x7x96xf32>
    %9 = vector.shape_cast %8 : vector<1x7x96xf32> to vector<7x96xf32>
    %cst_12 = arith.constant dense<0.000000e+00> : vector<7x256xf32>
    %10 = tpu.matmul %9, %7, %cst_12 {dimension_numbers = #tpu.dot_dimension_numbers<[1], [0], [0], [1], [0, 0, 1, 1], [], []>} : vector<7x96xf32>, vector<96x256xf32>, vector<7x256xf32> -> vector<7x256xf32>
    %11 = arith.addf %2, %10 : vector<7x256xf32>
    %c0_13 = arith.constant 0 : index
    %c8 = arith.constant 8 : index
    %c0_14 = arith.constant 0 : index
    %12 = vector.load %arg1[%c0_13, %c8, %c0_14] : memref<1x32x96xf32, #tpu.memory_space<vmem>>, vector<1x7x96xf32>
    %13 = vector.shape_cast %12 : vector<1x7x96xf32> to vector<7x96xf32>
    %cst_15 = arith.constant dense<0.000000e+00> : vector<7x256xf32>
    %14 = tpu.matmul %13, %7, %cst_15 {dimension_numbers = #tpu.dot_dimension_numbers<[1], [0], [0], [1], [0, 0, 1, 1], [], []>} : vector<7x96xf32>, vector<96x256xf32>, vector<7x256xf32> -> vector<7x256xf32>
    %15 = arith.addf %3, %14 : vector<7x256xf32>
    %c0_16 = arith.constant 0 : index
    %c16 = arith.constant 16 : index
    %c0_17 = arith.constant 0 : index
    %16 = vector.load %arg1[%c0_16, %c16, %c0_17] : memref<1x32x96xf32, #tpu.memory_space<vmem>>, vector<1x7x96xf32>
    %17 = vector.shape_cast %16 : vector<1x7x96xf32> to vector<7x96xf32>
    %cst_18 = arith.constant dense<0.000000e+00> : vector<7x256xf32>
    %18 = tpu.matmul %17, %7, %cst_18 {dimension_numbers = #tpu.dot_dimension_numbers<[1], [0], [0], [1], [0, 0, 1, 1], [], []>} : vector<7x96xf32>, vector<96x256xf32>, vector<7x256xf32> -> vector<7x256xf32>
    %19 = arith.addf %4, %18 : vector<7x256xf32>
    %c0_19 = arith.constant 0 : index
    %c24 = arith.constant 24 : index
    %c0_20 = arith.constant 0 : index
    %20 = vector.load %arg1[%c0_19, %c24, %c0_20] : memref<1x32x96xf32, #tpu.memory_space<vmem>>, vector<1x7x96xf32>
    %21 = vector.shape_cast %20 : vector<1x7x96xf32> to vector<7x96xf32>
    %cst_21 = arith.constant dense<0.000000e+00> : vector<7x256xf32>
    %22 = tpu.matmul %21, %7, %cst_21 {dimension_numbers = #tpu.dot_dimension_numbers<[1], [0], [0], [1], [0, 0, 1, 1], [], []>} : vector<7x96xf32>, vector<96x256xf32>, vector<7x256xf32> -> vector<7x256xf32>
    %23 = arith.addf %5, %22 : vector<7x256xf32>
    %c1 = arith.constant 1 : index
    %c0_22 = arith.constant 0 : index
    %c0_23 = arith.constant 0 : index
    %24 = vector.load %arg2[%c1, %c0_22, %c0_23] : memref<5x96x256xf32, #tpu.memory_space<vmem>>, vector<1x96x256xf32>
    %25 = vector.shape_cast %24 : vector<1x96x256xf32> to vector<96x256xf32>
    %c0_24 = arith.constant 0 : index
    %c8_25 = arith.constant 8 : index
    %c0_26 = arith.constant 0 : index
    %26 = vector.load %arg1[%c0_24, %c8_25, %c0_26] : memref<1x32x96xf32, #tpu.memory_space<vmem>>, vector<1x7x96xf32>
    %27 = vector.shape_cast %26 : vector<1x7x96xf32> to vector<7x96xf32>
    %cst_27 = arith.constant dense<0.000000e+00> : vector<7x256xf32>
    %28 = tpu.matmul %27, %25, %cst_27 {dimension_numbers = #tpu.dot_dimension_numbers<[1], [0], [0], [1], [0, 0, 1, 1], [], []>} : vector<7x96xf32>, vector<96x256xf32>, vector<7x256xf32> -> vector<7x256xf32>
    %29 = arith.addf %11, %28 : vector<7x256xf32>
    %c0_28 = arith.constant 0 : index
    %c16_29 = arith.constant 16 : index
    %c0_30 = arith.constant 0 : index
    %30 = vector.load %arg1[%c0_28, %c16_29, %c0_30] : memref<1x32x96xf32, #tpu.memory_space<vmem>>, vector<1x7x96xf32>
    %31 = vector.shape_cast %30 : vector<1x7x96xf32> to vector<7x96xf32>
    %cst_31 = arith.constant dense<0.000000e+00> : vector<7x256xf32>
    %32 = tpu.matmul %31, %25, %cst_31 {dimension_numbers = #tpu.dot_dimension_numbers<[1], [0], [0], [1], [0, 0, 1, 1], [], []>} : vector<7x96xf32>, vector<96x256xf32>, vector<7x256xf32> -> vector<7x256xf32>
    %33 = arith.addf %15, %32 : vector<7x256xf32>
    %c0_32 = arith.constant 0 : index
    %c24_33 = arith.constant 24 : index
    %c0_34 = arith.constant 0 : index
    %34 = vector.load %arg1[%c0_32, %c24_33, %c0_34] : memref<1x32x96xf32, #tpu.memory_space<vmem>>, vector<1x7x96xf32>
    %35 = vector.shape_cast %34 : vector<1x7x96xf32> to vector<7x96xf32>
    %cst_35 = arith.constant dense<0.000000e+00> : vector<7x256xf32>
    %36 = tpu.matmul %35, %25, %cst_35 {dimension_numbers = #tpu.dot_dimension_numbers<[1], [0], [0], [1], [0, 0, 1, 1], [], []>} : vector<7x96xf32>, vector<96x256xf32>, vector<7x256xf32> -> vector<7x256xf32>
    %37 = arith.addf %19, %36 : vector<7x256xf32>
    %c0_36 = arith.constant 0 : index
    %c1_37 = arith.constant 1 : index
    %c0_38 = arith.constant 0 : index
    %38 = vector.load %arg1[%c0_36, %c1_37, %c0_38] : memref<1x32x96xf32, #tpu.memory_space<vmem>>, vector<1x7x96xf32>
    %39 = vector.shape_cast %38 : vector<1x7x96xf32> to vector<7x96xf32>
    %cst_39 = arith.constant dense<0.000000e+00> : vector<7x256xf32>
    %40 = tpu.matmul %39, %25, %cst_39 {dimension_numbers = #tpu.dot_dimension_numbers<[1], [0], [0], [1], [0, 0, 1, 1], [], []>} : vector<7x96xf32>, vector<96x256xf32>, vector<7x256xf32> -> vector<7x256xf32>
    %41 = arith.addf %23, %40 : vector<7x256xf32>
    %c2 = arith.constant 2 : index
    %c0_40 = arith.constant 0 : index
    %c0_41 = arith.constant 0 : index
    %42 = vector.load %arg2[%c2, %c0_40, %c0_41] : memref<5x96x256xf32, #tpu.memory_space<vmem>>, vector<1x96x256xf32>
    %43 = vector.shape_cast %42 : vector<1x96x256xf32> to vector<96x256xf32>
    %c0_42 = arith.constant 0 : index
    %c16_43 = arith.constant 16 : index
    %c0_44 = arith.constant 0 : index
    %44 = vector.load %arg1[%c0_42, %c16_43, %c0_44] : memref<1x32x96xf32, #tpu.memory_space<vmem>>, vector<1x7x96xf32>
    %45 = vector.shape_cast %44 : vector<1x7x96xf32> to vector<7x96xf32>
    %cst_45 = arith.constant dense<0.000000e+00> : vector<7x256xf32>
    %46 = tpu.matmul %45, %43, %cst_45 {dimension_numbers = #tpu.dot_dimension_numbers<[1], [0], [0], [1], [0, 0, 1, 1], [], []>} : vector<7x96xf32>, vector<96x256xf32>, vector<7x256xf32> -> vector<7x256xf32>
    %47 = arith.addf %29, %46 : vector<7x256xf32>
    %c0_46 = arith.constant 0 : index
    %c24_47 = arith.constant 24 : index
    %c0_48 = arith.constant 0 : index
    %48 = vector.load %arg1[%c0_46, %c24_47, %c0_48] : memref<1x32x96xf32, #tpu.memory_space<vmem>>, vector<1x7x96xf32>
    %49 = vector.shape_cast %48 : vector<1x7x96xf32> to vector<7x96xf32>
    %cst_49 = arith.constant dense<0.000000e+00> : vector<7x256xf32>
    %50 = tpu.matmul %49, %43, %cst_49 {dimension_numbers = #tpu.dot_dimension_numbers<[1], [0], [0], [1], [0, 0, 1, 1], [], []>} : vector<7x96xf32>, vector<96x256xf32>, vector<7x256xf32> -> vector<7x256xf32>
    %51 = arith.addf %33, %50 : vector<7x256xf32>
    %c0_50 = arith.constant 0 : index
    %c1_51 = arith.constant 1 : index
    %c0_52 = arith.constant 0 : index
    %52 = vector.load %arg1[%c0_50, %c1_51, %c0_52] : memref<1x32x96xf32, #tpu.memory_space<vmem>>, vector<1x7x96xf32>
    %53 = vector.shape_cast %52 : vector<1x7x96xf32> to vector<7x96xf32>
    %cst_53 = arith.constant dense<0.000000e+00> : vector<7x256xf32>
    %54 = tpu.matmul %53, %43, %cst_53 {dimension_numbers = #tpu.dot_dimension_numbers<[1], [0], [0], [1], [0, 0, 1, 1], [], []>} : vector<7x96xf32>, vector<96x256xf32>, vector<7x256xf32> -> vector<7x256xf32>
    %55 = arith.addf %37, %54 : vector<7x256xf32>
    %c0_54 = arith.constant 0 : index
    %c9 = arith.constant 9 : index
    %c0_55 = arith.constant 0 : index
    %56 = vector.load %arg1[%c0_54, %c9, %c0_55] : memref<1x32x96xf32, #tpu.memory_space<vmem>>, vector<1x7x96xf32>
    %57 = vector.shape_cast %56 : vector<1x7x96xf32> to vector<7x96xf32>
    %cst_56 = arith.constant dense<0.000000e+00> : vector<7x256xf32>
    %58 = tpu.matmul %57, %43, %cst_56 {dimension_numbers = #tpu.dot_dimension_numbers<[1], [0], [0], [1], [0, 0, 1, 1], [], []>} : vector<7x96xf32>, vector<96x256xf32>, vector<7x256xf32> -> vector<7x256xf32>
    %59 = arith.addf %41, %58 : vector<7x256xf32>
    %c3 = arith.constant 3 : index
    %c0_57 = arith.constant 0 : index
    %c0_58 = arith.constant 0 : index
    %60 = vector.load %arg2[%c3, %c0_57, %c0_58] : memref<5x96x256xf32, #tpu.memory_space<vmem>>, vector<1x96x256xf32>
    %61 = vector.shape_cast %60 : vector<1x96x256xf32> to vector<96x256xf32>
    %c0_59 = arith.constant 0 : index
    %c24_60 = arith.constant 24 : index
    %c0_61 = arith.constant 0 : index
    %62 = vector.load %arg1[%c0_59, %c24_60, %c0_61] : memref<1x32x96xf32, #tpu.memory_space<vmem>>, vector<1x7x96xf32>
    %63 = vector.shape_cast %62 : vector<1x7x96xf32> to vector<7x96xf32>
    %cst_62 = arith.constant dense<0.000000e+00> : vector<7x256xf32>
    %64 = tpu.matmul %63, %61, %cst_62 {dimension_numbers = #tpu.dot_dimension_numbers<[1], [0], [0], [1], [0, 0, 1, 1], [], []>} : vector<7x96xf32>, vector<96x256xf32>, vector<7x256xf32> -> vector<7x256xf32>
    %65 = arith.addf %47, %64 : vector<7x256xf32>
    %c0_63 = arith.constant 0 : index
    %c1_64 = arith.constant 1 : index
    %c0_65 = arith.constant 0 : index
    %66 = vector.load %arg1[%c0_63, %c1_64, %c0_65] : memref<1x32x96xf32, #tpu.memory_space<vmem>>, vector<1x7x96xf32>
    %67 = vector.shape_cast %66 : vector<1x7x96xf32> to vector<7x96xf32>
    %cst_66 = arith.constant dense<0.000000e+00> : vector<7x256xf32>
    %68 = tpu.matmul %67, %61, %cst_66 {dimension_numbers = #tpu.dot_dimension_numbers<[1], [0], [0], [1], [0, 0, 1, 1], [], []>} : vector<7x96xf32>, vector<96x256xf32>, vector<7x256xf32> -> vector<7x256xf32>
    %69 = arith.addf %51, %68 : vector<7x256xf32>
    %c0_67 = arith.constant 0 : index
    %c9_68 = arith.constant 9 : index
    %c0_69 = arith.constant 0 : index
    %70 = vector.load %arg1[%c0_67, %c9_68, %c0_69] : memref<1x32x96xf32, #tpu.memory_space<vmem>>, vector<1x7x96xf32>
    %71 = vector.shape_cast %70 : vector<1x7x96xf32> to vector<7x96xf32>
    %cst_70 = arith.constant dense<0.000000e+00> : vector<7x256xf32>
    %72 = tpu.matmul %71, %61, %cst_70 {dimension_numbers = #tpu.dot_dimension_numbers<[1], [0], [0], [1], [0, 0, 1, 1], [], []>} : vector<7x96xf32>, vector<96x256xf32>, vector<7x256xf32> -> vector<7x256xf32>
    %73 = arith.addf %55, %72 : vector<7x256xf32>
    %c0_71 = arith.constant 0 : index
    %c17 = arith.constant 17 : index
    %c0_72 = arith.constant 0 : index
    %74 = vector.load %arg1[%c0_71, %c17, %c0_72] : memref<1x32x96xf32, #tpu.memory_space<vmem>>, vector<1x7x96xf32>
    %75 = vector.shape_cast %74 : vector<1x7x96xf32> to vector<7x96xf32>
    %cst_73 = arith.constant dense<0.000000e+00> : vector<7x256xf32>
    %76 = tpu.matmul %75, %61, %cst_73 {dimension_numbers = #tpu.dot_dimension_numbers<[1], [0], [0], [1], [0, 0, 1, 1], [], []>} : vector<7x96xf32>, vector<96x256xf32>, vector<7x256xf32> -> vector<7x256xf32>
    %77 = arith.addf %59, %76 : vector<7x256xf32>
    %c4 = arith.constant 4 : index
    %c0_74 = arith.constant 0 : index
    %c0_75 = arith.constant 0 : index
    %78 = vector.load %arg2[%c4, %c0_74, %c0_75] : memref<5x96x256xf32, #tpu.memory_space<vmem>>, vector<1x96x256xf32>
    %79 = vector.shape_cast %78 : vector<1x96x256xf32> to vector<96x256xf32>
    %c0_76 = arith.constant 0 : index
    %c1_77 = arith.constant 1 : index
    %c0_78 = arith.constant 0 : index
    %80 = vector.load %arg1[%c0_76, %c1_77, %c0_78] : memref<1x32x96xf32, #tpu.memory_space<vmem>>, vector<1x7x96xf32>
    %81 = vector.shape_cast %80 : vector<1x7x96xf32> to vector<7x96xf32>
    %cst_79 = arith.constant dense<0.000000e+00> : vector<7x256xf32>
    %82 = tpu.matmul %81, %79, %cst_79 {dimension_numbers = #tpu.dot_dimension_numbers<[1], [0], [0], [1], [0, 0, 1, 1], [], []>} : vector<7x96xf32>, vector<96x256xf32>, vector<7x256xf32> -> vector<7x256xf32>
    %83 = arith.addf %65, %82 : vector<7x256xf32>
    %c0_80 = arith.constant 0 : index
    %c9_81 = arith.constant 9 : index
    %c0_82 = arith.constant 0 : index
    %84 = vector.load %arg1[%c0_80, %c9_81, %c0_82] : memref<1x32x96xf32, #tpu.memory_space<vmem>>, vector<1x7x96xf32>
    %85 = vector.shape_cast %84 : vector<1x7x96xf32> to vector<7x96xf32>
    %cst_83 = arith.constant dense<0.000000e+00> : vector<7x256xf32>
    %86 = tpu.matmul %85, %79, %cst_83 {dimension_numbers = #tpu.dot_dimension_numbers<[1], [0], [0], [1], [0, 0, 1, 1], [], []>} : vector<7x96xf32>, vector<96x256xf32>, vector<7x256xf32> -> vector<7x256xf32>
    %87 = arith.addf %69, %86 : vector<7x256xf32>
    %c0_84 = arith.constant 0 : index
    %c17_85 = arith.constant 17 : index
    %c0_86 = arith.constant 0 : index
    %88 = vector.load %arg1[%c0_84, %c17_85, %c0_86] : memref<1x32x96xf32, #tpu.memory_space<vmem>>, vector<1x7x96xf32>
    %89 = vector.shape_cast %88 : vector<1x7x96xf32> to vector<7x96xf32>
    %cst_87 = arith.constant dense<0.000000e+00> : vector<7x256xf32>
    %90 = tpu.matmul %89, %79, %cst_87 {dimension_numbers = #tpu.dot_dimension_numbers<[1], [0], [0], [1], [0, 0, 1, 1], [], []>} : vector<7x96xf32>, vector<96x256xf32>, vector<7x256xf32> -> vector<7x256xf32>
    %91 = arith.addf %73, %90 : vector<7x256xf32>
    %c0_88 = arith.constant 0 : index
    %c25 = arith.constant 25 : index
    %c0_89 = arith.constant 0 : index
    %92 = vector.load %arg1[%c0_88, %c25, %c0_89] : memref<1x32x96xf32, #tpu.memory_space<vmem>>, vector<1x7x96xf32>
    %93 = vector.shape_cast %92 : vector<1x7x96xf32> to vector<7x96xf32>
    %cst_90 = arith.constant dense<0.000000e+00> : vector<7x256xf32>
    %94 = tpu.matmul %93, %79, %cst_90 {dimension_numbers = #tpu.dot_dimension_numbers<[1], [0], [0], [1], [0, 0, 1, 1], [], []>} : vector<7x96xf32>, vector<96x256xf32>, vector<7x256xf32> -> vector<7x256xf32>
    %95 = arith.addf %77, %94 : vector<7x256xf32>
    %96 = vector.broadcast %0 : vector<1x256xf32> to vector<7x256xf32>
    %97 = arith.addf %83, %96 : vector<7x256xf32>
    %cst_91 = arith.constant 0.000000e+00 : f32
    %98 = vector.broadcast %cst_91 : f32 to vector<7x256xf32>
    %99 = arith.maximumf %97, %98 : vector<7x256xf32>
    %100 = vector.broadcast %0 : vector<1x256xf32> to vector<7x256xf32>
    %101 = arith.addf %87, %100 : vector<7x256xf32>
    %cst_92 = arith.constant 0.000000e+00 : f32
    %102 = vector.broadcast %cst_92 : f32 to vector<7x256xf32>
    %103 = arith.maximumf %101, %102 : vector<7x256xf32>
    %104 = vector.broadcast %0 : vector<1x256xf32> to vector<7x256xf32>
    %105 = arith.addf %91, %104 : vector<7x256xf32>
    %cst_93 = arith.constant 0.000000e+00 : f32
    %106 = vector.broadcast %cst_93 : f32 to vector<7x256xf32>
    %107 = arith.maximumf %105, %106 : vector<7x256xf32>
    %108 = vector.broadcast %0 : vector<1x256xf32> to vector<7x256xf32>
    %109 = arith.addf %95, %108 : vector<7x256xf32>
    %cst_94 = arith.constant 0.000000e+00 : f32
    %110 = vector.broadcast %cst_94 : f32 to vector<7x256xf32>
    %111 = arith.maximumf %109, %110 : vector<7x256xf32>
    %112 = arith.maximumf %99, %103 : vector<7x256xf32>
    %113 = arith.maximumf %107, %111 : vector<7x256xf32>
    %114 = vector.extract_strided_slice %112 {offsets = [0, 0], sizes = [7, 128], strides = [1, 1]} : vector<7x256xf32> to vector<7x128xf32>
    %115 = vector.extract_strided_slice %112 {offsets = [0, 128], sizes = [7, 128], strides = [1, 1]} : vector<7x256xf32> to vector<7x128xf32>
    %116 = arith.maximumf %114, %115 : vector<7x128xf32>
    %c0_95 = arith.constant 0 : index
    %c0_96 = arith.constant 0 : index
    %117 = vector.load %arg13[%c0_95, %c0_96] : memref<16x128xf32, #tpu.memory_space<vmem>>, vector<7x128xf32>
    tpu.vector_store %arg13[%c0_95, %c0_96], %116 {strides = array<i32>} : memref<16x128xf32, #tpu.memory_space<vmem>>, vector<7x128xf32>,
    %118 = vector.extract_strided_slice %113 {offsets = [0, 0], sizes = [7, 128], strides = [1, 1]} : vector<7x256xf32> to vector<7x128xf32>
    %119 = vector.extract_strided_slice %113 {offsets = [0, 128], sizes = [7, 128], strides = [1, 1]} : vector<7x256xf32> to vector<7x128xf32>
    %120 = arith.maximumf %118, %119 : vector<7x128xf32>
    %c8_97 = arith.constant 8 : index
    %c0_98 = arith.constant 0 : index
    %121 = vector.load %arg13[%c8_97, %c0_98] : memref<16x128xf32, #tpu.memory_space<vmem>>, vector<7x128xf32>
    tpu.vector_store %arg13[%c8_97, %c0_98], %120 {strides = array<i32>} : memref<16x128xf32, #tpu.memory_space<vmem>>, vector<7x128xf32>,
    %cst_99 = arith.constant 0.000000e+00 : f32
    %122 = vector.broadcast %cst_99 : f32 to vector<5x256xf32>
    %cst_100 = arith.constant 0.000000e+00 : f32
    %123 = vector.broadcast %cst_100 : f32 to vector<5x256xf32>
    %c0_101 = arith.constant 0 : index
    %c0_102 = arith.constant 0 : index
    %c0_103 = arith.constant 0 : index
    %124 = vector.load %arg4[%c0_101, %c0_102, %c0_103] : memref<5x128x256xf32, #tpu.memory_space<vmem>>, vector<1x128x256xf32>
    %125 = vector.shape_cast %124 : vector<1x128x256xf32> to vector<128x256xf32>
    %c0_104 = arith.constant 0 : index
    %c0_105 = arith.constant 0 : index
    %126 = vector.load %arg13[%c0_104, %c0_105] : memref<16x128xf32, #tpu.memory_space<vmem>>, vector<5x128xf32>
    %cst_106 = arith.constant dense<0.000000e+00> : vector<5x256xf32>
    %127 = tpu.matmul %126, %125, %cst_106 {dimension_numbers = #tpu.dot_dimension_numbers<[1], [0], [0], [1], [0, 0, 1, 1], [], []>} : vector<5x128xf32>, vector<128x256xf32>, vector<5x256xf32> -> vector<5x256xf32>
    %128 = arith.addf %122, %127 : vector<5x256xf32>
    %c8_107 = arith.constant 8 : index
    %c0_108 = arith.constant 0 : index
    %129 = vector.load %arg13[%c8_107, %c0_108] : memref<16x128xf32, #tpu.memory_space<vmem>>, vector<5x128xf32>
    %cst_109 = arith.constant dense<0.000000e+00> : vector<5x256xf32>
    %130 = tpu.matmul %129, %125, %cst_109 {dimension_numbers = #tpu.dot_dimension_numbers<[1], [0], [0], [1], [0, 0, 1, 1], [], []>} : vector<5x128xf32>, vector<128x256xf32>, vector<5x256xf32> -> vector<5x256xf32>
    %131 = arith.addf %123, %130 : vector<5x256xf32>
    %c1_110 = arith.constant 1 : index
    %c0_111 = arith.constant 0 : index
    %c0_112 = arith.constant 0 : index
    %132 = vector.load %arg4[%c1_110, %c0_111, %c0_112] : memref<5x128x256xf32, #tpu.memory_space<vmem>>, vector<1x128x256xf32>
    %133 = vector.shape_cast %132 : vector<1x128x256xf32> to vector<128x256xf32>
    %c8_113 = arith.constant 8 : index
    %c0_114 = arith.constant 0 : index
    %134 = vector.load %arg13[%c8_113, %c0_114] : memref<16x128xf32, #tpu.memory_space<vmem>>, vector<5x128xf32>
    %cst_115 = arith.constant dense<0.000000e+00> : vector<5x256xf32>
    %135 = tpu.matmul %134, %133, %cst_115 {dimension_numbers = #tpu.dot_dimension_numbers<[1], [0], [0], [1], [0, 0, 1, 1], [], []>} : vector<5x128xf32>, vector<128x256xf32>, vector<5x256xf32> -> vector<5x256xf32>
    %136 = arith.addf %128, %135 : vector<5x256xf32>
    %c1_116 = arith.constant 1 : index
    %c0_117 = arith.constant 0 : index
    %137 = vector.load %arg13[%c1_116, %c0_117] : memref<16x128xf32, #tpu.memory_space<vmem>>, vector<5x128xf32>
    %cst_118 = arith.constant dense<0.000000e+00> : vector<5x256xf32>
    %138 = tpu.matmul %137, %133, %cst_118 {dimension_numbers = #tpu.dot_dimension_numbers<[1], [0], [0], [1], [0, 0, 1, 1], [], []>} : vector<5x128xf32>, vector<128x256xf32>, vector<5x256xf32> -> vector<5x256xf32>
    %139 = arith.addf %131, %138 : vector<5x256xf32>
    %c2_119 = arith.constant 2 : index
    %c0_120 = arith.constant 0 : index
    %c0_121 = arith.constant 0 : index
    %140 = vector.load %arg4[%c2_119, %c0_120, %c0_121] : memref<5x128x256xf32, #tpu.memory_space<vmem>>, vector<1x128x256xf32>
    %141 = vector.shape_cast %140 : vector<1x128x256xf32> to vector<128x256xf32>
    %c1_122 = arith.constant 1 : index
    %c0_123 = arith.constant 0 : index
    %142 = vector.load %arg13[%c1_122, %c0_123] : memref<16x128xf32, #tpu.memory_space<vmem>>, vector<5x128xf32>
    %cst_124 = arith.constant dense<0.000000e+00> : vector<5x256xf32>
    %143 = tpu.matmul %142, %141, %cst_124 {dimension_numbers = #tpu.dot_dimension_numbers<[1], [0], [0], [1], [0, 0, 1, 1], [], []>} : vector<5x128xf32>, vector<128x256xf32>, vector<5x256xf32> -> vector<5x256xf32>
    %144 = arith.addf %136, %143 : vector<5x256xf32>
    %c9_125 = arith.constant 9 : index
    %c0_126 = arith.constant 0 : index
    %145 = vector.load %arg13[%c9_125, %c0_126] : memref<16x128xf32, #tpu.memory_space<vmem>>, vector<5x128xf32>
    %cst_127 = arith.constant dense<0.000000e+00> : vector<5x256xf32>
    %146 = tpu.matmul %145, %141, %cst_127 {dimension_numbers = #tpu.dot_dimension_numbers<[1], [0], [0], [1], [0, 0, 1, 1], [], []>} : vector<5x128xf32>, vector<128x256xf32>, vector<5x256xf32> -> vector<5x256xf32>
    %147 = arith.addf %139, %146 : vector<5x256xf32>
    %c3_128 = arith.constant 3 : index
    %c0_129 = arith.constant 0 : index
    %c0_130 = arith.constant 0 : index
    %148 = vector.load %arg4[%c3_128, %c0_129, %c0_130] : memref<5x128x256xf32, #tpu.memory_space<vmem>>, vector<1x128x256xf32>
    %149 = vector.shape_cast %148 : vector<1x128x256xf32> to vector<128x256xf32>
    %c9_131 = arith.constant 9 : index
    %c0_132 = arith.constant 0 : index
    %150 = vector.load %arg13[%c9_131, %c0_132] : memref<16x128xf32, #tpu.memory_space<vmem>>, vector<5x128xf32>
    %cst_133 = arith.constant dense<0.000000e+00> : vector<5x256xf32>
    %151 = tpu.matmul %150, %149, %cst_133 {dimension_numbers = #tpu.dot_dimension_numbers<[1], [0], [0], [1], [0, 0, 1, 1], [], []>} : vector<5x128xf32>, vector<128x256xf32>, vector<5x256xf32> -> vector<5x256xf32>
    %152 = arith.addf %144, %151 : vector<5x256xf32>
    %c2_134 = arith.constant 2 : index
    %c0_135 = arith.constant 0 : index
    %153 = vector.load %arg13[%c2_134, %c0_135] : memref<16x128xf32, #tpu.memory_space<vmem>>, vector<5x128xf32>
    %cst_136 = arith.constant dense<0.000000e+00> : vector<5x256xf32>
    %154 = tpu.matmul %153, %149, %cst_136 {dimension_numbers = #tpu.dot_dimension_numbers<[1], [0], [0], [1], [0, 0, 1, 1], [], []>} : vector<5x128xf32>, vector<128x256xf32>, vector<5x256xf32> -> vector<5x256xf32>
    %155 = arith.addf %147, %154 : vector<5x256xf32>
    %c4_137 = arith.constant 4 : index
    %c0_138 = arith.constant 0 : index
    %c0_139 = arith.constant 0 : index
    %156 = vector.load %arg4[%c4_137, %c0_138, %c0_139] : memref<5x128x256xf32, #tpu.memory_space<vmem>>, vector<1x128x256xf32>
    %157 = vector.shape_cast %156 : vector<1x128x256xf32> to vector<128x256xf32>
    %c2_140 = arith.constant 2 : index
    %c0_141 = arith.constant 0 : index
    %158 = vector.load %arg13[%c2_140, %c0_141] : memref<16x128xf32, #tpu.memory_space<vmem>>, vector<5x128xf32>
    %cst_142 = arith.constant dense<0.000000e+00> : vector<5x256xf32>
    %159 = tpu.matmul %158, %157, %cst_142 {dimension_numbers = #tpu.dot_dimension_numbers<[1], [0], [0], [1], [0, 0, 1, 1], [], []>} : vector<5x128xf32>, vector<128x256xf32>, vector<5x256xf32> -> vector<5x256xf32>
    %160 = arith.addf %152, %159 : vector<5x256xf32>
    %c10 = arith.constant 10 : index
    %c0_143 = arith.constant 0 : index
    %161 = vector.load %arg13[%c10, %c0_143] : memref<16x128xf32, #tpu.memory_space<vmem>>, vector<5x128xf32>
    %cst_144 = arith.constant dense<0.000000e+00> : vector<5x256xf32>
    %162 = tpu.matmul %161, %157, %cst_144 {dimension_numbers = #tpu.dot_dimension_numbers<[1], [0], [0], [1], [0, 0, 1, 1], [], []>} : vector<5x128xf32>, vector<128x256xf32>, vector<5x256xf32> -> vector<5x256xf32>
    %163 = arith.addf %155, %162 : vector<5x256xf32>
    %164 = vector.broadcast %1 : vector<1x256xf32> to vector<5x256xf32>
    %165 = arith.addf %160, %164 : vector<5x256xf32>
    %cst_145 = arith.constant 0.000000e+00 : f32
    %166 = vector.broadcast %cst_145 : f32 to vector<5x256xf32>
    %167 = arith.maximumf %165, %166 : vector<5x256xf32>
    %168 = vector.broadcast %1 : vector<1x256xf32> to vector<5x256xf32>
    %169 = arith.addf %163, %168 : vector<5x256xf32>
    %cst_146 = arith.constant 0.000000e+00 : f32
    %170 = vector.broadcast %cst_146 : f32 to vector<5x256xf32>
    %171 = arith.maximumf %169, %170 : vector<5x256xf32>
    %172 = vector.extract_strided_slice %167 {offsets = [0, 0], sizes = [5, 128], strides = [1, 1]} : vector<5x256xf32> to vector<5x128xf32>
    %173 = vector.extract_strided_slice %167 {offsets = [0, 128], sizes = [5, 128], strides = [1, 1]} : vector<5x256xf32> to vector<5x128xf32>
    %174 = arith.maximumf %172, %173 : vector<5x128xf32>
    %175 = vector.extract_strided_slice %171 {offsets = [0, 0], sizes = [5, 128], strides = [1, 1]} : vector<5x256xf32> to vector<5x128xf32>
    %176 = vector.extract_strided_slice %171 {offsets = [0, 128], sizes = [5, 128], strides = [1, 1]} : vector<5x256xf32> to vector<5x128xf32>
    %177 = arith.maximumf %175, %176 : vector<5x128xf32>
    %178 = arith.maximumf %174, %177 : vector<5x128xf32>
    %cst_147 = arith.constant 0.000000e+00 : f32
    %179 = vector.broadcast %cst_147 : f32 to vector<1x128xf32>
    %180 = vector.extract_strided_slice %178 {offsets = [0, 0], sizes = [1, 128], strides = [1, 1]} : vector<5x128xf32> to vector<1x128xf32>
    %c0_148 = arith.constant 0 : index
    %c0_149 = arith.constant 0 : index
    %c0_150 = arith.constant 0 : index
    %181 = vector.load %arg6[%c0_148, %c0_149, %c0_150] : memref<5x128x128xf32, #tpu.memory_space<vmem>>, vector<1x128x128xf32>
    %182 = vector.shape_cast %181 : vector<1x128x128xf32> to vector<128x128xf32>
    %cst_151 = arith.constant dense<0.000000e+00> : vector<1x128xf32>
    %183 = tpu.matmul %180, %182, %cst_151 {dimension_numbers = #tpu.dot_dimension_numbers<[1], [0], [0], [1], [0, 0, 1, 1], [], []>} : vector<1x128xf32>, vector<128x128xf32>, vector<1x128xf32> -> vector<1x128xf32>
    %184 = arith.addf %179, %183 : vector<1x128xf32>
    %185 = vector.extract_strided_slice %178 {offsets = [1, 0], sizes = [1, 128], strides = [1, 1]} : vector<5x128xf32> to vector<1x128xf32>
    %c1_152 = arith.constant 1 : index
    %c0_153 = arith.constant 0 : index
    %c0_154 = arith.constant 0 : index
    %186 = vector.load %arg6[%c1_152, %c0_153, %c0_154] : memref<5x128x128xf32, #tpu.memory_space<vmem>>, vector<1x128x128xf32>
    %187 = vector.shape_cast %186 : vector<1x128x128xf32> to vector<128x128xf32>
    %cst_155 = arith.constant dense<0.000000e+00> : vector<1x128xf32>
    %188 = tpu.matmul %185, %187, %cst_155 {dimension_numbers = #tpu.dot_dimension_numbers<[1], [0], [0], [1], [0, 0, 1, 1], [], []>} : vector<1x128xf32>, vector<128x128xf32>, vector<1x128xf32> -> vector<1x128xf32>
    %189 = arith.addf %184, %188 : vector<1x128xf32>
    %190 = vector.extract_strided_slice %178 {offsets = [2, 0], sizes = [1, 128], strides = [1, 1]} : vector<5x128xf32> to vector<1x128xf32>
    %c2_156 = arith.constant 2 : index
    %c0_157 = arith.constant 0 : index
    %c0_158 = arith.constant 0 : index
    %191 = vector.load %arg6[%c2_156, %c0_157, %c0_158] : memref<5x128x128xf32, #tpu.memory_space<vmem>>, vector<1x128x128xf32>
    %192 = vector.shape_cast %191 : vector<1x128x128xf32> to vector<128x128xf32>
    %cst_159 = arith.constant dense<0.000000e+00> : vector<1x128xf32>
    %193 = tpu.matmul %190, %192, %cst_159 {dimension_numbers = #tpu.dot_dimension_numbers<[1], [0], [0], [1], [0, 0, 1, 1], [], []>} : vector<1x128xf32>, vector<128x128xf32>, vector<1x128xf32> -> vector<1x128xf32>
    %194 = arith.addf %189, %193 : vector<1x128xf32>
    %195 = vector.extract_strided_slice %178 {offsets = [3, 0], sizes = [1, 128], strides = [1, 1]} : vector<5x128xf32> to vector<1x128xf32>
    %c3_160 = arith.constant 3 : index
    %c0_161 = arith.constant 0 : index
    %c0_162 = arith.constant 0 : index
    %196 = vector.load %arg6[%c3_160, %c0_161, %c0_162] : memref<5x128x128xf32, #tpu.memory_space<vmem>>, vector<1x128x128xf32>
    %197 = vector.shape_cast %196 : vector<1x128x128xf32> to vector<128x128xf32>
    %cst_163 = arith.constant dense<0.000000e+00> : vector<1x128xf32>
    %198 = tpu.matmul %195, %197, %cst_163 {dimension_numbers = #tpu.dot_dimension_numbers<[1], [0], [0], [1], [0, 0, 1, 1], [], []>} : vector<1x128xf32>, vector<128x128xf32>, vector<1x128xf32> -> vector<1x128xf32>
    %199 = arith.addf %194, %198 : vector<1x128xf32>
    %200 = vector.extract_strided_slice %178 {offsets = [4, 0], sizes = [1, 128], strides = [1, 1]} : vector<5x128xf32> to vector<1x128xf32>
    %c4_164 = arith.constant 4 : index
    %c0_165 = arith.constant 0 : index
    %c0_166 = arith.constant 0 : index
    %201 = vector.load %arg6[%c4_164, %c0_165, %c0_166] : memref<5x128x128xf32, #tpu.memory_space<vmem>>, vector<1x128x128xf32>
    %202 = vector.shape_cast %201 : vector<1x128x128xf32> to vector<128x128xf32>
    %cst_167 = arith.constant dense<0.000000e+00> : vector<1x128xf32>
    %203 = tpu.matmul %200, %202, %cst_167 {dimension_numbers = #tpu.dot_dimension_numbers<[1], [0], [0], [1], [0, 0, 1, 1], [], []>} : vector<1x128xf32>, vector<128x128xf32>, vector<1x128xf32> -> vector<1x128xf32>
    %204 = arith.addf %199, %203 : vector<1x128xf32>
    %c0_168 = arith.constant 0 : index
    %c0_169 = arith.constant 0 : index
    %205 = vector.load %arg7[%c0_168, %c0_169] : memref<1x128xf32, #tpu.memory_space<vmem>>, vector<1x128xf32>
    %206 = arith.addf %204, %205 : vector<1x128xf32>
    %cst_170 = arith.constant 0.000000e+00 : f32
    %207 = vector.broadcast %cst_170 : f32 to vector<1x128xf32>
    %208 = arith.maximumf %206, %207 : vector<1x128xf32>
    %c0_171 = arith.constant 0 : index
    %c0_172 = arith.constant 0 : index
    %209 = vector.load %arg8[%c0_171, %c0_172] : memref<128x128xf32, #tpu.memory_space<vmem>>, vector<128x128xf32>
    %cst_173 = arith.constant dense<0.000000e+00> : vector<1x128xf32>
    %210 = tpu.matmul %208, %209, %cst_173 {dimension_numbers = #tpu.dot_dimension_numbers<[1], [0], [0], [1], [0, 0, 1, 1], [], []>} : vector<1x128xf32>, vector<128x128xf32>, vector<1x128xf32> -> vector<1x128xf32>
    %c0_174 = arith.constant 0 : index
    %c0_175 = arith.constant 0 : index
    %211 = vector.load %arg9[%c0_174, %c0_175] : memref<1x128xf32, #tpu.memory_space<vmem>>, vector<1x128xf32>
    %212 = arith.addf %210, %211 : vector<1x128xf32>
    %cst_176 = arith.constant 0.000000e+00 : f32
    %213 = vector.broadcast %cst_176 : f32 to vector<1x128xf32>
    %214 = arith.maximumf %212, %213 : vector<1x128xf32>
    %c0_177 = arith.constant 0 : index
    %c0_178 = arith.constant 0 : index
    %215 = vector.load %arg10[%c0_177, %c0_178] : memref<128x128xf32, #tpu.memory_space<vmem>>, vector<128x128xf32>
    %cst_179 = arith.constant dense<0.000000e+00> : vector<1x128xf32>
    %216 = tpu.matmul %214, %215, %cst_179 {dimension_numbers = #tpu.dot_dimension_numbers<[1], [0], [0], [1], [0, 0, 1, 1], [], []>} : vector<1x128xf32>, vector<128x128xf32>, vector<1x128xf32> -> vector<1x128xf32>
    %c0_180 = arith.constant 0 : index
    %c0_181 = arith.constant 0 : index
    %217 = vector.load %arg11[%c0_180, %c0_181] : memref<1x128xf32, #tpu.memory_space<vmem>>, vector<1x128xf32>
    %218 = arith.addf %216, %217 : vector<1x128xf32>
    %c0_182 = arith.constant 0 : index
    %c0_183 = arith.constant 0 : index
    %c0_184 = arith.constant 0 : index
    %219 = vector.load %arg12[%c0_182, %c0_183, %c0_184] : memref<1x1x128xf32, #tpu.memory_space<vmem>>, vector<1x1x128xf32>
    %220 = vector.shape_cast %219 : vector<1x1x128xf32> to vector<1x128xf32>
    %221 = vector.shape_cast %218 : vector<1x128xf32> to vector<1x1x128xf32>
    tpu.vector_store %arg12[%c0_182, %c0_183, %c0_184], %221 {strides = array<i32>} : memref<1x1x128xf32, #tpu.memory_space<vmem>>, vector<1x1x128xf32>,
    return
  }
  func.func @transform_0(%arg0: i32) -> (i32, i32, i32) {
    %c0_i32 = arith.constant 0 : i32
    %c0_i32_0 = arith.constant 0 : i32
    %c0_i32_1 = arith.constant 0 : i32
    return %arg0, %c0_i32, %c0_i32_0 : i32, i32, i32
  }
  func.func @transform_1(%arg0: i32) -> (i32, i32, i32) {
    %c0_i32 = arith.constant 0 : i32
    %c0_i32_0 = arith.constant 0 : i32
    %c0_i32_1 = arith.constant 0 : i32
    %c0_i32_2 = arith.constant 0 : i32
    return %c0_i32, %c0_i32_0, %c0_i32_1 : i32, i32, i32
  }
  func.func @transform_2(%arg0: i32) -> (i32, i32) {
    %c0_i32 = arith.constant 0 : i32
    %c0_i32_0 = arith.constant 0 : i32
    %c0_i32_1 = arith.constant 0 : i32
    return %c0_i32, %c0_i32_0 : i32, i32
  }
  func.func @transform_3(%arg0: i32) -> (i32, i32, i32) {
    %c0_i32 = arith.constant 0 : i32
    %c0_i32_0 = arith.constant 0 : i32
    %c0_i32_1 = arith.constant 0 : i32
    %c0_i32_2 = arith.constant 0 : i32
    return %c0_i32, %c0_i32_0, %c0_i32_1 : i32, i32, i32
  }
  func.func @transform_4(%arg0: i32) -> (i32, i32) {
    %c0_i32 = arith.constant 0 : i32
    %c0_i32_0 = arith.constant 0 : i32
    %c0_i32_1 = arith.constant 0 : i32
    return %c0_i32, %c0_i32_0 : i32, i32
  }
  func.func @transform_5(%arg0: i32) -> (i32, i32, i32) {
    %c0_i32 = arith.constant 0 : i32
    %c0_i32_0 = arith.constant 0 : i32
    %c0_i32_1 = arith.constant 0 : i32
    %c0_i32_2 = arith.constant 0 : i32
    return %c0_i32, %c0_i32_0, %c0_i32_1 : i32, i32, i32
  }
  func.func @transform_6(%arg0: i32) -> (i32, i32) {
    %c0_i32 = arith.constant 0 : i32
    %c0_i32_0 = arith.constant 0 : i32
    %c0_i32_1 = arith.constant 0 : i32
    return %c0_i32, %c0_i32_0 : i32, i32
  }
  func.func @transform_7(%arg0: i32) -> (i32, i32) {
    %c0_i32 = arith.constant 0 : i32
    %c0_i32_0 = arith.constant 0 : i32
    %c0_i32_1 = arith.constant 0 : i32
    return %c0_i32, %c0_i32_0 : i32, i32
  }
  func.func @transform_8(%arg0: i32) -> (i32, i32) {
    %c0_i32 = arith.constant 0 : i32
    %c0_i32_0 = arith.constant 0 : i32
    %c0_i32_1 = arith.constant 0 : i32
    return %c0_i32, %c0_i32_0 : i32, i32
  }
  func.func @transform_9(%arg0: i32) -> (i32, i32) {
    %c0_i32 = arith.constant 0 : i32
    %c0_i32_0 = arith.constant 0 : i32
    %c0_i32_1 = arith.constant 0 : i32
    return %c0_i32, %c0_i32_0 : i32, i32
  }
  func.func @transform_10(%arg0: i32) -> (i32, i32) {
    %c0_i32 = arith.constant 0 : i32
    %c0_i32_0 = arith.constant 0 : i32
    %c0_i32_1 = arith.constant 0 : i32
    return %c0_i32, %c0_i32_0 : i32, i32
  }
  func.func @transform_11(%arg0: i32) -> (i32, i32, i32) {
    %c0_i32 = arith.constant 0 : i32
    %c0_i32_0 = arith.constant 0 : i32
    %c0_i32_1 = arith.constant 0 : i32
    return %arg0, %c0_i32, %c0_i32_0 : i32, i32, i32
  }
}

</mosaic_0001>

<bundles_post_ra>
// kernel: tile.13
= control target key start
LH: loop header
LB: loop body
LE: loop exit
PB: predicated region body
PF: predicated region fallthrough
CT: control target
= control target key end

     0   :  { %s28_s0 = inlined_call_operand.vmem [shape: f32[6], index: 0, kind: input, shape index: {}]   ;;  %s29_s1 = inlined_call_operand.vmem [shape: f32[14,6], index: 1, kind: output, shape index: {}]  }
   0x1   :  { %v4_v0 = vld [vmem:[%s28_s0] ss:$0 sm:$0xff] }
   0x2   :  { %5 = vst [vmem:[%s29_s1] sm:$0xff] %v4_v0  ;;  %8 = vst [vmem:[%s29_s1 + $0x8] sm:$0xff] %v4_v0 }

// kernel: tile.14
= control target key start
LH: loop header
LB: loop body
LE: loop exit
PB: predicated region body
PF: predicated region fallthrough
CT: control target
= control target key end

     0   :  { %s115_s10 = smov 78   ;;  %s116_s11 = smov 66   ;;  %vm3_vm0 = vcmask 48128   ;;  %vm9_vm1 = vcmask 687728   ;;  %vm15_vm2 = vcmask 638528   ;;  %vm21_vm3 = vcmask 589328   ;;  %s183_s0 = inlined_call_operand.vmem [shape: f32[14,6], index: 0, kind: input, shape index: {}]   ;;  %s184_s1 = inlined_call_operand.vmem [shape: f32[84], index: 1, kind: output, shape index: {}]  }
   0x1   :  { %v89_v0 = vld [vmem:[%s183_s0 + $0xd] sm:$0x1]   ;;  %v91_v1 = vld [vmem:[%s183_s0 + $0xb] sm:$0x1]   ;;  %v90_v2 = vld [vmem:[%s183_s0 + $0xc] sm:$0x1]  }
   0x2   :  { %7 = vrot.lane.b32.xlu0 %v89_v0, %s115_s10  ;;  %19 = vrot.lane.b32.xlu1 %v91_v1, %s116_s11  ;;  %v92_v3 = vld [vmem:[%s183_s0 + $0xa] sm:$0x1]   ;;  %s117_s16 = smov 72   ;;  %s118_s17 = smov 60   ;;  %v93_v4 = vld [vmem:[%s183_s0 + $0x9] sm:$0x1]  }
   0x3   :  { %v94_v5 = vld [vmem:[%s183_s0 + $0x8] sm:$0x1]   ;;  %v2_v6 = vld [vmem:[%s183_s0] sm:$0x1]   ;;  %s119_s24 = smov 54   ;;  %s120_s25 = smov 48  }
   0x4   :  { %4 = vst.msk [vmem:[#allocation0] sm:$0x1] %vm3_vm0, %v2_v6   ;;  %v95_v7 = vld [vmem:[%s183_s0 + $0x7] sm:$0x1]   ;;  %v96_v8 = vld [vmem:[%s183_s0 + $0x6] sm:$0x1]  }
   0x5   :  { %s121_s30 = smov 42   ;;  %s122_s2 = smov 36   ;;  %v97_v9 = vld [vmem:[%s183_s0 + $0x5] sm:$0x1]   ;;  %v98_v10 = vld [vmem:[%s183_s0 + $0x4] sm:$0x1]  }
   0x6   :  { %13 = vrot.lane.b32.xlu0 %v90_v2, %s117_s16  ;;  %25 = vrot.lane.b32.xlu1 %v92_v3, %s118_s17  ;;  %s123_s7 = smov 30   ;;  %s124_s8 = smov 24   ;;  %v99_v11 = vld [vmem:[%s183_s0 + $0x3] sm:$0x1]   ;;  %v100_v12 = vld [vmem:[%s183_s0 + $0x2] sm:$0x1]  }
   0x7   :  { %s125_s13 = smov 18   ;;  %s126_s14 = smov 12   ;;  %v101_v13 = vld [vmem:[%s183_s0 + $0x1] sm:$0x1]   ;;  %vm27_vm4 = vcmask 540128   ;;  %vm33_vm5 = vcmask 490928  }
   0x8   :  { %s127_s0 = smov 6   ;;  %vm39_vm6 = vcmask 441728   ;;  %vm45_vm7 = vcmask 392528   ;;  %vm51_vm8 = vcmask 343328   ;;  %vm57_vm9 = vcmask 294128  }
   0x9   :  { %vm63_vm10 = vcmask 244928   ;;  %vm69_vm11 = vcmask 195728   ;;  %vm75_vm12 = vcmask 146528   ;;  %vm81_vm13 = vcmask 97328  }
   0xa   :  { %31 = vrot.lane.b32.xlu0 %v93_v4, %s119_s24  ;;  %37 = vrot.lane.b32.xlu1 %v94_v5, %s120_s25 }
   0xe   :  { %43 = vrot.lane.b32.xlu0 %v95_v7, %s121_s30  ;;  %49 = vrot.lane.b32.xlu1 %v96_v8, %s122_s2 }
  0x12   :  { %55 = vrot.lane.b32.xlu0 %v97_v9, %s123_s7  ;;  %61 = vrot.lane.b32.xlu1 %v98_v10, %s124_s8 }
  0x16   :  { %67 = vrot.lane.b32.xlu0 %v99_v11, %s125_s13  ;;  %73 = vrot.lane.b32.xlu1 %v100_v12, %s126_s14 }
  0x1a   :  { %79 = vrot.lane.b32.xlu0 %v101_v13, %s127_s0 }
  0x74   :  { %v8_v14 = vpop.permute.xlu0 %7   ;;  %v20_v15 = vpop.permute.xlu1 %19  }
  0x75   :  { %10 = vst.msk [vmem:[#allocation0] sm:$0x1] %vm9_vm1, %v8_v14  }
  0x78   :  { %v14_v16 = vpop.permute.xlu0 %13   ;;  %v26_v17 = vpop.permute.xlu1 %25  }
  0x79   :  { %16 = vst.msk [vmem:[#allocation0] sm:$0x1] %vm15_vm2, %v14_v16  }
  0x7a   :  { %22 = vst.msk [vmem:[#allocation0] sm:$0x1] %vm21_vm3, %v20_v15  }
  0x7b   :  { %28 = vst.msk [vmem:[#allocation0] sm:$0x1] %vm27_vm4, %v26_v17  }
  0x7c   :  { %v32_v18 = vpop.permute.xlu0 %31   ;;  %v38_v19 = vpop.permute.xlu1 %37  }
  0x7d   :  { %34 = vst.msk [vmem:[#allocation0] sm:$0x1] %vm33_vm5, %v32_v18  }
  0x7e   :  { %40 = vst.msk [vmem:[#allocation0] sm:$0x1] %vm39_vm6, %v38_v19  }
  0x80   :  { %v44_v20 = vpop.permute.xlu0 %43   ;;  %v50_v21 = vpop.permute.xlu1 %49  }
  0x81   :  { %46 = vst.msk [vmem:[#allocation0] sm:$0x1] %vm45_vm7, %v44_v20  }
  0x82   :  { %52 = vst.msk [vmem:[#allocation0] sm:$0x1] %vm51_vm8, %v50_v21  }
  0x84   :  { %v56_v22 = vpop.permute.xlu0 %55   ;;  %v62_v23 = vpop.permute.xlu1 %61  }
  0x85   :  { %58 = vst.msk [vmem:[#allocation0] sm:$0x1] %vm57_vm9, %v56_v22  }
  0x86   :  { %64 = vst.msk [vmem:[#allocation0] sm:$0x1] %vm63_vm10, %v62_v23  }
  0x88   :  { %v68_v24 = vpop.permute.xlu0 %67   ;;  %v74_v25 = vpop.permute.xlu1 %73  }
  0x89   :  { %70 = vst.msk [vmem:[#allocation0] sm:$0x1] %vm69_vm11, %v68_v24  }
  0x8a   :  { %76 = vst.msk [vmem:[#allocation0] sm:$0x1] %vm75_vm12, %v74_v25  }
  0x8c   :  { %v80_v26 = vpop.permute.xlu0 %79  }
  0x8d   :  { %82 = vst.msk [vmem:[#allocation0] sm:$0x1] %vm81_vm13, %v80_v26  }
  0x94   :  { %v86_v27 = vld [vmem:[#allocation0] sm:$0x1] }
  0x95   :  { %88 = vst [vmem:[%s184_s1] sm:$0x1] %v86_v27 }

// kernel: tile.18
= control target key start
LH: loop header
LB: loop body
LE: loop exit
PB: predicated region body
PF: predicated region fallthrough
CT: control target
= control target key end

     0   :  { %s22_s0 = inlined_call_operand.vmem [shape: f32[16], index: 0, kind: input, shape index: {}]   ;;  %s23_s1 = inlined_call_operand.vmem [shape: f32[5,16], index: 1, kind: output, shape index: {}]  }
   0x1   :  { %v4_v0 = vld [vmem:[%s22_s0] ss:$0 sm:$0xff] }
   0x2   :  { %5 = vst [vmem:[%s23_s1] sm:$0xff] %v4_v0 }

// kernel: tile.19
= control target key start
LH: loop header
LB: loop body
LE: loop exit
PB: predicated region body
PF: predicated region fallthrough
CT: control target
= control target key end

     0   :  { %s43_s10 = smov 64   ;;  %s44_s11 = smov 32   ;;  %vm3_vm0 = vcmask 130048   ;;  %vm9_vm1 = vcmask 654848   ;;  %vm15_vm2 = vcmask 523648   ;;  %vm21_vm3 = vcmask 392448   ;;  %s75_s0 = inlined_call_operand.vmem [shape: f32[5,16], index: 0, kind: input, shape index: {}]   ;;  %s76_s1 = inlined_call_operand.vmem [shape: f32[80], index: 1, kind: output, shape index: {}]  }
   0x1   :  { %v35_v0 = vld [vmem:[%s75_s0 + $0x4] sm:$0x1]   ;;  %v37_v1 = vld [vmem:[%s75_s0 + $0x2] sm:$0x1]   ;;  %v36_v2 = vld [vmem:[%s75_s0 + $0x3] sm:$0x1]  }
   0x2   :  { %7 = vrot.lane.b32.xlu0 %v35_v0, %s43_s10  ;;  %19 = vrot.lane.b32.xlu1 %v37_v1, %s44_s11  ;;  %v38_v3 = vld [vmem:[%s75_s0 + $0x1] sm:$0x1]   ;;  %v2_v4 = vld [vmem:[%s75_s0] sm:$0x1]   ;;  %s45_s0 = smov 48   ;;  %s46_s18 = smov 16  }
   0x3   :  { %4 = vst.msk [vmem:[#allocation0] sm:$0x1] %vm3_vm0, %v2_v4   ;;  %vm27_vm4 = vcmask 261248  }
   0x6   :  { %13 = vrot.lane.b32.xlu0 %v36_v2, %s45_s0  ;;  %25 = vrot.lane.b32.xlu1 %v38_v3, %s46_s18 }
  0x74   :  { %v8_v5 = vpop.permute.xlu0 %7   ;;  %v20_v6 = vpop.permute.xlu1 %19  }
  0x75   :  { %10 = vst.msk [vmem:[#allocation0] sm:$0x1] %vm9_vm1, %v8_v5  }
  0x78   :  { %v14_v7 = vpop.permute.xlu0 %13   ;;  %v26_v8 = vpop.permute.xlu1 %25  }
  0x79   :  { %16 = vst.msk [vmem:[#allocation0] sm:$0x1] %vm15_vm2, %v14_v7  }
  0x7a   :  { %22 = vst.msk [vmem:[#allocation0] sm:$0x1] %vm21_vm3, %v20_v6  }
  0x7b   :  { %28 = vst.msk [vmem:[#allocation0] sm:$0x1] %vm27_vm4, %v26_v8  }
  0x82   :  { %v32_v9 = vld [vmem:[#allocation0] sm:$0x1] }
  0x83   :  { %34 = vst [vmem:[%s76_s1] sm:$0x1] %v32_v9 }

// kernel: net_forward.1
= control target key start
LH: loop header
LB: loop body
LE: loop exit
PB: predicated region body
PF: predicated region fallthrough
CT: control target
= control target key end

     0   :  { %16 = vsyncpa [#allocation4], 0  ;;  %s7547_s0 = inlined_call_operand.vmem [shape: f32[2,32,96], index: 0, kind: input, shape index: {}]   ;;  %s7548_s1 = inlined_call_operand.vmem [shape: f32[5,96,256], index: 1, kind: input, shape index: {}]   ;;  %s7549_s2 = inlined_call_operand.vmem [shape: f32[1,256], index: 2, kind: input, shape index: {}]   ;;  %s7550_s3 = inlined_call_operand.vmem [shape: f32[5,128,256], index: 3, kind: input, shape index: {}]   ;;  %s7551_s4 = inlined_call_operand.vmem [shape: f32[1,256], index: 4, kind: input, shape index: {}]   ;;  %s7552_s5 = inlined_call_operand.vmem [shape: f32[5,128,128], index: 5, kind: input, shape index: {}]   ;;  %s7553_s6 = inlined_call_operand.vmem [shape: f32[1,128], index: 6, kind: input, shape index: {}]   ;;  %s7554_s7 = inlined_call_operand.vmem [shape: f32[128,128], index: 7, kind: input, shape index: {}]   ;;  %s7555_s8 = inlined_call_operand.vmem [shape: f32[1,128], index: 8, kind: input, shape index: {}]   ;;  %s7556_s9 = inlined_call_operand.vmem [shape: f32[128,128], index: 9, kind: input, shape index: {}]   ;;  %s7557_s10 = inlined_call_operand.vmem [shape: f32[1,128], index: 10, kind: input, shape index: {}]   ;;  %s7558_s11 = inlined_call_operand.hbm [shape: f32[2,1,128], index: 11, kind: output, shape index: {}]  }
   0x1   :  { %18 = vsyncpa [#allocation4 + $0x1], 0  ;;  %s5497_s17 = smov 0   ;;  %s5499_s18 = smov 0  }
   0x2   :  { %s5501_s19 = smov 0   ;;  %s5503_s20 = smov 0  }
   0x3 LB: > { %s5518_s21 = sadd.s32 4294967295, %s5431_s20   ;;  %s3629_s22 = sadd.s32 4294967294, %s5431_s20   ;;  %s5431_s20 = sphi %s5503_s20, %s7566_s20   ;;  %s5427_s19 = sphi %s5501_s19, %s7565_s19   ;;  %s5423_s18 = sphi %s5499_s18, %s7564_s18   ;;  %s5419_s17 = sphi %s5497_s17, %s7563_s17  }
   0x4   : > { %s5522_s23 = sadd.s32 1, %s5431_s20   ;;  %s267_s24 = sadd.s32 1, %s5427_s19 }
   0x5   : > { %s264_s25 = ssub.s32 %s5431_s20, %s5522_s23  ;;  %p277_p0 = scmp.ne.s32.totalorder %s5427_s19, %s5423_s18 }
   0x6   : > { %p265_p1 = scmp.eq.s32.totalorder %s264_s25, 0  ;;  %p278_p2 = scmp.eq.s32.totalorder %s5518_s21, 1 }
   0x7   : > { %p283_p3 = scmp.ne.s32.totalorder %s5423_s18, %s5419_s17  ;;  %p284_p4 = scmp.eq.s32.totalorder %s3629_s22, 1 }
   0x8   : > { %s5533_s26 = scalar_select %p265_p1, %s5427_s19, %s267_s24  }
   0x9   : > { %p5535_p5 = por %p278_p2, %p277_p0  ;;  %p5539_p6 = por %p284_p4, %p283_p3 }
   0xa   : > { %7559 = sst [smem:[#allocation6_spill]] %s5533_s26  ;;  %p3632_p7 = scmp.ge.s32.totalorder %s5431_s20, 1 }
   0xb   : > { %p340_p8 = scmp.lt.s32.totalorder %s5431_s20, 3 }
   0xd   : > { %p341_p9 = pnand %p3632_p7, %p340_p8 }
   0xe   : > { %v3636_v0 = vld [vmem:[%s7548_s1 + $0xc8] sm:$0xff] (!%p341_p9)  ;;  %v3638_v1 = vld [vmem:[%s7548_s1 + $0xd8] sm:$0xff] (!%p341_p9)  ;;  %v3635_v5 = vld [vmem:[%s7548_s1 + $0xc0] sm:$0xff] (!%p341_p9)  ;;  %v5433_v7 = vmov (!%p341_p9), 0.0   ;;  %p379_p10 = scmp.lt.s32.totalorder (!%p341_p9), %s5518_s21, 1  ;;  %vm439_vm0 = vcmask (!%p341_p9), 785408  }
   0xf   : > { %344 = sbr.rel (%p341_p9) target bundleno = 1587 (0x633), region = 64  ;;  %v387_v2 = vld [vmem:[%s7548_s1 + $0x8] sm:$0xff] (!%p341_p9)  ;;  %v5554_v3 = vpack.c.bf16 (!%p341_p9), %v3638_v1, %v3636_v0  ;;  %v389_v4 = vld [vmem:[%s7548_s1 + $0x18] sm:$0xff] (!%p341_p9)  ;;  %v3637_v6 = vld [vmem:[%s7548_s1 + $0xd0] sm:$0xff] (!%p341_p9)  ;;  %507 = vmatprep.mubr.f32.mxu1 (!%p341_p9), %v5433_v7  ;;  %581 = vmatprep.mubr.f32.mxu0 (!%p341_p9), %v5433_v7  ;;  %vm5435_vm1 = vmmov (!%p341_p9), 0   ;;  %s377_s13 = sand.u32 (!%p341_p9), 1, %s5423_s18  }
  0x10   : > { %v5567_v8 = vpack.c.bf16 (!%p341_p9), %v389_v4, %v387_v2  ;;  %v5569_v9 = vpack.c.bf16 (!%p341_p9), %v3637_v6, %v3635_v5  ;;  %v386_v10 = vld [vmem:[%s7548_s1] sm:$0xff] (!%p341_p9)  ;;  %v388_v11 = vld [vmem:[%s7548_s1 + $0x10] sm:$0xff] (!%p341_p9)  ;;  %v3640_v12 = vld [vmem:[%s7548_s1 + $0xe8] sm:$0xff] (!%p341_p9)  ;;  %s3943_s16 = sshll.u32 (!%p341_p9), %s5518_s21, 4  ;;  %s3562_s30 = scalar_lea.sflag (!%p341_p9), [#allocation4], %s377_s13 }
  0x11   : > { %4312 = vmatprep.subr.bf16.mxu1 (!%p341_p9), %v5554_v3  ;;  %v5581_v13 = vpack.c.bf16 (!%p341_p9), %v388_v11, %v386_v10  ;;  %v3642_v14 = vld [vmem:[%s7548_s1 + $0xf8] sm:$0xff] (!%p341_p9)  ;;  %v391_v15 = vld [vmem:[%s7548_s1 + $0x28] sm:$0xff] (!%p341_p9)  ;;  %v3639_v19 = vld [vmem:[%s7548_s1 + $0xe0] sm:$0xff] (!%p341_p9)  ;;  %s7505_s29 = scalar_lea.hbm (!%p341_p9), %s7558_s11, %s3943_s16 }
  0x12   : > { %v393_v16 = vld [vmem:[%s7548_s1 + $0x38] sm:$0xff] (!%p341_p9)  ;;  %4336 = vmatprep.subr.bf16.mxu0 (!%p341_p9), %v5567_v8  ;;  %4314 = vmatpush1.bf16.msra.mxu1 (!%p341_p9), %v5569_v9  ;;  %v5594_v17 = vpack.c.bf16 (!%p341_p9), %v3642_v14, %v3640_v12  ;;  %v3641_v20 = vld [vmem:[%s7548_s1 + $0xf0] sm:$0xff] (!%p341_p9)  ;;  %v390_v21 = vld [vmem:[%s7548_s1 + $0x20] sm:$0xff] (!%p341_p9) }
  0x13   : > { %v5596_v18 = vpack.c.bf16 (!%p341_p9), %v393_v16, %v391_v15  ;;  %4338 = vmatpush1.bf16.msra.mxu0 (!%p341_p9), %v5581_v13  ;;  %v5608_v22 = vpack.c.bf16 (!%p341_p9), %v3641_v20, %v3639_v19  ;;  %v392_v23 = vld [vmem:[%s7548_s1 + $0x30] sm:$0xff] (!%p341_p9)  ;;  %v3644_v24 = vld [vmem:[%s7548_s1 + $0x108] sm:$0xff] (!%p341_p9)  ;;  %v3646_v25 = vld [vmem:[%s7548_s1 + $0x118] sm:$0xff] (!%p341_p9) }
  0x14   : > { %4316 = vmatprep.subr.bf16.mxu1 (!%p341_p9), %v5594_v17  ;;  %v5621_v26 = vpack.c.bf16 (!%p341_p9), %v392_v23, %v390_v21  ;;  %v5623_v27 = vpack.c.bf16 (!%p341_p9), %v3646_v25, %v3644_v24  ;;  %v395_v28 = vld [vmem:[%s7548_s1 + $0x48] sm:$0xff] (!%p341_p9)  ;;  %v397_v29 = vld [vmem:[%s7548_s1 + $0x58] sm:$0xff] (!%p341_p9)  ;;  %v3643_v30 = vld [vmem:[%s7548_s1 + $0x100] sm:$0xff] (!%p341_p9) }
  0x15   : > { %4340 = vmatprep.subr.bf16.mxu0 (!%p341_p9), %v5596_v18  ;;  %v5634_v31 = vpack.c.bf16 (!%p341_p9), %v397_v29, %v395_v28  ;;  %v3645_v32 = vld [vmem:[%s7548_s1 + $0x110] sm:$0xff] (!%p341_p9)  ;;  %v394_v33 = vld [vmem:[%s7548_s1 + $0x40] sm:$0xff] (!%p341_p9)  ;;  %v3648_v36 = vld [vmem:[%s7548_s1 + $0x128] sm:$0xff] (!%p341_p9) }
  0x16   : > { %v396_v34 = vld [vmem:[%s7548_s1 + $0x50] sm:$0xff]  ;;  %4318 = vmatpush1.bf16.msra.mxu1 %v5608_v22  ;;  %v5646_v35 = vpack.c.bf16 %v3645_v32, %v3643_v30  ;;  %v3650_v37 = vld [vmem:[%s7548_s1 + $0x138] sm:$0xff]  ;;  %v399_v38 = vld [vmem:[%s7548_s1 + $0x68] sm:$0xff]  ;;  %s380_s12 = scalar_select %p379_p10, %s5518_s21, 1 }
  0x17   : > { %4342 = vmatpush1.bf16.msra.mxu0 %v5621_v26  ;;  %4320 = vmatprep.subr.bf16.mxu1 %v5623_v27  ;;  %v5659_v39 = vpack.c.bf16 %v396_v34, %v394_v33  ;;  %v5661_v40 = vpack.c.bf16 %v3650_v37, %v3648_v36  ;;  %v401_v41 = vld [vmem:[%s7548_s1 + $0x78] sm:$0xff]  ;;  %v3647_v42 = vld [vmem:[%s7548_s1 + $0x120] sm:$0xff]  ;;  %v3649_v43 = vld [vmem:[%s7548_s1 + $0x130] sm:$0xff]  ;;  %s5436_s21 = smov [#allocation3]  }
  0x18   : > { %4344 = vmatprep.subr.bf16.mxu0 %v5634_v31  ;;  %v5673_v44 = vpack.c.bf16 %v401_v41, %v399_v38  ;;  %v398_v45 = vld [vmem:[%s7548_s1 + $0x60] sm:$0xff]  ;;  %v400_v46 = vld [vmem:[%s7548_s1 + $0x70] sm:$0xff]  ;;  %v3652_v47 = vld [vmem:[%s7548_s1 + $0x148] sm:$0xff]  ;;  %v5695_v51 = vpack.c.bf16 %v3649_v43, %v3647_v42  ;;  %s3946_s14 = sshll.u32 %s380_s12, 5  ;;  %s378_s12 = scalar_lea.vmem [#allocation3], %s377_s13 }
  0x19   : > { %v3654_v48 = vld [vmem:[%s7548_s1 + $0x158] sm:$0xff]  ;;  %v403_v49 = vld [vmem:[%s7548_s1 + $0x88] sm:$0xff]  ;;  %v5699_v52 = vpack.c.bf16 %v400_v46, %v398_v45  ;;  %v3651_v54 = vld [vmem:[%s7548_s1 + $0x140] sm:$0xff]  ;;  %s5767_s22 = scalar_lea.vmem %s7547_s0, %s3946_s14  ;;  %s3574_s24 = sshll.u32 %s378_s12, 4  ;;  %s7507_s24 = int_to_ptr.vmem [resolvable:$true] %s3574_s24 }
  0x1a   : > { %v405_v50 = vld [vmem:[%s7548_s1 + $0x98] sm:$0xff]  ;;  %4322 = vmatpush1.bf16.msra.mxu1 %v5646_v35  ;;  %v5701_v53 = vpack.c.bf16 %v3654_v48, %v3652_v47  ;;  %v3653_v55 = vld [vmem:[%s7548_s1 + $0x150] sm:$0xff]  ;;  %v402_v56 = vld [vmem:[%s7548_s1 + $0x80] sm:$0xff]  ;;  %s5369_s26 = scalar_lea.vmem %s7507_s24, 16  ;;  %s5373_s14 = sshll.u32 %s5436_s21, 4  ;;  %s5374_s14 = int_to_ptr.vmem [resolvable:$false] %s5373_s14 }
  0x1b   : > { %4346 = vmatpush1.bf16.msra.mxu0 %v5659_v39  ;;  %4324 = vmatprep.subr.bf16.mxu1 %v5661_v40  ;;  %v5713_v57 = vpack.c.bf16 %v405_v50, %v403_v49  ;;  %v404_v58 = vld [vmem:[%s7548_s1 + $0x90] sm:$0xff]  ;;  %v3656_v59 = vld [vmem:[%s7548_s1 + $0x168] sm:$0xff]  ;;  %v3658_v60 = vld [vmem:[%s7548_s1 + $0x178] sm:$0xff]  ;;  %v5734_v63 = vpack.c.bf16 %v3653_v55, %v3651_v54  ;;  %p5370_p11 = scmp.ne.s32.totalorder %s7507_s24, %s5369_s26  ;;  %s5375_s15 = scalar_lea.vmem %s5374_s14, 32 }
  0x1c   : > { %4348 = vmatprep.subr.bf16.mxu0 %v5673_v44  ;;  %v407_v61 = vld [vmem:[%s7548_s1 + $0xa8] sm:$0xff]  ;;  %v409_v62 = vld [vmem:[%s7548_s1 + $0xb8] sm:$0xff]  ;;  %v5738_v0 = vpack.c.bf16 %v404_v58, %v402_v56  ;;  %v5740_v1 = vpack.c.bf16 %v3658_v60, %v3656_v59  ;;  %v3655_v2 = vld [vmem:[%s7548_s1 + $0x160] sm:$0xff]  ;;  %p5376_p0 = scmp.lt.s32.totalorder %s7507_s24, %s5374_s14  ;;  %p5377_p1 = scmp.lt.s32.totalorder %s5375_s15, %s5369_s26 }
  0x1d   : > { %v3657_v4 = vld [vmem:[%s7548_s1 + $0x170] sm:$0xff]  ;;  %v5749_v5 = vpack.c.bf16 %v409_v62, %v407_v61  ;;  %v406_v6 = vld [vmem:[%s7548_s1 + $0xa0] sm:$0xff]  ;;  %v5772_v14 = vld [vmem:[%s5767_s22 + $0x8] sm:$0x7f]  ;;  %p5371_p12 = pnand %p5370_p11, %p5535_p5 }
  0x1e   : > { %4326 = vmatpush1.bf16.msra.mxu1 %v5695_v51  ;;  %v408_v10 = vld [vmem:[%s7548_s1 + $0xb0] sm:$0xff]  ;;  %v5758_v11 = vpack.c.bf16 %v3657_v4, %v3655_v2  ;;  %v410_v15 = vld [vmem:[%s5767_s22] sm:$0x7f]  ;;  %v5810_v19 = vld [vmem:[%s5767_s22 + $0x18] sm:$0x7f]  ;;  %p5378_p2 = por %p5377_p1, %p5376_p0 }
  0x1f   : > { %4350 = vmatpush1.bf16.msra.mxu0 %v5699_v52  ;;  %4328 = vmatprep.subr.bf16.mxu1 %v5701_v53  ;;  %v5762_v12 = vpack.c.bf16 %v408_v10, %v406_v6  ;;  %v5805_v16 = vld [vmem:[%s5767_s22 + $0x10] sm:$0x7f]  ;;  %v3668_v20 = vld [vmem:[%s7548_s1 + $0x188] sm:$0xff]  ;;  %v3670_v21 = vld [vmem:[%s7548_s1 + $0x198] sm:$0xff]  ;;  %p5372_p13 = pneg %p5371_p12 }
  0x20   : > { %4352 = vmatprep.subr.bf16.mxu0 %v5713_v57  ;;  %v5845_v23 = vpack.c.bf16 %v3670_v21, %v3668_v20  ;;  %v3667_v24 = vld [vmem:[%s7548_s1 + $0x180] sm:$0xff]  ;;  %v3669_v25 = vld [vmem:[%s7548_s1 + $0x190] sm:$0xff]  ;;  %v3672_v28 = vld [vmem:[%s7548_s1 + $0x1a8] sm:$0xff] }
  0x21   : > { %v3674_v29 = vld [vmem:[%s7548_s1 + $0x1b8] sm:$0xff]  ;;  %v5862_v30 = vpack.c.bf16 %v3669_v25, %v3667_v24  ;;  %v3671_v33 = vld [vmem:[%s7548_s1 + $0x1a0] sm:$0xff]  ;;  %v3673_v34 = vld [vmem:[%s7548_s1 + $0x1b0] sm:$0xff]  ;;  %p5379_p3 = pnand %p5378_p2, %p5372_p13 }
  0x22   : > { %4330 = vmatpush1.bf16.msra.mxu1 %v5734_v63  ;;  %v5865_v32 = vpack.c.bf16 %v3674_v29, %v3672_v28  ;;  %v3678_v36 = vld [vmem:[%s7548_s1 + $0x1d8] sm:$0xff]  ;;  %v5886_v37 = vpack.c.bf16 %v3673_v34, %v3671_v33  ;;  %v3675_v41 = vld [vmem:[%s7548_s1 + $0x1c0] sm:$0xff]  ;;  %v3677_v42 = vld [vmem:[%s7548_s1 + $0x1d0] sm:$0xff] }
  0x23   : > { %4354 = vmatpush1.bf16.msra.mxu0 %v5738_v0  ;;  %4332 = vmatprep.subr.bf16.mxu1 %v5740_v1  ;;  %v5908_v43 = vpack.c.bf16 %v3677_v42, %v3675_v41  ;;  %v3679_v46 = vld [vmem:[%s7548_s1 + $0x1e0] sm:$0xff]  ;;  %v3681_v47 = vld [vmem:[%s7548_s1 + $0x1f0] sm:$0xff]  ;;  %v3704_v62 = vld [vmem:[%s7548_s1 + $0x288] sm:$0xff] }
  0x24   : > { %4356 = vmatprep.subr.bf16.mxu0 %v5749_v5  ;;  %v5928_v48 = vpack.c.bf16 %v3681_v47, %v3679_v46  ;;  %v3683_v50 = vld [vmem:[%s7548_s1 + $0x200] sm:$0xff]  ;;  %v3685_v54 = vld [vmem:[%s7548_s1 + $0x210] sm:$0xff]  ;;  %v3710_v6 = vld [vmem:[%s7548_s1 + $0x2b8] sm:$0xff] }
  0x25   : > { %v5948_v55 = vpack.c.bf16 %v3685_v54, %v3683_v50  ;;  %v3687_v58 = vld [vmem:[%s7548_s1 + $0x220] sm:$0xff]  ;;  %v3689_v59 = vld [vmem:[%s7548_s1 + $0x230] sm:$0xff]  ;;  %v3716_v28 = vld [vmem:[%s7548_s1 + $0x2e8] sm:$0xff] }
  0x26   : > { %4334 = vmatpush1.bf16.msra.mxu1 %v5758_v11  ;;  %v3699_v60 = vld [vmem:[%s7548_s1 + $0x260] sm:$0xff]  ;;  %v3701_v61 = vld [vmem:[%s7548_s1 + $0x270] sm:$0xff]  ;;  %v3718_v29 = vld [vmem:[%s7548_s1 + $0x2f8] sm:$0xff] }
  0x27   : > { %4358 = vmatpush1.bf16.msra.mxu0 %v5762_v12  ;;  %4360 = vmatprep.subr.bf16.mxu1 %v5554_v3  ;;  %v3703_v2 = vld [vmem:[%s7548_s1 + $0x280] sm:$0xff]  ;;  %v3705_v4 = vld [vmem:[%s7548_s1 + $0x290] sm:$0xff]  ;;  %v6110_v34 = vpack.c.bf16 %v3718_v29, %v3716_v28  ;;  %v3730_v42 = vld [vmem:[%s7548_s1 + $0x338] sm:$0xff] }
  0x28   : > { %4408 = vmatprep.subr.bf16.mxu0 %v5554_v3  ;;  %v6067_v10 = vpack.c.bf16 %v3705_v4, %v3703_v2  ;;  %v3711_v24 = vld [vmem:[%s7548_s1 + $0x2c0] sm:$0xff]  ;;  %v3713_v25 = vld [vmem:[%s7548_s1 + $0x2d0] sm:$0xff]  ;;  %v3732_v47 = vld [vmem:[%s7548_s1 + $0x348] sm:$0xff] }
  0x29   : > { %3659 = vmatmul.mubr.msk.f32.vlgmr.msra.gmra.mrb[0].mxu1 %vm439_vm0, %v5772_v14  ;;  %v6107_v33 = vpack.c.bf16 %v3713_v25, %v3711_v24  ;;  %v3729_v46 = vld [vmem:[%s7548_s1 + $0x330] sm:$0xff]  ;;  %v3736_v54 = vld [vmem:[%s7548_s1 + $0x368] sm:$0xff]  ;;  %v3751_v4 = vld [vmem:[%s7550_s3 + $0x100] sm:$0xff] }
  0x2a   : > { %3660 = vmatmul.mubr.msk.f32.vlgmr.msra.gmra.mrb[0].mxu0 %vm439_vm0, %v410_v15  ;;  %4362 = vmatpush1.bf16.msra.mxu1 %v5569_v9  ;;  %v3712_v15 = vld [vmem:[%s7548_s1 + $0x2c8] sm:$0xff]  ;;  %v3733_v50 = vld [vmem:[%s7548_s1 + $0x350] sm:$0xff]  ;;  %v3759_v28 = vld [vmem:[%s7550_s3 + $0x140] sm:$0xff] }
  0x2b   : > { %4410 = vmatpush1.bf16.msra.mxu0 %v5569_v9  ;;  %4364 = vmatprep.subr.bf16.mxu1 %v5594_v17  ;;  %v3761_v29 = vld [vmem:[%s7550_s3 + $0x150] sm:$0xff] }
  0x2c   : > { %4412 = vmatprep.subr.bf16.mxu0 %v5594_v17  ;;  %655 = vmatprep.mubr.f32.mxu1 %v5433_v7 }
  0x2d   : > { %800 = vmatprep.mubr.f32.mxu0 %v5433_v7 }
  0x2e   : > { %4366 = vmatpush1.bf16.msra.mxu1 %v5608_v22 }
  0x2f   : > { %4414 = vmatpush1.bf16.msra.mxu0 %v5608_v22  ;;  %4368 = vmatprep.subr.bf16.mxu1 %v5623_v27 }
  0x30   : > { %4416 = vmatprep.subr.bf16.mxu0 %v5623_v27 }
  0x32   : > { %4370 = vmatpush1.bf16.msra.mxu1 %v5646_v35 }
  0x33   : > { %4418 = vmatpush1.bf16.msra.mxu0 %v5646_v35  ;;  %4372 = vmatprep.subr.bf16.mxu1 %v5661_v40 }
  0x34   : > { %4420 = vmatprep.subr.bf16.mxu0 %v5661_v40 }
  0x36   : > { %4374 = vmatpush1.bf16.msra.mxu1 %v5695_v51 }
  0x37   : > { %4422 = vmatpush1.bf16.msra.mxu0 %v5695_v51  ;;  %4376 = vmatprep.subr.bf16.mxu1 %v5701_v53 }
  0x38   : > { %4424 = vmatprep.subr.bf16.mxu0 %v5701_v53 }
  0x3a   : > { %4378 = vmatpush1.bf16.msra.mxu1 %v5734_v63 }
  0x3b   : > { %4426 = vmatpush1.bf16.msra.mxu0 %v5734_v63  ;;  %4380 = vmatprep.subr.bf16.mxu1 %v5740_v1 }
  0x3c   : > { %4428 = vmatprep.subr.bf16.mxu0 %v5740_v1 }
  0x3e   : > { %4382 = vmatpush1.bf16.msra.mxu1 %v5758_v11 }
  0x3f   : > { %4430 = vmatpush1.bf16.msra.mxu0 %v5758_v11  ;;  %4384 = vmatprep.subr.bf16.mxu1 %v5567_v8 }
  0x40   : > { %4432 = vmatprep.subr.bf16.mxu0 %v5567_v8 }
  0x41   : > { %3661 = vmatmul.mubr.msk.f32.vlgmr.msra.gmra.mrb[2].mxu1 %vm439_vm0, %v5805_v16 }
  0x42   : > { %4386 = vmatpush1.bf16.msra.mxu1 %v5581_v13  ;;  %3663 = vmatmul.mubr.msk.f32.vlgmr.msra.gmra.mrb[2].mxu0 %vm439_vm0, %v5810_v19 }
  0x43   : > { %4434 = vmatpush1.bf16.msra.mxu0 %v5581_v13  ;;  %4388 = vmatprep.subr.bf16.mxu1 %v5596_v18 }
  0x44   : > { %4436 = vmatprep.subr.bf16.mxu0 %v5596_v18  ;;  %726 = vmatprep.mubr.f32.mxu1 %v5433_v7 }
  0x45   : > { %871 = vmatprep.mubr.f32.mxu0 %v5433_v7 }
  0x46   : > { %4390 = vmatpush1.bf16.msra.mxu1 %v5621_v26 }
  0x47   : > { %4438 = vmatpush1.bf16.msra.mxu0 %v5621_v26  ;;  %4392 = vmatprep.subr.bf16.mxu1 %v5634_v31 }
  0x48   : > { %4440 = vmatprep.subr.bf16.mxu0 %v5634_v31 }
  0x4a   : > { %4394 = vmatpush1.bf16.msra.mxu1 %v5659_v39 }
  0x4b   : > { %4442 = vmatpush1.bf16.msra.mxu0 %v5659_v39  ;;  %4396 = vmatprep.subr.bf16.mxu1 %v5673_v44 }
  0x4c   : > { %4444 = vmatprep.subr.bf16.mxu0 %v5673_v44 }
  0x4e   : > { %4398 = vmatpush1.bf16.msra.mxu1 %v5699_v52 }
  0x4f   : > { %4446 = vmatpush1.bf16.msra.mxu0 %v5699_v52  ;;  %4400 = vmatprep.subr.bf16.mxu1 %v5713_v57 }
  0x50   : > { %4448 = vmatprep.subr.bf16.mxu0 %v5713_v57 }
  0x52   : > { %4402 = vmatpush1.bf16.msra.mxu1 %v5738_v0 }
  0x53   : > { %4450 = vmatpush1.bf16.msra.mxu0 %v5738_v0  ;;  %4404 = vmatprep.subr.bf16.mxu1 %v5749_v5 }
  0x54   : > { %4452 = vmatprep.subr.bf16.mxu0 %v5749_v5 }
  0x56   : > { %4406 = vmatpush1.bf16.msra.mxu1 %v5762_v12 }
  0x57   : > { %4454 = vmatpush1.bf16.msra.mxu0 %v5762_v12  ;;  %4456 = vmatprep.subr.bf16.mxu1 %v5554_v3  ;;  %v3676_v3 = vld [vmem:[%s7548_s1 + $0x1c8] sm:$0xff] }
  0x58   : > { %4504 = vmatprep.subr.bf16.mxu0 %v5845_v23  ;;  %v5889_v38 = vpack.c.bf16 %v3678_v36, %v3676_v3  ;;  %v3715_v3 = vld [vmem:[%s7548_s1 + $0x2e0] sm:$0xff]  ;;  %v3717_v36 = vld [vmem:[%s7548_s1 + $0x2f0] sm:$0xff] }
  0x59   : > { %3662 = vmatmul.mubr.msk.f32.vlgmr.msra.gmra.mrb[2].mxu1 %vm439_vm0, %v5772_v14  ;;  %v3709_v14 = vld [vmem:[%s7548_s1 + $0x2b0] sm:$0xff]  ;;  %v6121_v41 = vpack.c.bf16 %v3717_v36, %v3715_v3  ;;  %v4801_v3 = vpack.c.bf16 %v3761_v29, %v3759_v28  ;;  %v2027_v29 = vld [vmem:[%s7550_s3 + $0x28] sm:$0xff] }
  0x5a   : > { %3664 = vmatmul.mubr.msk.f32.vlgmr.msra.gmra.mrb[2].mxu0 %vm439_vm0, %v5805_v16  ;;  %4458 = vmatpush1.bf16.msra.mxu1 %v5569_v9  ;;  %v3680_v9 = vld [vmem:[%s7548_s1 + $0x1e8] sm:$0xff]  ;;  %v2024_v28 = vld [vmem:[%s7550_s3 + $0x10] sm:$0xff] }
  0x5b   : > { %4506 = vmatpush1.bf16.msra.mxu0 %v5862_v30  ;;  %4460 = vmatprep.subr.bf16.mxu1 %v5594_v17  ;;  %v3682_v17 = vld [vmem:[%s7548_s1 + $0x1f8] sm:$0xff] }
  0x5c   : > { %4508 = vmatprep.subr.bf16.mxu0 %v5865_v32  ;;  %946 = vmatprep.mubr.f32.mxu1 %v5433_v7  ;;  %v5911_v45 = vpack.c.bf16 %v3682_v17, %v3680_v9  ;;  %v6176_v9 = vld [vmem:[%s5767_s22 + $0x9] sm:$0x7f] }
  0x5d   : > { %1113 = vmatprep.mubr.f32.mxu0 %v5433_v7 }
  0x5e   : > { %4462 = vmatpush1.bf16.msra.mxu1 %v5608_v22  ;;  %v3684_v22 = vld [vmem:[%s7548_s1 + $0x208] sm:$0xff] }
  0x5f   : > { %4510 = vmatpush1.bf16.msra.mxu0 %v5886_v37  ;;  %4464 = vmatprep.subr.bf16.mxu1 %v5623_v27  ;;  %v3686_v27 = vld [vmem:[%s7548_s1 + $0x218] sm:$0xff] }
  0x60   : > { %4512 = vmatprep.subr.bf16.mxu0 %v5889_v38  ;;  %v5931_v49 = vpack.c.bf16 %v3686_v27, %v3684_v22  ;;  %v3734_v22 = vld [vmem:[%s7548_s1 + $0x358] sm:$0xff] }
  0x62   : > { %4466 = vmatpush1.bf16.msra.mxu1 %v5646_v35  ;;  %v3688_v35 = vld [vmem:[%s7548_s1 + $0x228] sm:$0xff] }
  0x63   : > { %4514 = vmatpush1.bf16.msra.mxu0 %v5908_v43  ;;  %4468 = vmatprep.subr.bf16.mxu1 %v5661_v40  ;;  %v3690_v40 = vld [vmem:[%s7548_s1 + $0x238] sm:$0xff] }
  0x64   : > { %4516 = vmatprep.subr.bf16.mxu0 %v5911_v45  ;;  %v5951_v56 = vpack.c.bf16 %v3690_v40, %v3688_v35  ;;  %v3738_v35 = vld [vmem:[%s7548_s1 + $0x378] sm:$0xff] }
  0x66   : > { %4470 = vmatpush1.bf16.msra.mxu1 %v5695_v51  ;;  %v5962_v51 = vpack.c.bf16 %v3689_v59, %v3687_v58  ;;  %v3737_v58 = vld [vmem:[%s7548_s1 + $0x370] sm:$0xff]  ;;  %v3740_v59 = vld [vmem:[%s7548_s1 + $0x388] sm:$0xff] }
  0x67   : > { %4518 = vmatpush1.bf16.msra.mxu0 %v5928_v48  ;;  %4472 = vmatprep.subr.bf16.mxu1 %v5701_v53  ;;  %v5967_v53 = vld [vmem:[%s5767_s22 + $0x1] sm:$0x7f] }
  0x68   : > { %4520 = vmatprep.subr.bf16.mxu0 %v5931_v49 }
  0x6a   : > { %4474 = vmatpush1.bf16.msra.mxu1 %v5734_v63  ;;  %v3706_v63 = vld [vmem:[%s7548_s1 + $0x298] sm:$0xff] }
  0x6b   : > { %4522 = vmatpush1.bf16.msra.mxu0 %v5948_v55  ;;  %4476 = vmatprep.subr.bf16.mxu1 %v5740_v1  ;;  %v6048_v1 = vpack.c.bf16 %v3706_v63, %v3704_v62  ;;  %v3743_v62 = vld [vmem:[%s7548_s1 + $0x3a0] sm:$0xff]  ;;  %v3745_v63 = vld [vmem:[%s7548_s1 + $0x3b0] sm:$0xff] }
  0x6c   : > { %4524 = vmatprep.subr.bf16.mxu0 %v5951_v56  ;;  %v6280_v2 = vpack.c.bf16 %v3745_v63, %v3743_v62  ;;  %v1988_v63 = vlaneseq }
  0x6e   : > { %4478 = vmatpush1.bf16.msra.mxu1 %v5758_v11 }
  0x6f   : > { %4526 = vmatpush1.bf16.msra.mxu0 %v5962_v51  ;;  %4480 = vmatprep.subr.bf16.mxu1 %v5567_v8  ;;  %v3696_v8 = vld [vmem:[%s7548_s1 + $0x248] sm:$0xff] }
  0x70   : > { %4552 = vmatprep.subr.bf16.mxu0 %v5845_v23 }
  0x71   : > { %3665 = vmatmul.mubr.msk.f32.vlgmr.msra.gmra.mrb[4].mxu1 %vm439_vm0, %v5967_v53 }
  0x72   : > { %4482 = vmatpush1.bf16.msra.mxu1 %v5581_v13  ;;  %3691 = vmatmul.mubr.msk.f32.vlgmr.msra.gmra.mrb[0].mxu0 %vm439_vm0, %v5805_v16  ;;  %v3698_v13 = vld [vmem:[%s7548_s1 + $0x258] sm:$0xff] }
  0x73   : > { %4554 = vmatpush1.bf16.msra.mxu0 %v5862_v30  ;;  %4484 = vmatprep.subr.bf16.mxu1 %v5596_v18  ;;  %v6004_v18 = vpack.c.bf16 %v3698_v13, %v3696_v8  ;;  %v3714_v16 = vld [vmem:[%s7548_s1 + $0x2d8] sm:$0xff] }
  0x74   : > { %4556 = vmatprep.subr.bf16.mxu0 %v5865_v32  ;;  %1017 = vmatprep.mubr.f32.mxu1 %v5433_v7  ;;  %v6090_v21 = vpack.c.bf16 %v3714_v16, %v3712_v15  ;;  %v3755_v15 = vld [vmem:[%s7550_s3 + $0x120] sm:$0xff]  ;;  %v3757_v16 = vld [vmem:[%s7550_s3 + $0x130] sm:$0xff] }
  0x75   : > { %1259 = vmatprep.mubr.f32.mxu0 %v5433_v7  ;;  %v4797_v24 = vpack.c.bf16 %v3757_v16, %v3755_v15 }
  0x76   : > { %4486 = vmatpush1.bf16.msra.mxu1 %v5621_v26  ;;  %v3695_v26 = vld [vmem:[%s7548_s1 + $0x240] sm:$0xff] }
  0x77   : > { %4558 = vmatpush1.bf16.msra.mxu0 %v5886_v37  ;;  %4488 = vmatprep.subr.bf16.mxu1 %v5634_v31  ;;  %v3697_v31 = vld [vmem:[%s7548_s1 + $0x250] sm:$0xff] }
  0x78   : > { %4560 = vmatprep.subr.bf16.mxu0 %v5889_v38 }
  0x7a   : > { %4490 = vmatpush1.bf16.msra.mxu1 %v5659_v39  ;;  %v3700_v39 = vld [vmem:[%s7548_s1 + $0x268] sm:$0xff] }
  0x7b   : > { %4562 = vmatpush1.bf16.msra.mxu0 %v5908_v43  ;;  %4492 = vmatprep.subr.bf16.mxu1 %v5673_v44  ;;  %v3702_v44 = vld [vmem:[%s7548_s1 + $0x278] sm:$0xff] }
  0x7c   : > { %4564 = vmatprep.subr.bf16.mxu0 %v5911_v45 }
  0x7e   : > { %4494 = vmatpush1.bf16.msra.mxu1 %v5699_v52  ;;  %v6021_v52 = vpack.c.bf16 %v3697_v31, %v3695_v26  ;;  %v3739_v26 = vld [vmem:[%s7548_s1 + $0x380] sm:$0xff]  ;;  %v3741_v31 = vld [vmem:[%s7548_s1 + $0x390] sm:$0xff] }
  0x7f   : > { %4566 = vmatpush1.bf16.msra.mxu0 %v5928_v48  ;;  %4496 = vmatprep.subr.bf16.mxu1 %v5713_v57  ;;  %v6024_v57 = vpack.c.bf16 %v3702_v44, %v3700_v39  ;;  %v3744_v39 = vld [vmem:[%s7548_s1 + $0x3a8] sm:$0xff]  ;;  %v3746_v44 = vld [vmem:[%s7548_s1 + $0x3b8] sm:$0xff] }
  0x80   : > { %4568 = vmatprep.subr.bf16.mxu0 %v5931_v49 }
  0x82   : > { %4498 = vmatpush1.bf16.msra.mxu1 %v5738_v0  ;;  %v6045_v0 = vpack.c.bf16 %v3701_v61, %v3699_v60  ;;  %v6266_v60 = vpack.c.bf16 %v3741_v31, %v3739_v26  ;;  %v6269_v61 = vpack.c.bf16 %v3746_v44, %v3744_v39 }
  0x83   : > { %4570 = vmatpush1.bf16.msra.mxu0 %v5948_v55  ;;  %4500 = vmatprep.subr.bf16.mxu1 %v5749_v5  ;;  %v3708_v5 = vld [vmem:[%s7548_s1 + $0x2a8] sm:$0xff] }
  0x84   : > { %4572 = vmatprep.subr.bf16.mxu0 %v5951_v56  ;;  %v6070_v11 = vpack.c.bf16 %v3710_v6, %v3708_v5  ;;  %v3753_v6 = vld [vmem:[%s7550_s3 + $0x110] sm:$0xff] }
  0x86   : > { %4502 = vmatpush1.bf16.msra.mxu1 %v5762_v12  ;;  %v3707_v12 = vld [vmem:[%s7548_s1 + $0x2a0] sm:$0xff] }
  0x87   : > { %4574 = vmatpush1.bf16.msra.mxu0 %v5962_v51  ;;  %4528 = vmatprep.subr.bf16.mxu1 %v5845_v23  ;;  %v6087_v20 = vpack.c.bf16 %v3709_v14, %v3707_v12  ;;  %v4793_v12 = vpack.c.bf16 %v3753_v6, %v3751_v4 }
  0x88   : > { %4600 = vmatprep.subr.bf16.mxu0 %v6004_v18 }
  0x89   : > { %3666 = vmatmul.mubr.msk.f32.vlgmr.msra.gmra.mrb[4].mxu1 %vm439_vm0, %v5810_v19 }
  0x8a   : > { %4530 = vmatpush1.bf16.msra.mxu1 %v5862_v30  ;;  %3693 = vmatmul.mubr.msk.f32.vlgmr.msra.gmra.mrb[2].mxu0 %vm439_vm0, %v5967_v53 }
  0x8b   : > { %4602 = vmatpush1.bf16.msra.mxu0 %v6021_v52  ;;  %4532 = vmatprep.subr.bf16.mxu1 %v5865_v32 }
  0x8c   : > { %4604 = vmatprep.subr.bf16.mxu0 %v6024_v57  ;;  %1186 = vmatprep.mubr.f32.mxu1 %v5433_v7 }
  0x8d   : > { %1434 = vmatprep.mubr.f32.mxu0 %v5433_v7 }
  0x8e   : > { %4534 = vmatpush1.bf16.msra.mxu1 %v5886_v37 }
  0x8f   : > { %4606 = vmatpush1.bf16.msra.mxu0 %v6045_v0  ;;  %4536 = vmatprep.subr.bf16.mxu1 %v5889_v38 }
  0x90   : > { %4608 = vmatprep.subr.bf16.mxu0 %v6048_v1 }
  0x92   : > { %4538 = vmatpush1.bf16.msra.mxu1 %v5908_v43 }
  0x93   : > { %4610 = vmatpush1.bf16.msra.mxu0 %v6067_v10  ;;  %4540 = vmatprep.subr.bf16.mxu1 %v5911_v45 }
  0x94   : > { %4612 = vmatprep.subr.bf16.mxu0 %v6070_v11 }
  0x96   : > { %4542 = vmatpush1.bf16.msra.mxu1 %v5928_v48 }
  0x97   : > { %4614 = vmatpush1.bf16.msra.mxu0 %v6087_v20  ;;  %4544 = vmatprep.subr.bf16.mxu1 %v5931_v49 }
  0x98   : > { %4616 = vmatprep.subr.bf16.mxu0 %v6090_v21 }
  0x9a   : > { %4546 = vmatpush1.bf16.msra.mxu1 %v5948_v55 }
  0x9b   : > { %4618 = vmatpush1.bf16.msra.mxu0 %v6107_v33  ;;  %4548 = vmatprep.subr.bf16.mxu1 %v5951_v56 }
  0x9c   : > { %4620 = vmatprep.subr.bf16.mxu0 %v6110_v34 }
  0x9e   : > { %4550 = vmatpush1.bf16.msra.mxu1 %v5962_v51 }
  0x9f   : > { %4622 = vmatpush1.bf16.msra.mxu0 %v6121_v41  ;;  %4576 = vmatprep.subr.bf16.mxu1 %v5845_v23  ;;  %v3726_v23 = vld [vmem:[%s7548_s1 + $0x318] sm:$0xff] }
  0xa0   : > { %4648 = vmatprep.subr.bf16.mxu0 %v6004_v18 }
  0xa1   : > { %3692 = vmatmul.mubr.msk.f32.vlgmr.msra.gmra.mrb[2].mxu1 %vm439_vm0, %v5810_v19 }
  0xa2   : > { %4578 = vmatpush1.bf16.msra.mxu1 %v5862_v30  ;;  %3719 = vmatmul.mubr.msk.f32.vlgmr.msra.gmra.mrb[0].mxu0 %vm439_vm0, %v5810_v19  ;;  %v3724_v19 = vld [vmem:[%s7548_s1 + $0x308] sm:$0xff] }
  0xa3   : > { %4650 = vmatpush1.bf16.msra.mxu0 %v6021_v52  ;;  %4580 = vmatprep.subr.bf16.mxu1 %v5865_v32  ;;  %v6160_v30 = vpack.c.bf16 %v3726_v23, %v3724_v19  ;;  %v3723_v32 = vld [vmem:[%s7548_s1 + $0x300] sm:$0xff]  ;;  %v3765_v19 = vld [vmem:[%s7550_s3 + $0x170] sm:$0xff] }
  0xa4   : > { %4652 = vmatprep.subr.bf16.mxu0 %v6024_v57  ;;  %1336 = vmatprep.mubr.f32.mxu1 %v5433_v7 }
  0xa5   : > { %1580 = vmatprep.mubr.f32.mxu0 %v5433_v7 }
  0xa6   : > { %4582 = vmatpush1.bf16.msra.mxu1 %v5886_v37  ;;  %v3725_v37 = vld [vmem:[%s7548_s1 + $0x310] sm:$0xff] }
  0xa7   : > { %4654 = vmatpush1.bf16.msra.mxu0 %v6045_v0  ;;  %4584 = vmatprep.subr.bf16.mxu1 %v5889_v38  ;;  %v3728_v38 = vld [vmem:[%s7548_s1 + $0x328] sm:$0xff]  ;;  %v6180_v17 = vpack.c.bf16 %v3725_v37, %v3723_v32  ;;  %v3770_v32 = vld [vmem:[%s7550_s3 + $0x198] sm:$0xff] }
  0xa8   : > { %4656 = vmatprep.subr.bf16.mxu0 %v6048_v1 }
  0xaa   : > { %4586 = vmatpush1.bf16.msra.mxu1 %v5908_v43  ;;  %v6183_v43 = vpack.c.bf16 %v3730_v42, %v3728_v38  ;;  %v3767_v38 = vld [vmem:[%s7550_s3 + $0x180] sm:$0xff]  ;;  %v3769_v42 = vld [vmem:[%s7550_s3 + $0x190] sm:$0xff] }
  0xab   : > { %4658 = vmatpush1.bf16.msra.mxu0 %v6067_v10  ;;  %4588 = vmatprep.subr.bf16.mxu1 %v5911_v45  ;;  %v3727_v45 = vld [vmem:[%s7548_s1 + $0x320] sm:$0xff] }
  0xac   : > { %4660 = vmatprep.subr.bf16.mxu0 %v6070_v11  ;;  %v6204_v27 = vpack.c.bf16 %v3729_v46, %v3727_v45  ;;  %v3771_v46 = vld [vmem:[%s7550_s3 + $0x1a0] sm:$0xff] }
  0xae   : > { %4590 = vmatpush1.bf16.msra.mxu1 %v5928_v48  ;;  %v6207_v48 = vpack.c.bf16 %v3734_v22, %v3732_v47  ;;  %v3773_v47 = vld [vmem:[%s7550_s3 + $0x1b0] sm:$0xff] }
  0xaf   : > { %4662 = vmatpush1.bf16.msra.mxu0 %v6087_v20  ;;  %4592 = vmatprep.subr.bf16.mxu1 %v5931_v49  ;;  %v3731_v49 = vld [vmem:[%s7548_s1 + $0x340] sm:$0xff]  ;;  %v4813_v22 = vpack.c.bf16 %v3773_v47, %v3771_v46 }
  0xb0   : > { %4664 = vmatprep.subr.bf16.mxu0 %v6090_v21  ;;  %v6226_v40 = vpack.c.bf16 %v3733_v50, %v3731_v49  ;;  %v3775_v50 = vld [vmem:[%s7550_s3 + $0x1c0] sm:$0xff] }
  0xb2   : > { %4594 = vmatpush1.bf16.msra.mxu1 %v5948_v55  ;;  %v6229_v55 = vpack.c.bf16 %v3738_v35, %v3736_v54  ;;  %v3777_v54 = vld [vmem:[%s7550_s3 + $0x1d0] sm:$0xff] }
  0xb3   : > { %4666 = vmatpush1.bf16.msra.mxu0 %v6107_v33  ;;  %4596 = vmatprep.subr.bf16.mxu1 %v5951_v56  ;;  %v3735_v56 = vld [vmem:[%s7548_s1 + $0x360] sm:$0xff]  ;;  %v4817_v35 = vpack.c.bf16 %v3777_v54, %v3775_v50  ;;  %v2039_v54 = vld [vmem:[%s7550_s3 + $0x88] sm:$0xff] }
  0xb4   : > { %4668 = vmatprep.subr.bf16.mxu0 %v6110_v34  ;;  %v6246_v8 = vpack.c.bf16 %v3737_v58, %v3735_v56  ;;  %v3779_v56 = vld [vmem:[%s7550_s3 + $0x1e0] sm:$0xff] }
  0xb6   : > { %4598 = vmatpush1.bf16.msra.mxu1 %v5962_v51  ;;  %v3742_v51 = vld [vmem:[%s7548_s1 + $0x398] sm:$0xff] }
  0xb7   : > { %4670 = vmatpush1.bf16.msra.mxu0 %v6121_v41  ;;  %4624 = vmatprep.subr.bf16.mxu1 %v6004_v18  ;;  %v6249_v13 = vpack.c.bf16 %v3742_v51, %v3740_v59  ;;  %v3781_v59 = vld [vmem:[%s7550_s3 + $0x1f0] sm:$0xff]  ;;  %v2023_v51 = vld [vmem:[%s7550_s3 + $0x8] sm:$0xff] }
  0xb8   : > { %4696 = vmatprep.subr.bf16.mxu0 %v6160_v30 }
  0xb9   : > { %3694 = vmatmul.mubr.msk.f32.vlgmr.msra.gmra.mrb[4].mxu1 %vm439_vm0, %v6176_v9 }
  0xba   : > { %4626 = vmatpush1.bf16.msra.mxu1 %v6021_v52  ;;  %3721 = vmatmul.mubr.msk.f32.vlgmr.msra.gmra.mrb[2].mxu0 %vm439_vm0, %v6176_v9 }
  0xbb   : > { %4698 = vmatpush1.bf16.msra.mxu0 %v6180_v17  ;;  %4628 = vmatprep.subr.bf16.mxu1 %v6024_v57 }
  0xbc   : > { %4700 = vmatprep.subr.bf16.mxu0 %v6183_v43  ;;  %1755 = vmatprep.mubr.f32.mxu0 %v5433_v7 }
  0xbd   : > { %1507 = vmatprep.mubr.f32.mxu1 %v5433_v7 }
  0xbe   : > { %4630 = vmatpush1.bf16.msra.mxu1 %v6045_v0 }
  0xbf   : > { %4702 = vmatpush1.bf16.msra.mxu0 %v6204_v27  ;;  %4632 = vmatprep.subr.bf16.mxu1 %v6048_v1 }
  0xc0   : > { %4704 = vmatprep.subr.bf16.mxu0 %v6207_v48 }
  0xc2   : > { %4634 = vmatpush1.bf16.msra.mxu1 %v6067_v10 }
  0xc3   : > { %4706 = vmatpush1.bf16.msra.mxu0 %v6226_v40  ;;  %4636 = vmatprep.subr.bf16.mxu1 %v6070_v11 }
  0xc4   : > { %4708 = vmatprep.subr.bf16.mxu0 %v6229_v55 }
  0xc6   : > { %4638 = vmatpush1.bf16.msra.mxu1 %v6087_v20 }
  0xc7   : > { %4710 = vmatpush1.bf16.msra.mxu0 %v6246_v8  ;;  %4640 = vmatprep.subr.bf16.mxu1 %v6090_v21 }
  0xc8   : > { %4712 = vmatprep.subr.bf16.mxu0 %v6249_v13 }
  0xca   : > { %4642 = vmatpush1.bf16.msra.mxu1 %v6107_v33 }
  0xcb   : > { %4714 = vmatpush1.bf16.msra.mxu0 %v6266_v60  ;;  %4644 = vmatprep.subr.bf16.mxu1 %v6110_v34 }
  0xcc   : > { %4716 = vmatprep.subr.bf16.mxu0 %v6269_v61 }
  0xce   : > { %4646 = vmatpush1.bf16.msra.mxu1 %v6121_v41 }
  0xcf   : > { %4718 = vmatpush1.bf16.msra.mxu0 %v6280_v2  ;;  %4672 = vmatprep.subr.bf16.mxu1 %v6004_v18 }
  0xd0   : > { %4744 = vmatprep.subr.bf16.mxu0 %v6160_v30 }
  0xd1   : > { %3720 = vmatmul.mubr.msk.f32.vlgmr.msra.gmra.mrb[2].mxu1 %vm439_vm0, %v5967_v53 }
  0xd2   : > { %3747 = vmatmul.mubr.msk.f32.vlgmr.msra.gmra.mrb[0].mxu0 %vm439_vm0, %v5967_v53  ;;  %4674 = vmatpush1.bf16.msra.mxu1 %v6021_v52  ;;  %v1589_v53 = vld [vmem:[%s5767_s22 + $0x11] sm:$0x7f] }
  0xd3   : > { %4746 = vmatpush1.bf16.msra.mxu0 %v6180_v17  ;;  %4676 = vmatprep.subr.bf16.mxu1 %v6024_v57  ;;  %v1910_v57 = vld [vmem:[%s5767_s22 + $0x19] sm:$0x7f] }
  0xd4   : > { %4748 = vmatprep.subr.bf16.mxu0 %v6183_v43  ;;  %1901 = vmatprep.mubr.f32.mxu0 %v5433_v7 }
  0xd5   : > { %1657 = vmatprep.mubr.f32.mxu1 %v5433_v7 }
  0xd6   : > { %4678 = vmatpush1.bf16.msra.mxu1 %v6045_v0  ;;  %v3752_v0 = vld [vmem:[%s7550_s3 + $0x108] sm:$0xff] }
  0xd7   : > { %4750 = vmatpush1.bf16.msra.mxu0 %v6204_v27  ;;  %4680 = vmatprep.subr.bf16.mxu1 %v6048_v1  ;;  %v3754_v1 = vld [vmem:[%s7550_s3 + $0x118] sm:$0xff] }
  0xd8   : > { %4752 = vmatprep.subr.bf16.mxu0 %v6207_v48  ;;  %v4791_v5 = vpack.c.bf16 %v3754_v1, %v3752_v0 }
  0xda   : > { %4682 = vmatpush1.bf16.msra.mxu1 %v6067_v10  ;;  %v3756_v10 = vld [vmem:[%s7550_s3 + $0x128] sm:$0xff] }
  0xdb   : > { %4754 = vmatpush1.bf16.msra.mxu0 %v6226_v40  ;;  %4684 = vmatprep.subr.bf16.mxu1 %v6070_v11  ;;  %v3758_v11 = vld [vmem:[%s7550_s3 + $0x138] sm:$0xff] }
  0xdc   : > { %4756 = vmatprep.subr.bf16.mxu0 %v6229_v55  ;;  %v4795_v14 = vpack.c.bf16 %v3758_v11, %v3756_v10 }
  0xde   : > { %4686 = vmatpush1.bf16.msra.mxu1 %v6087_v20  ;;  %v3760_v20 = vld [vmem:[%s7550_s3 + $0x148] sm:$0xff] }
  0xdf   : > { %4758 = vmatpush1.bf16.msra.mxu0 %v6246_v8  ;;  %4688 = vmatprep.subr.bf16.mxu1 %v6090_v21  ;;  %v3762_v21 = vld [vmem:[%s7550_s3 + $0x158] sm:$0xff] }
  0xe0   : > { %4760 = vmatprep.subr.bf16.mxu0 %v6249_v13  ;;  %v4799_v25 = vpack.c.bf16 %v3762_v21, %v3760_v20 }
  0xe2   : > { %4690 = vmatpush1.bf16.msra.mxu1 %v6107_v33  ;;  %v3764_v33 = vld [vmem:[%s7550_s3 + $0x168] sm:$0xff] }
  0xe3   : > { %4762 = vmatpush1.bf16.msra.mxu0 %v6266_v60  ;;  %4692 = vmatprep.subr.bf16.mxu1 %v6110_v34  ;;  %v3766_v34 = vld [vmem:[%s7550_s3 + $0x178] sm:$0xff] }
  0xe4   : > { %4764 = vmatprep.subr.bf16.mxu0 %v6269_v61  ;;  %v4803_v36 = vpack.c.bf16 %v3766_v34, %v3764_v33  ;;  %v2029_v33 = vld [vmem:[%s7550_s3 + $0x38] sm:$0xff] }
  0xe6   : > { %4694 = vmatpush1.bf16.msra.mxu1 %v6121_v41  ;;  %v3763_v41 = vld [vmem:[%s7550_s3 + $0x160] sm:$0xff] }
  0xe7   : > { %4766 = vmatpush1.bf16.msra.mxu0 %v6280_v2  ;;  %4720 = vmatprep.subr.bf16.mxu1 %v6160_v30  ;;  %v4805_v23 = vpack.c.bf16 %v3765_v19, %v3763_v41  ;;  %v2028_v41 = vld [vmem:[%s7550_s3 + $0x30] sm:$0xff] }
  0xe8   : > { %4792 = vmatprep.subr.bf16.mxu0 %v4791_v5 }
  0xe9   : > { %3722 = vmatmul.mubr.msk.f32.vlgmr.msra.gmra.mrb[4].mxu1 %vm439_vm0, %v1589_v53 }
  0xea   : > { %3749 = vmatmul.mubr.msk.f32.vlgmr.msra.gmra.mrb[2].mxu0 %vm439_vm0, %v1589_v53  ;;  %4722 = vmatpush1.bf16.msra.mxu1 %v6180_v17 }
  0xeb   : > { %4724 = vmatprep.subr.bf16.mxu1 %v6183_v43  ;;  %1828 = vmatprep.mubr.f32.mxu1 %v5433_v7 }
  0xec   : > { %2153 = vmatprep.mubr.f32.mxu0 %v5433_v7  ;;  %4794 = vmatpush1.bf16.msra.mxu0 %v4793_v12 }
  0xed   : > { %4796 = vmatprep.subr.bf16.mxu0 %v4795_v14 }
  0xee   : > { %4726 = vmatpush1.bf16.msra.mxu1 %v6204_v27 }
  0xef   : > { %4728 = vmatprep.subr.bf16.mxu1 %v6207_v48 }
  0xf0   : > { %4798 = vmatpush1.bf16.msra.mxu0 %v4797_v24 }
  0xf1   : > { %4800 = vmatprep.subr.bf16.mxu0 %v4799_v25 }
  0xf2   : > { %4730 = vmatpush1.bf16.msra.mxu1 %v6226_v40 }
  0xf3   : > { %4732 = vmatprep.subr.bf16.mxu1 %v6229_v55 }
  0xf4   : > { %4802 = vmatpush1.bf16.msra.mxu0 %v4801_v3 }
  0xf5   : > { %4804 = vmatprep.subr.bf16.mxu0 %v4803_v36 }
  0xf6   : > { %4734 = vmatpush1.bf16.msra.mxu1 %v6246_v8 }
  0xf7   : > { %4736 = vmatprep.subr.bf16.mxu1 %v6249_v13 }
  0xf8   : > { %4806 = vmatpush1.bf16.msra.mxu0 %v4805_v23 }
  0xfa   : > { %4738 = vmatpush1.bf16.msra.mxu1 %v6266_v60 }
  0xfb   : > { %4740 = vmatprep.subr.bf16.mxu1 %v6269_v61 }
  0xfc   : > { %v6331_v18 = vpop.f32.mrb[0].mxu1 }
  0xfd   : > { %v6333_v52 = vpop.f32.mrb[1].mxu1 }
  0xfe   : > { %4742 = vmatpush1.bf16.msra.mxu1 %v6280_v2 }
  0xff   : > { %4768 = vmatprep.subr.bf16.mxu1 %v6160_v30  ;;  %v3768_v30 = vld [vmem:[%s7550_s3 + $0x188] sm:$0xff] }
 0x100   : > { %v4807_v37 = vpack.c.bf16 %v3770_v32, %v3768_v30  ;;  %v2033_v30 = vld [vmem:[%s7550_s3 + $0x58] sm:$0xff] }
 0x101   : > { %3748 = vmatmul.mubr.msk.f32.vlgmr.msra.gmra.mrb[2].mxu1 %vm439_vm0, %v6176_v9  ;;  %v4809_v9 = vpack.c.bf16 %v3769_v42, %v3767_v38  ;;  %v2030_v38 = vld [vmem:[%s7550_s3 + $0x40] sm:$0xff]  ;;  %v2032_v42 = vld [vmem:[%s7550_s3 + $0x50] sm:$0xff] }
 0x102   : > { %4770 = vmatpush1.bf16.msra.mxu1 %v6180_v17  ;;  %1978 = vmatprep.mubr.f32.mxu1 %v5433_v7  ;;  %v3772_v17 = vld [vmem:[%s7550_s3 + $0x1a8] sm:$0xff] }
 0x103   : > { %4772 = vmatprep.subr.bf16.mxu1 %v6183_v43  ;;  %4808 = vmatprep.subr.bf16.mxu0 %v4807_v37  ;;  %v3774_v43 = vld [vmem:[%s7550_s3 + $0x1b8] sm:$0xff] }
 0x104   : > { %4810 = vmatpush1.bf16.msra.mxu0 %v4809_v9  ;;  %v4811_v45 = vpack.c.bf16 %v3774_v43, %v3772_v17  ;;  %v2037_v17 = vld [vmem:[%s7550_s3 + $0x78] sm:$0xff] }
 0x106   : > { %4774 = vmatpush1.bf16.msra.mxu1 %v6204_v27  ;;  %4812 = vmatprep.subr.bf16.mxu0 %v4811_v45  ;;  %v3776_v27 = vld [vmem:[%s7550_s3 + $0x1c8] sm:$0xff] }
 0x107   : > { %4776 = vmatprep.subr.bf16.mxu1 %v6207_v48  ;;  %v3778_v48 = vld [vmem:[%s7550_s3 + $0x1d8] sm:$0xff] }
 0x108   : > { %4814 = vmatpush1.bf16.msra.mxu0 %v4813_v22  ;;  %v4815_v49 = vpack.c.bf16 %v3778_v48, %v3776_v27  ;;  %v2034_v27 = vld [vmem:[%s7550_s3 + $0x60] sm:$0xff]  ;;  %v2036_v48 = vld [vmem:[%s7550_s3 + $0x70] sm:$0xff] }
 0x10a   : > { %4778 = vmatpush1.bf16.msra.mxu1 %v6226_v40  ;;  %v3780_v40 = vld [vmem:[%s7550_s3 + $0x1e8] sm:$0xff]  ;;  %4816 = vmatprep.subr.bf16.mxu0 %v4815_v49 }
 0x10b   : > { %4780 = vmatprep.subr.bf16.mxu1 %v6229_v55  ;;  %v3782_v55 = vld [vmem:[%s7550_s3 + $0x1f8] sm:$0xff] }
 0x10c   : > { %v4819_v58 = vpack.c.bf16 %v3782_v55, %v3780_v40  ;;  %4818 = vmatpush1.bf16.msra.mxu0 %v4817_v35 }
 0x10e   : > { %4782 = vmatpush1.bf16.msra.mxu1 %v6246_v8  ;;  %v2025_v8 = vld [vmem:[%s7550_s3 + $0x18] sm:$0xff]  ;;  %4820 = vmatprep.subr.bf16.mxu0 %v4819_v58 }
 0x10f   : > { %4784 = vmatprep.subr.bf16.mxu1 %v6249_v13  ;;  %v4821_v13 = vpack.c.bf16 %v3781_v59, %v3779_v56  ;;  %v4823_v26 = vpack.c.bf16 %v2025_v8, %v2023_v51 }
 0x111   : > { %4822 = vmatpush1.bf16.msra.mxu0 %v4821_v13 }
 0x112   : > { %4786 = vmatpush1.bf16.msra.mxu1 %v6266_v60  ;;  %4824 = vmatprep.subr.bf16.mxu0 %v4823_v26 }
 0x113   : > { %4788 = vmatprep.subr.bf16.mxu1 %v6269_v61 }
 0x116   : > { %4790 = vmatpush1.bf16.msra.mxu1 %v6280_v2  ;;  %v6458_v2 = vshrl.u32 %v1988_v63, 7 }
 0x117   : > { %4856 = vmatprep.subr.bf16.mxu1 %v4791_v5 }
 0x118   : > { %v1990_v53 = vsub.s32 0, %v6458_v2  ;;  %v1994_v0 = vsub.s32 1, %v6458_v2  ;;  %v3912_v2 = vld [vmem:[%s7552_s5 + $0x188] sm:$0xff] }
 0x119   : > { %3750 = vmatmul.mubr.msk.f32.vlgmr.msra.gmra.mrb[4].mxu1 %vm439_vm0, %v1910_v57  ;;  %v384_v57 = vld [vmem:[%s7549_s2] sm:$0x3] }
 0x11a   : > { %2296 = vmatprep.mubr.f32.mxu1 %v5433_v7  ;;  %4858 = vmatpush1.bf16.msra.mxu1 %v4793_v12  ;;  %v1991_v1 = vrot.slane %v384_v57, %v1990_v53 }
 0x11b   : > { %4860 = vmatprep.subr.bf16.mxu1 %v4795_v14 }
 0x11e   : > { %4862 = vmatpush1.bf16.msra.mxu1 %v4797_v24 }
 0x11f   : > { %4864 = vmatprep.subr.bf16.mxu1 %v4799_v25  ;;  %v2022_v25 = vld [vmem:[%s7550_s3] sm:$0xff] }
 0x120   : > { %v6481_v34 = vpack.c.bf16 %v2024_v28, %v2022_v25  ;;  %v3786_v25 = vld [vmem:[%s7550_s3 + $0x218] sm:$0xff] }
 0x122   : > { %4866 = vmatpush1.bf16.msra.mxu1 %v4801_v3  ;;  %v6483_v3 = vpack.c.bf16 %v2029_v33, %v2027_v29  ;;  %v3783_v33 = vld [vmem:[%s7550_s3 + $0x200] sm:$0xff] }
 0x123   : > { %4868 = vmatprep.subr.bf16.mxu1 %v4803_v36  ;;  %v2026_v36 = vld [vmem:[%s7550_s3 + $0x20] sm:$0xff] }
 0x124   : > { %v6501_v32 = vpack.c.bf16 %v2028_v41, %v2026_v36  ;;  %v3785_v36 = vld [vmem:[%s7550_s3 + $0x210] sm:$0xff] }
 0x125   : > { %v6632_v41 = vpack.c.bf16 %v3785_v36, %v3783_v33  ;;  %v3826_v33 = vld [vmem:[%s7550_s3 + $0x358] sm:$0xff] }
 0x126   : > { %4870 = vmatpush1.bf16.msra.mxu1 %v4805_v23  ;;  %v2031_v23 = vld [vmem:[%s7550_s3 + $0x48] sm:$0xff] }
 0x127   : > { %4872 = vmatprep.subr.bf16.mxu1 %v4807_v37  ;;  %v6505_v37 = vpack.c.bf16 %v2033_v30, %v2031_v23  ;;  %v3787_v30 = vld [vmem:[%s7550_s3 + $0x220] sm:$0xff] }
 0x12a   : > { %4874 = vmatpush1.bf16.msra.mxu1 %v4809_v9  ;;  %v2035_v9 = vld [vmem:[%s7550_s3 + $0x68] sm:$0xff] }
 0x12b   : > { %4876 = vmatprep.subr.bf16.mxu1 %v4811_v45  ;;  %v6520_v45 = vpack.c.bf16 %v2032_v42, %v2030_v38  ;;  %v3789_v38 = vld [vmem:[%s7550_s3 + $0x230] sm:$0xff] }
 0x12c   : > { %v6652_v42 = vpack.c.bf16 %v3789_v38, %v3787_v30  ;;  %v3830_v30 = vld [vmem:[%s7550_s3 + $0x378] sm:$0xff] }
 0x12e   : > { %4878 = vmatpush1.bf16.msra.mxu1 %v4813_v22  ;;  %v6523_v22 = vpack.c.bf16 %v2037_v17, %v2035_v9  ;;  %v3791_v17 = vld [vmem:[%s7550_s3 + $0x240] sm:$0xff] }
 0x12f   : > { %4880 = vmatprep.subr.bf16.mxu1 %v4815_v49 }
 0x132   : > { %4882 = vmatpush1.bf16.msra.mxu1 %v4817_v35  ;;  %v2041_v35 = vld [vmem:[%s7550_s3 + $0x98] sm:$0xff] }
 0x133   : > { %4884 = vmatprep.subr.bf16.mxu1 %v4819_v58  ;;  %v6538_v58 = vpack.c.bf16 %v2036_v48, %v2034_v27  ;;  %v6541_v8 = vpack.c.bf16 %v2041_v35, %v2039_v54  ;;  %v3795_v27 = vld [vmem:[%s7550_s3 + $0x260] sm:$0xff]  ;;  %v3797_v48 = vld [vmem:[%s7550_s3 + $0x270] sm:$0xff] }
 0x134   : > { %v6693_v54 = vpack.c.bf16 %v3797_v48, %v3795_v27  ;;  %v3838_v27 = vld [vmem:[%s7550_s3 + $0x3b8] sm:$0xff] }
 0x136   : > { %4886 = vmatpush1.bf16.msra.mxu1 %v4821_v13  ;;  %v2038_v13 = vld [vmem:[%s7550_s3 + $0x80] sm:$0xff] }
 0x137   : > { %4888 = vmatprep.subr.bf16.mxu1 %v4823_v26  ;;  %v2040_v26 = vld [vmem:[%s7550_s3 + $0x90] sm:$0xff] }
 0x1a5   : > { %v1757_v31 = vpop.f32.mrb[0].mxu0 }
 0x1a6   : > { %v5279_v39 = vadd.f32 %v1757_v31, %v6331_v18  ;;  %v1759_v44 = vpop.f32.mrb[1].mxu0  ;;  %v1995_v18 = vrot.slane %v384_v57, %v1994_v0  ;;  %v2042_v57 = vld [vmem:[%s7550_s3 + $0xa0] sm:$0xff] }
 0x1a7   : > { %v5280_v60 = vadd.f32 %v1759_v44, %v6333_v52  ;;  %v2045_v44 = vld [vmem:[%s7550_s3 + $0xb8] sm:$0xff] }
 0x1a8   : > { %v1998_v52 = vadd.f32 %v5279_v39, %v1991_v1  ;;  %v2043_v39 = vld [vmem:[%s7550_s3 + $0xa8] sm:$0xff] }
 0x1a9   : > { %v1999_v4 = vadd.f32 %v5280_v60, %v1995_v18  ;;  %v6559_v63 = vpack.c.bf16 %v2045_v44, %v2043_v39 }
 0x1aa   : > { %v2000_v12 = vmax.f32 %v1998_v52, 0.0  ;;  %v2049_v52 = vld [vmem:[%s7550_s3 + $0xd8] sm:$0xff] }
 0x1ab   : > { %v2001_v15 = vmax.f32 %v1999_v4, 0.0 }
 0x1bd   : > { %v1903_v61 = vpop.f32.mrb[2].mxu0 }
 0x1be   : > { %v1905_v62 = vpop.f32.mrb[3].mxu0  ;;  %v2006_v43 = vadd.f32 %v1991_v1, %v1903_v61  ;;  %v6556_v61 = vpack.c.bf16 %v2040_v26, %v2038_v13  ;;  %v3805_v13 = vld [vmem:[%s7550_s3 + $0x2b0] sm:$0xff]  ;;  %v3808_v26 = vld [vmem:[%s7550_s3 + $0x2c8] sm:$0xff] }
 0x1bf   : > { %v2007_v46 = vadd.f32 %v1995_v18, %v1905_v62 }
 0x1c0   : > { %v2008_v55 = vmax.f32 %v2006_v43, 0.0  ;;  %v3793_v43 = vld [vmem:[%s7550_s3 + $0x250] sm:$0xff] }
 0x1c1   : > { %v2009_v59 = vmax.f32 %v2007_v46, 0.0  ;;  %v3798_v46 = vld [vmem:[%s7550_s3 + $0x278] sm:$0xff] }
 0x1d4   : > { %v1830_v5 = vpop.f32.mrb[2].mxu1 }
 0x1d5   : > { %v2002_v6 = vadd.f32 %v1991_v1, %v1830_v5  ;;  %v1832_v10 = vpop.f32.mrb[3].mxu1 }
 0x1d6   : > { %v2003_v11 = vadd.f32 %v1995_v18, %v1832_v10  ;;  %v2048_v10 = vld [vmem:[%s7550_s3 + $0xd0] sm:$0xff] }
 0x1d7   : > { %v2004_v14 = vmax.f32 %v2002_v6, 0.0  ;;  %v2046_v6 = vld [vmem:[%s7550_s3 + $0xc0] sm:$0xff] }
 0x1d8   : > { %v2005_v16 = vmax.f32 %v2003_v11, 0.0  ;;  %v2051_v11 = vld [vmem:[%s7550_s3 + $0xe8] sm:$0xff] }
 0x1d9   : > { %v2014_v20 = vmax.f32 %v2000_v12, %v2004_v14  ;;  %v2053_v12 = vld [vmem:[%s7550_s3 + $0xf8] sm:$0xff]  ;;  %v6592_v14 = vpack.c.bf16 %v2048_v10, %v2046_v6 }
 0x1da   : > { %v2015_v21 = vmax.f32 %v2001_v15, %v2005_v16  ;;  %v6595_v15 = vpack.c.bf16 %v2053_v12, %v2051_v11  ;;  %v2050_v16 = vld [vmem:[%s7550_s3 + $0xe0] sm:$0xff]  ;;  %v3818_v6 = vld [vmem:[%s7550_s3 + $0x318] sm:$0xff] }
 0x1db   : > { %v3815_v12 = vld [vmem:[%s7550_s3 + $0x300] sm:$0xff] }
 0x1dc   : > { %v2018_v24 = vmax.f32 %v2014_v20, %v2015_v21  ;;  %v2052_v20 = vld [vmem:[%s7550_s3 + $0xf0] sm:$0xff] }
 0x1dd   : > { %v6611_v28 = vpack.c.bf16 %v2052_v20, %v2050_v16  ;;  %v3822_v16 = vld [vmem:[%s7550_s3 + $0x338] sm:$0xff] }
 0x1de   : > { %2019 = vst [vmem:[#allocation2] sm:$0x7f] %v2018_v24  ;;  %v3784_v24 = vld [vmem:[%s7550_s3 + $0x208] sm:$0xff] }
 0x1df   : > { %v6615_v29 = vpack.c.bf16 %v3786_v25, %v3784_v24  ;;  %v3819_v24 = vld [vmem:[%s7550_s3 + $0x320] sm:$0xff]  ;;  %v3821_v25 = vld [vmem:[%s7550_s3 + $0x330] sm:$0xff] }
 0x1e0   : > { %v6817_v36 = vpack.c.bf16 %v3821_v25, %v3819_v24 }
 0x1e5   : > { %v6491_v19 = vld [vmem:[#allocation2 + $0x1] sm:$0x1f] }
 0x1e6   : > { %2297 = vmatmul.mubr.f32.vlgmr.msra.gmra.mrb[6].mxu1 %v6491_v19 }
 0x1e7   : > { %4890 = vmatpush1.bf16.msra.mxu1 %v6481_v34  ;;  %2367 = vmatprep.mubr.f32.mxu1 %v5433_v7 }
 0x1e8   : > { %4892 = vmatprep.subr.bf16.mxu1 %v6483_v3 }
 0x1eb   : > { %4894 = vmatpush1.bf16.msra.mxu1 %v6501_v32 }
 0x1ec   : > { %v1980_v47 = vpop.f32.mrb[4].mxu1  ;;  %4896 = vmatprep.subr.bf16.mxu1 %v6505_v37 }
 0x1ed   : > { %v2010_v49 = vadd.f32 %v1991_v1, %v1980_v47  ;;  %v1982_v50 = vpop.f32.mrb[5].mxu1  ;;  %v2044_v1 = vld [vmem:[%s7550_s3 + $0xb0] sm:$0xff]  ;;  %v6673_v47 = vpack.c.bf16 %v3793_v43, %v3791_v17  ;;  %v3834_v17 = vld [vmem:[%s7550_s3 + $0x398] sm:$0xff] }
 0x1ee   : > { %v2011_v40 = vadd.f32 %v1995_v18, %v1982_v50  ;;  %v2047_v18 = vld [vmem:[%s7550_s3 + $0xc8] sm:$0xff]  ;;  %v6574_v4 = vpack.c.bf16 %v2044_v1, %v2042_v57  ;;  %v3802_v50 = vld [vmem:[%s7550_s3 + $0x298] sm:$0xff] }
 0x1ef   : > { %v2012_v56 = vmax.f32 %v2010_v49, 0.0  ;;  %4898 = vmatpush1.bf16.msra.mxu1 %v6520_v45  ;;  %v6577_v5 = vpack.c.bf16 %v2049_v52, %v2047_v18  ;;  %v3800_v49 = vld [vmem:[%s7550_s3 + $0x288] sm:$0xff]  ;;  %v3811_v18 = vld [vmem:[%s7550_s3 + $0x2e0] sm:$0xff]  ;;  %v3813_v52 = vld [vmem:[%s7550_s3 + $0x2f0] sm:$0xff] }
 0x1f0   : > { %v2013_v51 = vmax.f32 %v2011_v40, 0.0  ;;  %4900 = vmatprep.subr.bf16.mxu1 %v6523_v22  ;;  %v6697_v35 = vpack.c.bf16 %v3802_v50, %v3800_v49  ;;  %v3799_v40 = vld [vmem:[%s7550_s3 + $0x280] sm:$0xff]  ;;  %v6773_v10 = vpack.c.bf16 %v3813_v52, %v3811_v18 }
 0x1f1   : > { %v2016_v31 = vmax.f32 %v2008_v55, %v2012_v56  ;;  %v3801_v55 = vld [vmem:[%s7550_s3 + $0x290] sm:$0xff]  ;;  %v3804_v56 = vld [vmem:[%s7550_s3 + $0x2a8] sm:$0xff]  ;;  %v3835_v50 = vld [vmem:[%s7550_s3 + $0x3a0] sm:$0xff] }
 0x1f2   : > { %v2017_v60 = vmax.f32 %v2009_v59, %v2013_v51  ;;  %v6713_v59 = vpack.c.bf16 %v3801_v55, %v3799_v40  ;;  %v3842_v40 = vld [vmem:[%s7550_s3 + $0x3d8] sm:$0xff] }
 0x1f3   : > { %4902 = vmatpush1.bf16.msra.mxu1 %v6538_v58 }
 0x1f4   : > { %v2020_v62 = vmax.f32 %v2016_v31, %v2017_v60  ;;  %4904 = vmatprep.subr.bf16.mxu1 %v6541_v8  ;;  %v3810_v31 = vld [vmem:[%s7550_s3 + $0x2d8] sm:$0xff]  ;;  %v3807_v60 = vld [vmem:[%s7550_s3 + $0x2c0] sm:$0xff] }
 0x1f5   : > { %v6737_v44 = vpack.c.bf16 %v3810_v31, %v3808_v26  ;;  %v3843_v31 = vld [vmem:[%s7550_s3 + $0x3e0] sm:$0xff] }
 0x1f6   : > { %2021 = vst [vmem:[#allocation2 + $0x8] sm:$0x7f] %v2020_v62  ;;  %v3812_v62 = vld [vmem:[%s7550_s3 + $0x2e8] sm:$0xff] }
 0x1f7   : > { %4906 = vmatpush1.bf16.msra.mxu1 %v6556_v61 }
 0x1f8   : > { %4908 = vmatprep.subr.bf16.mxu1 %v6559_v63 }
 0x1fb   : > { %4910 = vmatpush1.bf16.msra.mxu1 %v6574_v4 }
 0x1fc   : > { %4912 = vmatprep.subr.bf16.mxu1 %v6577_v5 }
 0x1fd   : > { %v2055_v21 = vld [vmem:[#allocation2 + $0x8] sm:$0x1f] }
 0x1fe   : > { %2154 = vmatmul.mubr.f32.vlgmr.msra.gmra.mrb[4].mxu0 %v2055_v21 }
 0x1ff   : > { %4826 = vmatpush1.bf16.msra.mxu0 %v6481_v34  ;;  %4914 = vmatpush1.bf16.msra.mxu1 %v6592_v14  ;;  %v3788_v34 = vld [vmem:[%s7550_s3 + $0x228] sm:$0xff] }
 0x200   : > { %4828 = vmatprep.subr.bf16.mxu0 %v6483_v3  ;;  %4916 = vmatprep.subr.bf16.mxu1 %v6595_v15  ;;  %v3790_v3 = vld [vmem:[%s7550_s3 + $0x238] sm:$0xff] }
 0x201   : > { %2224 = vmatprep.mubr.f32.mxu0 %v5433_v7  ;;  %v6636_v23 = vpack.c.bf16 %v3790_v3, %v3788_v34  ;;  %v3823_v3 = vld [vmem:[%s7550_s3 + $0x340] sm:$0xff] }
 0x203   : > { %4830 = vmatpush1.bf16.msra.mxu0 %v6501_v32  ;;  %4918 = vmatpush1.bf16.msra.mxu1 %v6611_v28  ;;  %v3792_v32 = vld [vmem:[%s7550_s3 + $0x248] sm:$0xff] }
 0x204   : > { %4832 = vmatprep.subr.bf16.mxu0 %v6505_v37  ;;  %4952 = vmatprep.subr.bf16.mxu1 %v6615_v29  ;;  %v3794_v37 = vld [vmem:[%s7550_s3 + $0x258] sm:$0xff] }
 0x205   : > { %v6656_v9 = vpack.c.bf16 %v3794_v37, %v3792_v32  ;;  %v3827_v37 = vld [vmem:[%s7550_s3 + $0x360] sm:$0xff] }
 0x206   : > { %2368 = vmatmul.mubr.f32.vlgmr.msra.gmra.mrb[6].mxu1 %v2055_v21 }
 0x207   : > { %4834 = vmatpush1.bf16.msra.mxu0 %v6520_v45  ;;  %4954 = vmatpush1.bf16.msra.mxu1 %v6632_v41  ;;  %v3796_v45 = vld [vmem:[%s7550_s3 + $0x268] sm:$0xff] }
 0x208   : > { %4836 = vmatprep.subr.bf16.mxu0 %v6523_v22  ;;  %4956 = vmatprep.subr.bf16.mxu1 %v6636_v23  ;;  %v6677_v22 = vpack.c.bf16 %v3798_v46, %v3796_v45  ;;  %v3831_v46 = vld [vmem:[%s7550_s3 + $0x380] sm:$0xff] }
 0x209   : > { %2545 = vmatprep.mubr.f32.mxu1 %v5433_v7 }
 0x20b   : > { %4838 = vmatpush1.bf16.msra.mxu0 %v6538_v58  ;;  %4958 = vmatpush1.bf16.msra.mxu1 %v6652_v42  ;;  %v3806_v58 = vld [vmem:[%s7550_s3 + $0x2b8] sm:$0xff] }
 0x20c   : > { %4840 = vmatprep.subr.bf16.mxu0 %v6541_v8  ;;  %4960 = vmatprep.subr.bf16.mxu1 %v6656_v9  ;;  %v6717_v51 = vpack.c.bf16 %v3806_v58, %v3804_v56  ;;  %v3803_v8 = vld [vmem:[%s7550_s3 + $0x2a0] sm:$0xff] }
 0x20d   : > { %v6733_v39 = vpack.c.bf16 %v3805_v13, %v3803_v8  ;;  %v3839_v58 = vld [vmem:[%s7550_s3 + $0x3c0] sm:$0xff]  ;;  %v3846_v8 = vld [vmem:[%s7550_s3 + $0x3f8] sm:$0xff] }
 0x20f   : > { %4842 = vmatpush1.bf16.msra.mxu0 %v6556_v61  ;;  %4962 = vmatpush1.bf16.msra.mxu1 %v6673_v47  ;;  %v3809_v61 = vld [vmem:[%s7550_s3 + $0x2d0] sm:$0xff] }
 0x210   : > { %4844 = vmatprep.subr.bf16.mxu0 %v6559_v63  ;;  %4964 = vmatprep.subr.bf16.mxu1 %v6677_v22  ;;  %v3814_v63 = vld [vmem:[%s7550_s3 + $0x2f8] sm:$0xff]  ;;  %v6753_v57 = vpack.c.bf16 %v3809_v61, %v3807_v60 }
 0x211   : > { %v6757_v1 = vpack.c.bf16 %v3814_v63, %v3812_v62  ;;  %v3850_v60 = vld [vmem:[%s7550_s3 + $0x418] sm:$0xff]  ;;  %v3847_v63 = vld [vmem:[%s7550_s3 + $0x400] sm:$0xff] }
 0x213   : > { %4846 = vmatpush1.bf16.msra.mxu0 %v6574_v4  ;;  %4966 = vmatpush1.bf16.msra.mxu1 %v6693_v54  ;;  %v2054_v4 = vld [vmem:[#allocation2] sm:$0x1f] }
 0x214   : > { %4848 = vmatprep.subr.bf16.mxu0 %v6577_v5  ;;  %4968 = vmatprep.subr.bf16.mxu1 %v6697_v35  ;;  %v3816_v5 = vld [vmem:[%s7550_s3 + $0x308] sm:$0xff] }
 0x215   : > { %v6777_v11 = vpack.c.bf16 %v3818_v6, %v3816_v5  ;;  %v3853_v5 = vld [vmem:[%s7550_s3 + $0x430] sm:$0xff]  ;;  %v6972_v6 = vld [vmem:[#allocation2 + $0x2] sm:$0x1f] }
 0x217   : > { %4850 = vmatpush1.bf16.msra.mxu0 %v6592_v14  ;;  %4970 = vmatpush1.bf16.msra.mxu1 %v6713_v59  ;;  %v3817_v14 = vld [vmem:[%s7550_s3 + $0x310] sm:$0xff] }
 0x218   : > { %4852 = vmatprep.subr.bf16.mxu0 %v6595_v15  ;;  %4972 = vmatprep.subr.bf16.mxu1 %v6717_v51  ;;  %v3820_v15 = vld [vmem:[%s7550_s3 + $0x328] sm:$0xff]  ;;  %v6794_v20 = vpack.c.bf16 %v3817_v14, %v3815_v12 }
 0x219   : > { %v6798_v21 = vpack.c.bf16 %v3822_v16, %v3820_v15  ;;  %v3855_v15 = vld [vmem:[%s7550_s3 + $0x440] sm:$0xff]  ;;  %v3857_v16 = vld [vmem:[%s7550_s3 + $0x450] sm:$0xff] }
 0x21a   : > { %v5057_v24 = vpack.c.bf16 %v3857_v16, %v3855_v15  ;;  %v3887_v16 = vld [vmem:[%s7552_s5 + $0xc0] sm:$0xff] }
 0x21b   : > { %4854 = vmatpush1.bf16.msra.mxu0 %v6611_v28  ;;  %4974 = vmatpush1.bf16.msra.mxu1 %v6733_v39  ;;  %v6806_v28 = vld [vmem:[#allocation2 + $0x9] sm:$0x1f] }
 0x21c   : > { %4920 = vmatprep.subr.bf16.mxu0 %v6615_v29  ;;  %4976 = vmatprep.subr.bf16.mxu1 %v6737_v44  ;;  %v3824_v29 = vld [vmem:[%s7550_s3 + $0x348] sm:$0xff] }
 0x21d   : > { %v6821_v34 = vpack.c.bf16 %v3826_v33, %v3824_v29  ;;  %v3859_v29 = vld [vmem:[%s7550_s3 + $0x460] sm:$0xff]  ;;  %v3861_v33 = vld [vmem:[%s7550_s3 + $0x470] sm:$0xff] }
 0x21e   : > { %2225 = vmatmul.mubr.f32.vlgmr.msra.gmra.mrb[4].mxu0 %v2054_v4  ;;  %v3851_v4 = vld [vmem:[%s7550_s3 + $0x420] sm:$0xff] }
 0x21f   : > { %4922 = vmatpush1.bf16.msra.mxu0 %v6632_v41  ;;  %4978 = vmatpush1.bf16.msra.mxu1 %v6753_v57  ;;  %v3825_v41 = vld [vmem:[%s7550_s3 + $0x350] sm:$0xff]  ;;  %v6983_v12 = vpack.c.bf16 %v3853_v5, %v3851_v4  ;;  %v2943_v4 = vld [vmem:[%s7552_s5 + $0x38] sm:$0xff] }
 0x220   : > { %4924 = vmatprep.subr.bf16.mxu0 %v6636_v23  ;;  %4980 = vmatprep.subr.bf16.mxu1 %v6757_v1  ;;  %v3828_v23 = vld [vmem:[%s7550_s3 + $0x368] sm:$0xff]  ;;  %v6838_v38 = vpack.c.bf16 %v3825_v41, %v3823_v3  ;;  %v5061_v3 = vpack.c.bf16 %v3861_v33, %v3859_v29 }
 0x221   : > { %2471 = vmatprep.mubr.f32.mxu0 %v5433_v7  ;;  %v6842_v32 = vpack.c.bf16 %v3830_v30, %v3828_v23  ;;  %v3863_v23 = vld [vmem:[%s7550_s3 + $0x480] sm:$0xff]  ;;  %v3865_v30 = vld [vmem:[%s7550_s3 + $0x490] sm:$0xff] }
 0x223   : > { %4926 = vmatpush1.bf16.msra.mxu0 %v6652_v42  ;;  %4982 = vmatpush1.bf16.msra.mxu1 %v6773_v10  ;;  %v3829_v42 = vld [vmem:[%s7550_s3 + $0x370] sm:$0xff] }
 0x224   : > { %4928 = vmatprep.subr.bf16.mxu0 %v6656_v9  ;;  %5016 = vmatprep.subr.bf16.mxu1 %v6777_v11  ;;  %v3832_v9 = vld [vmem:[%s7550_s3 + $0x388] sm:$0xff]  ;;  %v6858_v43 = vpack.c.bf16 %v3829_v42, %v3827_v37  ;;  %v5065_v37 = vpack.c.bf16 %v3865_v30, %v3863_v23 }
 0x225   : > { %v6862_v45 = vpack.c.bf16 %v3834_v17, %v3832_v9  ;;  %v3867_v9 = vld [vmem:[%s7550_s3 + $0x4a0] sm:$0xff]  ;;  %v3869_v17 = vld [vmem:[%s7550_s3 + $0x4b0] sm:$0xff]  ;;  %v2949_v23 = vld [vmem:[%s7552_s5 + $0x68] sm:$0xff] }
 0x226   : > { %2546 = vmatmul.mubr.f32.vlgmr.msra.gmra.mrb[6].mxu1 %v6806_v28 }
 0x227   : > { %4930 = vmatpush1.bf16.msra.mxu0 %v6673_v47  ;;  %5018 = vmatpush1.bf16.msra.mxu1 %v6794_v20  ;;  %v3833_v47 = vld [vmem:[%s7550_s3 + $0x390] sm:$0xff] }
 0x228   : > { %4932 = vmatprep.subr.bf16.mxu0 %v6677_v22  ;;  %5020 = vmatprep.subr.bf16.mxu1 %v6798_v21  ;;  %v3836_v22 = vld [vmem:[%s7550_s3 + $0x3a8] sm:$0xff]  ;;  %v6878_v48 = vpack.c.bf16 %v3833_v47, %v3831_v46  ;;  %v5069_v46 = vpack.c.bf16 %v3869_v17, %v3867_v9  ;;  %v2951_v9 = vld [vmem:[%s7552_s5 + $0x78] sm:$0xff] }
 0x229   : > { %2725 = vmatprep.mubr.f32.mxu1 %v5433_v7  ;;  %v6882_v49 = vpack.c.bf16 %v3838_v27, %v3836_v22  ;;  %v3871_v22 = vld [vmem:[%s7550_s3 + $0x4c0] sm:$0xff]  ;;  %v3873_v27 = vld [vmem:[%s7550_s3 + $0x4d0] sm:$0xff] }
 0x22b   : > { %4934 = vmatpush1.bf16.msra.mxu0 %v6693_v54  ;;  %5022 = vmatpush1.bf16.msra.mxu1 %v6817_v36  ;;  %v3837_v54 = vld [vmem:[%s7550_s3 + $0x3b0] sm:$0xff] }
 0x22c   : > { %4936 = vmatprep.subr.bf16.mxu0 %v6697_v35  ;;  %5024 = vmatprep.subr.bf16.mxu1 %v6821_v34  ;;  %v3840_v35 = vld [vmem:[%s7550_s3 + $0x3c8] sm:$0xff]  ;;  %v6898_v55 = vpack.c.bf16 %v3837_v54, %v3835_v50  ;;  %v5073_v50 = vpack.c.bf16 %v3873_v27, %v3871_v22 }
 0x22d   : > { %v6902_v56 = vpack.c.bf16 %v3842_v40, %v3840_v35  ;;  %v3875_v35 = vld [vmem:[%s7550_s3 + $0x4e0] sm:$0xff]  ;;  %v3877_v40 = vld [vmem:[%s7550_s3 + $0x4f0] sm:$0xff] }
 0x22f   : > { %4938 = vmatpush1.bf16.msra.mxu0 %v6713_v59  ;;  %5026 = vmatpush1.bf16.msra.mxu1 %v6838_v38  ;;  %v3841_v59 = vld [vmem:[%s7550_s3 + $0x3d0] sm:$0xff] }
 0x230   : > { %4940 = vmatprep.subr.bf16.mxu0 %v6717_v51  ;;  %5028 = vmatprep.subr.bf16.mxu1 %v6842_v32  ;;  %v3844_v51 = vld [vmem:[%s7550_s3 + $0x3e8] sm:$0xff]  ;;  %v6918_v13 = vpack.c.bf16 %v3841_v59, %v3839_v58 }
 0x231   : > { %v6922_v26 = vpack.c.bf16 %v3846_v8, %v3844_v51  ;;  %v2937_v58 = vld [vmem:[%s7552_s5 + $0x8] sm:$0xff]  ;;  %v5434_v51 = vmov 0.0|0.0   ;;  %v3879_v8 = vld [vmem:[%s7552_s5 + $0x80] sm:$0xff] }
 0x233   : > { %4942 = vmatpush1.bf16.msra.mxu0 %v6733_v39  ;;  %5030 = vmatpush1.bf16.msra.mxu1 %v6858_v43  ;;  %v3845_v39 = vld [vmem:[%s7550_s3 + $0x3f0] sm:$0xff] }
 0x234   : > { %4944 = vmatprep.subr.bf16.mxu0 %v6737_v44  ;;  %5032 = vmatprep.subr.bf16.mxu1 %v6862_v45  ;;  %v3848_v44 = vld [vmem:[%s7550_s3 + $0x408] sm:$0xff]  ;;  %v6939_v61 = vpack.c.bf16 %v3845_v39, %v3843_v31  ;;  %v2938_v31 = vld [vmem:[%s7552_s5 + $0x10] sm:$0xff]  ;;  %v2939_v39 = vld [vmem:[%s7552_s5 + $0x18] sm:$0xff] }
 0x235   : > { %v6943_v62 = vpack.c.bf16 %v3850_v60, %v3848_v44  ;;  %v5139_v44 = vpack.c.bf16 %v2939_v39, %v2938_v31  ;;  %v3881_v60 = vld [vmem:[%s7552_s5 + $0x90] sm:$0xff]  ;;  %v3896_v31 = vld [vmem:[%s7552_s5 + $0x108] sm:$0xff] }
 0x237   : > { %4946 = vmatpush1.bf16.msra.mxu0 %v6753_v57  ;;  %5034 = vmatpush1.bf16.msra.mxu1 %v6878_v48  ;;  %v3852_v57 = vld [vmem:[%s7550_s3 + $0x428] sm:$0xff] }
 0x238   : > { %4948 = vmatprep.subr.bf16.mxu0 %v6757_v1  ;;  %5036 = vmatprep.subr.bf16.mxu1 %v6882_v49  ;;  %v3854_v1 = vld [vmem:[%s7550_s3 + $0x438] sm:$0xff] }
 0x239   : > { %v6964_v52 = vpack.c.bf16 %v3854_v1, %v3852_v57  ;;  %v3883_v57 = vld [vmem:[%s7552_s5 + $0xa0] sm:$0xff] }
 0x23b   : > { %4950 = vmatpush1.bf16.msra.mxu0 %v6773_v10  ;;  %5038 = vmatpush1.bf16.msra.mxu1 %v6898_v55  ;;  %v3856_v10 = vld [vmem:[%s7550_s3 + $0x448] sm:$0xff] }
 0x23c   : > { %4984 = vmatprep.subr.bf16.mxu0 %v6777_v11  ;;  %5040 = vmatprep.subr.bf16.mxu1 %v6902_v56  ;;  %v3858_v11 = vld [vmem:[%s7550_s3 + $0x458] sm:$0xff] }
 0x23d   : > { %v5055_v14 = vpack.c.bf16 %v3858_v11, %v3856_v10  ;;  %v3886_v10 = vld [vmem:[%s7552_s5 + $0xb8] sm:$0xff] }
 0x23e   : > { %2472 = vmatmul.mubr.f32.vlgmr.msra.gmra.mrb[4].mxu0 %v6491_v19  ;;  %v3849_v19 = vld [vmem:[%s7550_s3 + $0x410] sm:$0xff] }
 0x23f   : > { %4986 = vmatpush1.bf16.msra.mxu0 %v6794_v20  ;;  %5042 = vmatpush1.bf16.msra.mxu1 %v6918_v13  ;;  %v6960_v18 = vpack.c.bf16 %v3849_v19, %v3847_v63  ;;  %v3860_v20 = vld [vmem:[%s7550_s3 + $0x468] sm:$0xff]  ;;  %v2940_v63 = vld [vmem:[%s7552_s5 + $0x20] sm:$0xff] }
 0x240   : > { %4988 = vmatprep.subr.bf16.mxu0 %v6798_v21  ;;  %5044 = vmatprep.subr.bf16.mxu1 %v6922_v26  ;;  %v3862_v21 = vld [vmem:[%s7550_s3 + $0x478] sm:$0xff]  ;;  %v2941_v19 = vld [vmem:[%s7552_s5 + $0x28] sm:$0xff] }
 0x241   : > { %2651 = vmatprep.mubr.f32.mxu0 %v5433_v7  ;;  %v5059_v25 = vpack.c.bf16 %v3862_v21, %v3860_v20  ;;  %v5142_v1 = vpack.c.bf16 %v2941_v19, %v2940_v63  ;;  %v3888_v20 = vld [vmem:[%s7552_s5 + $0xc8] sm:$0xff]  ;;  %v3897_v19 = vld [vmem:[%s7552_s5 + $0x110] sm:$0xff] }
 0x242   : > { %v5124_v29 = vpack.c.bf16 %v3888_v20, %v3887_v16  ;;  %v3902_v16 = vld [vmem:[%s7552_s5 + $0x138] sm:$0xff] }
 0x243   : > { %4990 = vmatpush1.bf16.msra.mxu0 %v6817_v36  ;;  %5046 = vmatpush1.bf16.msra.mxu1 %v6939_v61  ;;  %v3864_v36 = vld [vmem:[%s7550_s3 + $0x488] sm:$0xff] }
 0x244   : > { %4992 = vmatprep.subr.bf16.mxu0 %v6821_v34  ;;  %5080 = vmatprep.subr.bf16.mxu1 %v6943_v62  ;;  %v3866_v34 = vld [vmem:[%s7550_s3 + $0x498] sm:$0xff] }
 0x245   : > { %v5063_v41 = vpack.c.bf16 %v3866_v34, %v3864_v36  ;;  %v3889_v36 = vld [vmem:[%s7552_s5 + $0xd0] sm:$0xff]  ;;  %v3890_v34 = vld [vmem:[%s7552_s5 + $0xd8] sm:$0xff] }
 0x246   : > { %2726 = vmatmul.mubr.f32.vlgmr.msra.gmra.mrb[6].mxu1 %v6972_v6 }
 0x247   : > { %4994 = vmatpush1.bf16.msra.mxu0 %v6838_v38  ;;  %5082 = vmatpush1.bf16.msra.mxu1 %v6960_v18  ;;  %v3868_v38 = vld [vmem:[%s7550_s3 + $0x4a8] sm:$0xff] }
 0x248   : > { %4996 = vmatprep.subr.bf16.mxu0 %v6842_v32  ;;  %5084 = vmatprep.subr.bf16.mxu1 %v6964_v52  ;;  %v3870_v32 = vld [vmem:[%s7550_s3 + $0x4b8] sm:$0xff] }
 0x249   : > { %2905 = vmatprep.mubr.f32.mxu1 %v5433_v7  ;;  %v5067_v42 = vpack.c.bf16 %v3870_v32, %v3868_v38  ;;  %v3891_v38 = vld [vmem:[%s7552_s5 + $0xe0] sm:$0xff]  ;;  %v3892_v32 = vld [vmem:[%s7552_s5 + $0xe8] sm:$0xff] }
 0x24b   : > { %4998 = vmatpush1.bf16.msra.mxu0 %v6858_v43  ;;  %5086 = vmatpush1.bf16.msra.mxu1 %v6983_v12  ;;  %v3872_v43 = vld [vmem:[%s7550_s3 + $0x4c8] sm:$0xff] }
 0x24c   : > { %5000 = vmatprep.subr.bf16.mxu0 %v6862_v45  ;;  %5088 = vmatprep.subr.bf16.mxu1 %v5055_v14  ;;  %v3874_v45 = vld [vmem:[%s7550_s3 + $0x4d8] sm:$0xff] }
 0x24d   : > { %v5071_v47 = vpack.c.bf16 %v3874_v45, %v3872_v43  ;;  %v3893_v43 = vld [vmem:[%s7552_s5 + $0xf0] sm:$0xff]  ;;  %v3894_v45 = vld [vmem:[%s7552_s5 + $0xf8] sm:$0xff] }
 0x24f   : > { %5002 = vmatpush1.bf16.msra.mxu0 %v6878_v48  ;;  %5090 = vmatpush1.bf16.msra.mxu1 %v5057_v24  ;;  %v3876_v48 = vld [vmem:[%s7550_s3 + $0x4e8] sm:$0xff] }
 0x250   : > { %5004 = vmatprep.subr.bf16.mxu0 %v6882_v49  ;;  %5092 = vmatprep.subr.bf16.mxu1 %v5059_v25  ;;  %v3878_v49 = vld [vmem:[%s7550_s3 + $0x4f8] sm:$0xff] }
 0x251   : > { %v5075_v54 = vpack.c.bf16 %v3878_v49, %v3876_v48 }
 0x253   : > { %5006 = vmatpush1.bf16.msra.mxu0 %v6898_v55  ;;  %5094 = vmatpush1.bf16.msra.mxu1 %v5061_v3  ;;  %v5077_v55 = vpack.c.bf16 %v3877_v40, %v3875_v35 }
 0x254   : > { %5008 = vmatprep.subr.bf16.mxu0 %v6902_v56  ;;  %5096 = vmatprep.subr.bf16.mxu1 %v5063_v41  ;;  %v2840_v56 = vld [vmem:[#allocation2 + $0xa] sm:$0x1f] }
 0x257   : > { %5010 = vmatpush1.bf16.msra.mxu0 %v6918_v13  ;;  %5098 = vmatpush1.bf16.msra.mxu1 %v5065_v37  ;;  %v3880_v13 = vld [vmem:[%s7552_s5 + $0x88] sm:$0xff] }
 0x258   : > { %5012 = vmatprep.subr.bf16.mxu0 %v6922_v26  ;;  %5100 = vmatprep.subr.bf16.mxu1 %v5067_v42  ;;  %v5112_v26 = vpack.c.bf16 %v3880_v13, %v3879_v8 }
 0x25b   : > { %5014 = vmatpush1.bf16.msra.mxu0 %v6939_v61  ;;  %5102 = vmatpush1.bf16.msra.mxu1 %v5069_v46  ;;  %v3882_v61 = vld [vmem:[%s7552_s5 + $0x98] sm:$0xff] }
 0x25c   : > { %5048 = vmatprep.subr.bf16.mxu0 %v6943_v62  ;;  %5104 = vmatprep.subr.bf16.mxu1 %v5071_v47  ;;  %v5115_v62 = vpack.c.bf16 %v3882_v61, %v3881_v60  ;;  %v3913_v60 = vld [vmem:[%s7552_s5 + $0x190] sm:$0xff]  ;;  %v3914_v61 = vld [vmem:[%s7552_s5 + $0x198] sm:$0xff] }
 0x25e   : > { %2652 = vmatmul.mubr.f32.vlgmr.msra.gmra.mrb[4].mxu0 %v6806_v28  ;;  %v2936_v28 = vld [vmem:[%s7552_s5] sm:$0xff] }
 0x25f   : > { %5050 = vmatpush1.bf16.msra.mxu0 %v6960_v18  ;;  %5106 = vmatpush1.bf16.msra.mxu1 %v5073_v50  ;;  %v5136_v59 = vpack.c.bf16 %v2937_v58, %v2936_v28  ;;  %v3884_v18 = vld [vmem:[%s7552_s5 + $0xa8] sm:$0xff] }
 0x260   : > { %5052 = vmatprep.subr.bf16.mxu0 %v6964_v52  ;;  %5108 = vmatprep.subr.bf16.mxu1 %v5075_v54  ;;  %v2942_v52 = vld [vmem:[%s7552_s5 + $0x30] sm:$0xff]  ;;  %v5118_v5 = vpack.c.bf16 %v3884_v18, %v3883_v57  ;;  %v3898_v57 = vld [vmem:[%s7552_s5 + $0x118] sm:$0xff]  ;;  %v3915_v18 = vld [vmem:[%s7552_s5 + $0x1a0] sm:$0xff] }
 0x261   : > { %2831 = vmatprep.mubr.f32.mxu0 %v5433_v7  ;;  %v5145_v11 = vpack.c.bf16 %v2943_v4, %v2942_v52  ;;  %v3916_v52 = vld [vmem:[%s7552_s5 + $0x1a8] sm:$0xff]  ;;  %v5163_v4 = vpack.c.bf16 %v3898_v57, %v3897_v19 }
 0x262   : > { %v3940_v19 = vld [vmem:[%s7552_s5 + $0x268] sm:$0xff] }
 0x263   : > { %5054 = vmatpush1.bf16.msra.mxu0 %v6983_v12  ;;  %5110 = vmatpush1.bf16.msra.mxu1 %v5077_v55  ;;  %v2944_v12 = vld [vmem:[%s7552_s5 + $0x40] sm:$0xff] }
 0x264   : > { %5056 = vmatprep.subr.bf16.mxu0 %v5055_v14  ;;  %5135 = vmatprep.subr.bf16.mxu1 %v5434_v51  ;;  %v2945_v14 = vld [vmem:[%s7552_s5 + $0x48] sm:$0xff] }
 0x265   : > { %v5148_v21 = vpack.c.bf16 %v2945_v14, %v2944_v12  ;;  %v3918_v12 = vld [vmem:[%s7552_s5 + $0x1b8] sm:$0xff] }
 0x266   : > { %2906 = vmatmul.mubr.f32.vlgmr.msra.gmra.mrb[6].mxu1 %v2840_v56 }
 0x267   : > { %5058 = vmatpush1.bf16.msra.mxu0 %v5057_v24  ;;  %5137 = vmatpush3.bf16.msra.mxu1 %v5136_v59  ;;  %v2946_v24 = vld [vmem:[%s7552_s5 + $0x50] sm:$0xff] }
 0x268   : > { %5060 = vmatprep.subr.bf16.mxu0 %v5059_v25  ;;  %5138 = vmatprep.subr.bf16.mxu1 %v5434_v51  ;;  %v2947_v25 = vld [vmem:[%s7552_s5 + $0x58] sm:$0xff] }
 0x269   : > { %v5151_v33 = vpack.c.bf16 %v2947_v25, %v2946_v24  ;;  %4133 = vmatprep.mubr.msk.f32.mxu1 %vm5435_vm1, %v5433_v7  ;;  %v3920_v24 = vld [vmem:[%s7552_s5 + $0x1c8] sm:$0xff] }
 0x26b   : > { %5062 = vmatpush1.bf16.msra.mxu0 %v5061_v3  ;;  %5140 = vmatpush3.bf16.msra.mxu1 %v5139_v44  ;;  %v5127_v3 = vpack.c.bf16 %v3890_v34, %v3889_v36  ;;  %v3921_v34 = vld [vmem:[%s7552_s5 + $0x1d0] sm:$0xff] }
 0x26c   : > { %5064 = vmatprep.subr.bf16.mxu0 %v5063_v41  ;;  %5141 = vmatprep.subr.bf16.mxu1 %v5434_v51  ;;  %v2948_v41 = vld [vmem:[%s7552_s5 + $0x60] sm:$0xff] }
 0x26d   : > { %v5154_v30 = vpack.c.bf16 %v2949_v23, %v2948_v41  ;;  %v3905_v23 = vld [vmem:[%s7552_s5 + $0x150] sm:$0xff] }
 0x26f   : > { %5066 = vmatpush1.bf16.msra.mxu0 %v5065_v37  ;;  %5143 = vmatpush3.bf16.msra.mxu1 %v5142_v1  ;;  %v5130_v37 = vpack.c.bf16 %v3892_v32, %v3891_v38  ;;  %v5187_v1 = vpack.c.bf16 %v3914_v61, %v3913_v60  ;;  %v3923_v32 = vld [vmem:[%s7552_s5 + $0x1e0] sm:$0xff]  ;;  %v3937_v60 = vld [vmem:[%s7552_s5 + $0x250] sm:$0xff]  ;;  %v3938_v61 = vld [vmem:[%s7552_s5 + $0x258] sm:$0xff] }
 0x270   : > { %5068 = vmatprep.subr.bf16.mxu0 %v5067_v42  ;;  %5144 = vmatprep.subr.bf16.mxu1 %v5434_v51  ;;  %v2950_v42 = vld [vmem:[%s7552_s5 + $0x70] sm:$0xff] }
 0x271   : > { %v5157_v17 = vpack.c.bf16 %v2951_v9, %v2950_v42  ;;  %v3907_v9 = vld [vmem:[%s7552_s5 + $0x160] sm:$0xff] }
 0x273   : > { %5070 = vmatpush1.bf16.msra.mxu0 %v5069_v46  ;;  %5146 = vmatpush3.bf16.msra.mxu1 %v5145_v11  ;;  %v5133_v46 = vpack.c.bf16 %v3894_v45, %v3893_v43  ;;  %v3917_v11 = vld [vmem:[%s7552_s5 + $0x1b0] sm:$0xff] }
 0x274   : > { %5072 = vmatprep.subr.bf16.mxu0 %v5071_v47  ;;  %5147 = vmatprep.subr.bf16.mxu1 %v5434_v51  ;;  %v385_v47 = vld [vmem:[%s7551_s4] sm:$0x3]  ;;  %v5193_v20 = vpack.c.bf16 %v3918_v12, %v3917_v11  ;;  %v3925_v45 = vld [vmem:[%s7552_s5 + $0x1f0] sm:$0xff] }
 0x275   : > { %v2918_v22 = vrot.slane %v385_v47, %v1990_v53  ;;  %v2922_v27 = vrot.slane %v385_v47, %v1994_v0  ;;  %v3911_v53 = vld [vmem:[%s7552_s5 + $0x180] sm:$0xff] }
 0x276   : > { %v5184_v39 = vpack.c.bf16 %v3912_v2, %v3911_v53  ;;  %v3933_v53 = vld [vmem:[%s7552_s5 + $0x230] sm:$0xff]  ;;  %v3934_v2 = vld [vmem:[%s7552_s5 + $0x238] sm:$0xff] }
 0x277   : > { %5074 = vmatpush1.bf16.msra.mxu0 %v5073_v50  ;;  %5149 = vmatpush3.bf16.msra.mxu1 %v5148_v21  ;;  %v3919_v21 = vld [vmem:[%s7552_s5 + $0x1c0] sm:$0xff] }
 0x278   : > { %5076 = vmatprep.subr.bf16.mxu0 %v5075_v54  ;;  %5150 = vmatprep.subr.bf16.mxu1 %v5434_v51  ;;  %v5196_v36 = vpack.c.bf16 %v3920_v24, %v3919_v21  ;;  %v3393_v24 = vld [vmem:[%s7554_s7 + $0x40] sm:$0xff] }
 0x27b   : > { %5078 = vmatpush1.bf16.msra.mxu0 %v5077_v55  ;;  %5152 = vmatpush3.bf16.msra.mxu1 %v5151_v33  ;;  %v3904_v33 = vld [vmem:[%s7552_s5 + $0x148] sm:$0xff] }
 0x27c   : > { %5111 = vmatprep.subr.bf16.mxu0 %v5434_v51  ;;  %5153 = vmatprep.subr.bf16.mxu1 %v5434_v51 }
 0x27e   : > { %2832 = vmatmul.mubr.f32.vlgmr.msra.gmra.mrb[4].mxu0 %v6972_v6  ;;  %v3885_v6 = vld [vmem:[%s7552_s5 + $0xb0] sm:$0xff] }
 0x27f   : > { %5113 = vmatpush3.bf16.msra.mxu0 %v5112_v26  ;;  %v5121_v15 = vpack.c.bf16 %v3886_v10, %v3885_v6  ;;  %5155 = vmatpush3.bf16.msra.mxu1 %v5154_v30  ;;  %v3895_v26 = vld [vmem:[%s7552_s5 + $0x100] sm:$0xff]  ;;  %v3900_v6 = vld [vmem:[%s7552_s5 + $0x128] sm:$0xff]  ;;  %v5190_v10 = vpack.c.bf16 %v3916_v52, %v3915_v18  ;;  %v3906_v30 = vld [vmem:[%s7552_s5 + $0x158] sm:$0xff] }
 0x280   : > { %5114 = vmatprep.subr.bf16.mxu0 %v5434_v51  ;;  %5156 = vmatprep.subr.bf16.mxu1 %v5434_v51  ;;  %v5175_v42 = vpack.c.bf16 %v3906_v30, %v3905_v23  ;;  %v3942_v18 = vld [vmem:[%s7552_s5 + $0x278] sm:$0xff]  ;;  %v3399_v30 = vld [vmem:[%s7554_s7 + $0x70] sm:$0xff] }
 0x281   : > { %4098 = vmatprep.mubr.msk.f32.mxu0 %vm5435_vm1, %v5433_v7 }
 0x283   : > { %5116 = vmatpush3.bf16.msra.mxu0 %v5115_v62  ;;  %5158 = vmatpush3.bf16.msra.mxu1 %v5157_v17  ;;  %v5160_v62 = vpack.c.bf16 %v3896_v31, %v3895_v26  ;;  %v3908_v17 = vld [vmem:[%s7552_s5 + $0x168] sm:$0xff]  ;;  %v3935_v26 = vld [vmem:[%s7552_s5 + $0x240] sm:$0xff] }
 0x284   : > { %5117 = vmatprep.subr.bf16.mxu0 %v5434_v51  ;;  %5183 = vmatprep.subr.bf16.mxu1 %v5434_v51  ;;  %v5178_v47 = vpack.c.bf16 %v3908_v17, %v3907_v9  ;;  %v3936_v31 = vld [vmem:[%s7552_s5 + $0x248] sm:$0xff]  ;;  %v3475_v9 = vld [vmem:[%s7556_s9 + $0x10] sm:$0xff] }
 0x287   : > { %5119 = vmatpush3.bf16.msra.mxu0 %v5118_v5  ;;  %v3899_v5 = vld [vmem:[%s7552_s5 + $0x120] sm:$0xff] }
 0x288   : > { %5120 = vmatprep.subr.bf16.mxu0 %v5434_v51  ;;  %v5166_v14 = vpack.c.bf16 %v3900_v6, %v3899_v5  ;;  %v3385_v5 = vld [vmem:[%s7554_s7] sm:$0xff]  ;;  %v3386_v6 = vld [vmem:[%s7554_s7 + $0x8] sm:$0xff] }
 0x289   : > { %v5232_v11 = vpack.c.bf16 %v3386_v6, %v3385_v5  ;;  %v3401_v6 = vld [vmem:[%s7555_s8] sm:$0x1] }
 0x28b   : > { %5122 = vmatpush3.bf16.msra.mxu0 %v5121_v15  ;;  %v3901_v15 = vld [vmem:[%s7552_s5 + $0x130] sm:$0xff] }
 0x28c   : > { %5123 = vmatprep.subr.bf16.mxu0 %v5434_v51  ;;  %v5169_v25 = vpack.c.bf16 %v3902_v16, %v3901_v15  ;;  %v3391_v16 = vld [vmem:[%s7554_s7 + $0x30] sm:$0xff] }
 0x28f   : > { %5125 = vmatpush3.bf16.msra.mxu0 %v5124_v29  ;;  %v3903_v29 = vld [vmem:[%s7552_s5 + $0x140] sm:$0xff] }
 0x290   : > { %5126 = vmatprep.subr.bf16.mxu0 %v5434_v51  ;;  %v5172_v41 = vpack.c.bf16 %v3904_v33, %v3903_v29  ;;  %v3395_v33 = vld [vmem:[%s7554_s7 + $0x50] sm:$0xff] }
 0x293   : > { %5128 = vmatpush3.bf16.msra.mxu0 %v5127_v3  ;;  %v3922_v3 = vld [vmem:[%s7552_s5 + $0x1d8] sm:$0xff] }
 0x294   : > { %5129 = vmatprep.subr.bf16.mxu0 %v5434_v51  ;;  %v5199_v38 = vpack.c.bf16 %v3922_v3, %v3921_v34  ;;  %v3397_v3 = vld [vmem:[%s7554_s7 + $0x60] sm:$0xff] }
 0x297   : > { %5131 = vmatpush3.bf16.msra.mxu0 %v5130_v37  ;;  %v3924_v37 = vld [vmem:[%s7552_s5 + $0x1e8] sm:$0xff] }
 0x298   : > { %5132 = vmatprep.subr.bf16.mxu0 %v5434_v51  ;;  %v5202_v43 = vpack.c.bf16 %v3924_v37, %v3923_v32  ;;  %v3473_v37 = vld [vmem:[%s7556_s9] sm:$0xff] }
 0x29b   : > { %5134 = vmatpush3.bf16.msra.mxu0 %v5133_v46  ;;  %v3926_v46 = vld [vmem:[%s7552_s5 + $0x1f8] sm:$0xff] }
 0x29c   : > { %5159 = vmatprep.subr.bf16.mxu0 %v5434_v51 }
 0x339   : > { %v2907_v48 = vpop.f32.mrb[6].mxu1 }
 0x33a   : > { %v2929_v49 = vadd.f32 %v2918_v22, %v2907_v48  ;;  %v2909_v50 = vpop.f32.mrb[7].mxu1  ;;  %v5205_v48 = vpack.c.bf16 %v3926_v46, %v3925_v45  ;;  %v3477_v46 = vld [vmem:[%s7556_s9 + $0x20] sm:$0xff] }
 0x33b   : > { %v2930_v54 = vadd.f32 %v2922_v27, %v2909_v50  ;;  %v3927_v50 = vld [vmem:[%s7552_s5 + $0x200] sm:$0xff] }
 0x33c   : > { %v2931_v35 = vmax.f32 %v2929_v49, 0.0 }
 0x33d   : > { %v2932_v40 = vmax.f32 %v2930_v54, 0.0  ;;  %v3928_v54 = vld [vmem:[%s7552_s5 + $0x208] sm:$0xff] }
 0x33f   : > { %v2934_v55 = vmax.f32 %v2931_v35, %v2932_v40  ;;  %v5208_v40 = vpack.c.bf16 %v3928_v54, %v3927_v50  ;;  %v3481_v50 = vld [vmem:[%s7556_s9 + $0x40] sm:$0xff]  ;;  %v3482_v54 = vld [vmem:[%s7556_s9 + $0x48] sm:$0xff] }
 0x351   : > { %v2833_v56 = vpop.f32.mrb[4].mxu0 }
 0x352   : > { %v2925_v28 = vadd.f32 %v2918_v22, %v2833_v56  ;;  %v2835_v58 = vpop.f32.mrb[5].mxu0  ;;  %v3909_v22 = vld [vmem:[%s7552_s5 + $0x170] sm:$0xff] }
 0x353   : > { %v2926_v59 = vadd.f32 %v2922_v27, %v2835_v58  ;;  %v3910_v27 = vld [vmem:[%s7552_s5 + $0x178] sm:$0xff]  ;;  %v3929_v56 = vld [vmem:[%s7552_s5 + $0x210] sm:$0xff] }
 0x354   : > { %v2927_v8 = vmax.f32 %v2925_v28, 0.0  ;;  %v5181_v49 = vpack.c.bf16 %v3910_v27, %v3909_v22  ;;  %v3930_v28 = vld [vmem:[%s7552_s5 + $0x218] sm:$0xff]  ;;  %v3479_v27 = vld [vmem:[%s7556_s9 + $0x30] sm:$0xff] }
 0x355   : > { %v2928_v13 = vmax.f32 %v2926_v59, 0.0  ;;  %v5211_v58 = vpack.c.bf16 %v3930_v28, %v3929_v56  ;;  %v3931_v59 = vld [vmem:[%s7552_s5 + $0x220] sm:$0xff] }
 0x356   : > { %v3485_v28 = vld [vmem:[%s7556_s9 + $0x60] sm:$0xff] }
 0x357   : > { %v2933_v0 = vmax.f32 %v2927_v8, %v2928_v13  ;;  %v3932_v8 = vld [vmem:[%s7552_s5 + $0x228] sm:$0xff] }
 0x358   : > { %v5214_v13 = vpack.c.bf16 %v3932_v8, %v3931_v59 }
 0x359   : > { %v7208_v44 = vmax.f32 %v2933_v0, %v2934_v55  ;;  %v5217_v0 = vpack.c.bf16 %v3934_v2, %v3933_v53 }
 0x35b   : > { %4134 = vmatmul.mubr.f32.vlgmr.msra.gmra.mrb[8].mxu1 %v7208_v44  ;;  %v2970_v63 = vrot.slane %v7208_v44, 1  ;;  %v3219_v35 = vrot.slane %v7208_v44, 3  ;;  %v3129_v55 = vrot.slane %v7208_v44, 2 }
 0x35c   : > { %5185 = vmatpush3.bf16.msra.mxu1 %v5184_v39  ;;  %4203 = vmatprep.mubr.msk.f32.mxu1 %vm5435_vm1, %v5433_v7  ;;  %v5220_v39 = vpack.c.bf16 %v3936_v31, %v3935_v26 }
 0x35d   : > { %4099 = vmatmul.mubr.f32.vlgmr.msra.gmra.mrb[6].mxu0 %v2970_v63  ;;  %5186 = vmatprep.subr.bf16.mxu1 %v5434_v51  ;;  %v3939_v63 = vld [vmem:[%s7552_s5 + $0x260] sm:$0xff] }
 0x35e   : > { %5161 = vmatpush3.bf16.msra.mxu0 %v5160_v62  ;;  %4168 = vmatprep.mubr.msk.f32.mxu0 %vm5435_vm1, %v5433_v7  ;;  %v5223_v62 = vpack.c.bf16 %v3938_v61, %v3937_v60  ;;  %v5226_v57 = vpack.c.bf16 %v3940_v19, %v3939_v63  ;;  %v3382_v19 = vld [vmem:[%s7553_s6] sm:$0x1] }
 0x35f   : > { %5162 = vmatprep.subr.bf16.mxu0 %v5434_v51 }
 0x360   : > { %5188 = vmatpush3.bf16.msra.mxu1 %v5187_v1  ;;  %v3941_v1 = vld [vmem:[%s7552_s5 + $0x270] sm:$0xff] }
 0x361   : > { %5189 = vmatprep.subr.bf16.mxu1 %v5434_v51  ;;  %v5229_v52 = vpack.c.bf16 %v3942_v18, %v3941_v1 }
 0x362   : > { %5164 = vmatpush3.bf16.msra.mxu0 %v5163_v4  ;;  %v3309_v4 = vrot.slane %v7208_v44, 4  ;;  %v3388_v44 = vld [vmem:[%s7554_s7 + $0x18] sm:$0xff] }
 0x363   : > { %5165 = vmatprep.subr.bf16.mxu0 %v5434_v51 }
 0x364   : > { %5191 = vmatpush3.bf16.msra.mxu1 %v5190_v10  ;;  %v3387_v10 = vld [vmem:[%s7554_s7 + $0x10] sm:$0xff] }
 0x365   : > { %5192 = vmatprep.subr.bf16.mxu1 %v5434_v51  ;;  %v5235_v12 = vpack.c.bf16 %v3388_v44, %v3387_v10 }
 0x366   : > { %5167 = vmatpush3.bf16.msra.mxu0 %v5166_v14  ;;  %v3390_v14 = vld [vmem:[%s7554_s7 + $0x28] sm:$0xff] }
 0x367   : > { %5168 = vmatprep.subr.bf16.mxu0 %v5434_v51 }
 0x368   : > { %5194 = vmatpush3.bf16.msra.mxu1 %v5193_v20  ;;  %v3392_v20 = vld [vmem:[%s7554_s7 + $0x38] sm:$0xff] }
 0x369   : > { %5195 = vmatprep.subr.bf16.mxu1 %v5434_v51  ;;  %v5241_v21 = vpack.c.bf16 %v3392_v20, %v3391_v16 }
 0x36a   : > { %5170 = vmatpush3.bf16.msra.mxu0 %v5169_v25  ;;  %v3394_v25 = vld [vmem:[%s7554_s7 + $0x48] sm:$0xff] }
 0x36b   : > { %5171 = vmatprep.subr.bf16.mxu0 %v5434_v51  ;;  %v5244_v29 = vpack.c.bf16 %v3394_v25, %v3393_v24 }
 0x36c   : > { %5197 = vmatpush3.bf16.msra.mxu1 %v5196_v36  ;;  %v3396_v36 = vld [vmem:[%s7554_s7 + $0x58] sm:$0xff] }
 0x36d   : > { %5198 = vmatprep.subr.bf16.mxu1 %v5434_v51  ;;  %v5247_v34 = vpack.c.bf16 %v3396_v36, %v3395_v33 }
 0x36e   : > { %5173 = vmatpush3.bf16.msra.mxu0 %v5172_v41  ;;  %v3398_v41 = vld [vmem:[%s7554_s7 + $0x68] sm:$0xff] }
 0x36f   : > { %5174 = vmatprep.subr.bf16.mxu0 %v5434_v51  ;;  %v5250_v23 = vpack.c.bf16 %v3398_v41, %v3397_v3 }
 0x370   : > { %5200 = vmatpush3.bf16.msra.mxu1 %v5199_v38  ;;  %v3400_v38 = vld [vmem:[%s7554_s7 + $0x78] sm:$0xff] }
 0x371   : > { %5201 = vmatprep.subr.bf16.mxu1 %v5434_v51  ;;  %v5253_v32 = vpack.c.bf16 %v3400_v38, %v3399_v30 }
 0x372   : > { %5176 = vmatpush3.bf16.msra.mxu0 %v5175_v42  ;;  %v3474_v42 = vld [vmem:[%s7556_s9 + $0x8] sm:$0xff] }
 0x373   : > { %5177 = vmatprep.subr.bf16.mxu0 %v5434_v51  ;;  %v5256_v17 = vpack.c.bf16 %v3474_v42, %v3473_v37 }
 0x374   : > { %5203 = vmatpush3.bf16.msra.mxu1 %v5202_v43  ;;  %v3476_v43 = vld [vmem:[%s7556_s9 + $0x18] sm:$0xff] }
 0x375   : > { %5204 = vmatprep.subr.bf16.mxu1 %v5434_v51  ;;  %v5259_v45 = vpack.c.bf16 %v3476_v43, %v3475_v9 }
 0x376   : > { %5179 = vmatpush3.bf16.msra.mxu0 %v5178_v47  ;;  %v3478_v47 = vld [vmem:[%s7556_s9 + $0x28] sm:$0xff] }
 0x377   : > { %5180 = vmatprep.subr.bf16.mxu0 %v5434_v51  ;;  %v5262_v22 = vpack.c.bf16 %v3478_v47, %v3477_v46 }
 0x378   : > { %5206 = vmatpush3.bf16.msra.mxu1 %v5205_v48  ;;  %v3480_v48 = vld [vmem:[%s7556_s9 + $0x38] sm:$0xff] }
 0x379   : > { %5231 = vmatprep.subr.bf16.mxu1 %v5434_v51 }
 0x37a   : > { %5182 = vmatpush3.bf16.msra.mxu0 %v5181_v49  ;;  %v5265_v49 = vpack.c.bf16 %v3480_v48, %v3479_v27 }
 0x37b   : > { %4204 = vmatmul.mubr.f32.vlgmr.msra.gmra.mrb[10].mxu1 %v3219_v35  ;;  %5207 = vmatprep.subr.bf16.mxu0 %v5434_v51  ;;  %v5268_v35 = vpack.c.bf16 %v3482_v54, %v3481_v50 }
 0x37c   : > { %4273 = vmatprep.mubr.msk.f32.mxu1 %vm5435_vm1, %v5433_v7  ;;  %5233 = vmatpush3.bf16.msra.mxu1 %v5232_v11 }
 0x37d   : > { %4169 = vmatmul.mubr.f32.vlgmr.msra.gmra.mrb[8].mxu0 %v3129_v55  ;;  %5234 = vmatprep.subr.bf16.mxu1 %v5434_v51  ;;  %v3484_v55 = vld [vmem:[%s7556_s9 + $0x58] sm:$0xff] }
 0x37e   : > { %5209 = vmatpush3.bf16.msra.mxu0 %v5208_v40  ;;  %4238 = vmatprep.mubr.msk.f32.mxu0 %vm5435_vm1, %v5433_v7  ;;  %v3483_v40 = vld [vmem:[%s7556_s9 + $0x50] sm:$0xff] }
 0x37f   : > { %5210 = vmatprep.subr.bf16.mxu0 %v5434_v51  ;;  %v5271_v56 = vpack.c.bf16 %v3484_v55, %v3483_v40 }
 0x380   : > { %5236 = vmatpush3.bf16.msra.mxu1 %v5235_v12 }
 0x381   : > { %5237 = vmatprep.subr.bf16.mxu1 %v5434_v51 }
 0x382   : > { %5212 = vmatpush3.bf16.msra.mxu0 %v5211_v58  ;;  %v3486_v58 = vld [vmem:[%s7556_s9 + $0x68] sm:$0xff] }
 0x383   : > { %5213 = vmatprep.subr.bf16.mxu0 %v5434_v51  ;;  %v5274_v59 = vpack.c.bf16 %v3486_v58, %v3485_v28 }
 0x386   : > { %5215 = vmatpush3.bf16.msra.mxu0 %v5214_v13 }
 0x387   : > { %5216 = vmatprep.subr.bf16.mxu0 %v5434_v51 }
 0x38a   : > { %5218 = vmatpush3.bf16.msra.mxu0 %v5217_v0 }
 0x38b   : > { %5219 = vmatprep.subr.bf16.mxu0 %v5434_v51 }
 0x38e   : > { %5221 = vmatpush3.bf16.msra.mxu0 %v5220_v39 }
 0x38f   : > { %5222 = vmatprep.subr.bf16.mxu0 %v5434_v51 }
 0x392   : > { %5224 = vmatpush3.bf16.msra.mxu0 %v5223_v62 }
 0x393   : > { %5225 = vmatprep.subr.bf16.mxu0 %v5434_v51 }
 0x396   : > { %5227 = vmatpush3.bf16.msra.mxu0 %v5226_v57 }
 0x397   : > { %5228 = vmatprep.subr.bf16.mxu0 %v5434_v51 }
 0x39a   : > { %5230 = vmatpush3.bf16.msra.mxu0 %v5229_v52  ;;  %v3487_v52 = vld [vmem:[%s7556_s9 + $0x70] sm:$0xff] }
 0x39b   : > { %5255 = vmatprep.subr.bf16.mxu0 %v5434_v51 }
 0x39d   : > { %4239 = vmatmul.mubr.f32.vlgmr.msra.gmra.mrb[10].mxu0 %v3309_v4  ;;  %v3488_v4 = vld [vmem:[%s7556_s9 + $0x78] sm:$0xff] }
 0x39e   : > { %4308 = vmatprep.mubr.msk.f32.mxu0 %vm5435_vm1, %v5433_v7  ;;  %v3389_v7 = vld [vmem:[%s7554_s7 + $0x20] sm:$0xff]  ;;  %5257 = vmatpush3.bf16.msra.mxu0 %v5256_v17  ;;  %v5277_v5 = vpack.c.bf16 %v3488_v4, %v3487_v52 }
 0x39f   : > { %v5238_v15 = vpack.c.bf16 %v3390_v14, %v3389_v7  ;;  %5258 = vmatprep.subr.bf16.mxu0 %v5434_v51  ;;  %v3489_v7 = vld [vmem:[%s7557_s10] sm:$0x1] }
 0x3a1   : > { %5239 = vmatpush3.bf16.msra.mxu1 %v5238_v15 }
 0x3a2   : > { %5240 = vmatprep.subr.bf16.mxu1 %v5434_v51  ;;  %5260 = vmatpush3.bf16.msra.mxu0 %v5259_v45 }
 0x3a3   : > { %5261 = vmatprep.subr.bf16.mxu0 %v5434_v51 }
 0x3a5   : > { %5242 = vmatpush3.bf16.msra.mxu1 %v5241_v21 }
 0x3a6   : > { %5243 = vmatprep.subr.bf16.mxu1 %v5434_v51  ;;  %5263 = vmatpush3.bf16.msra.mxu0 %v5262_v22 }
 0x3a7   : > { %5264 = vmatprep.subr.bf16.mxu0 %v5434_v51 }
 0x3a9   : > { %5245 = vmatpush3.bf16.msra.mxu1 %v5244_v29 }
 0x3aa   : > { %5246 = vmatprep.subr.bf16.mxu1 %v5434_v51  ;;  %5266 = vmatpush3.bf16.msra.mxu0 %v5265_v49 }
 0x3ab   : > { %5267 = vmatprep.subr.bf16.mxu0 %v5434_v51 }
 0x3ad   : > { %5248 = vmatpush3.bf16.msra.mxu1 %v5247_v34 }
 0x3ae   : > { %5249 = vmatprep.subr.bf16.mxu1 %v5434_v51  ;;  %5269 = vmatpush3.bf16.msra.mxu0 %v5268_v35 }
 0x3af   : > { %5270 = vmatprep.subr.bf16.mxu0 %v5434_v51 }
 0x3b1   : > { %5251 = vmatpush3.bf16.msra.mxu1 %v5250_v23 }
 0x3b2   : > { %5252 = vmatprep.subr.bf16.mxu1 %v5434_v51  ;;  %5272 = vmatpush3.bf16.msra.mxu0 %v5271_v56 }
 0x3b3   : > { %5273 = vmatprep.subr.bf16.mxu0 %v5434_v51 }
 0x3b5   : > { %5254 = vmatpush3.bf16.msra.mxu1 %v5253_v32 }
 0x3b6   : > { %5275 = vmatpush3.bf16.msra.mxu0 %v5274_v59 }
 0x3b7   : > { %5276 = vmatprep.subr.bf16.mxu0 %v5434_v51 }
 0x3ba   : > { %5278 = vmatpush3.bf16.msra.mxu0 %v5277_v5 }
 0x42e   : > { %v3108_v8 = vpop.f32.mrb[8].mxu1 }
 0x42f   : > { %v4135_v13 = vpop.f32.mrb[9].mxu1 }
 0x430   : > { %v3038_v53 = vpop.f32.mrb[6].mxu0 }
 0x431   : > { %v3109_v2 = vadd.f32 %v3108_v8, %v3038_v53  ;;  %v4100_v0 = vpop.f32.mrb[7].mxu0 }
 0x44e   : > { %v3287_v26 = vpop.f32.mrb[10].mxu1 }
 0x44f   : > { %v4205_v31 = vpop.f32.mrb[11].mxu1 }
 0x450   : > { %v3197_v39 = vpop.f32.mrb[8].mxu0 }
 0x451   : > { %v3201_v60 = vadd.f32 %v3197_v39, %v3109_v2  ;;  %v4170_v61 = vpop.f32.mrb[9].mxu0 }
 0x453   : > { %v3291_v62 = vadd.f32 %v3287_v26, %v3201_v60 }
 0x470   : > { %v3377_v63 = vpop.f32.mrb[10].mxu0 }
 0x471   : > { %v3381_v57 = vadd.f32 %v3377_v63, %v3291_v62  ;;  %v4240_v1 = vpop.f32.mrb[11].mxu0 }
 0x473   : > { %v3383_v51 = vadd.f32 %v3382_v19, %v3381_v57 }
 0x475   : > { %v3384_v18 = vmax.f32 %v3383_v51, 0.0 }
 0x477   : > { %4274 = vmatmul.mubr.f32.vlgmr.msra.gmra.mrb[12].mxu1 %v3384_v18 }
 0x54a   : > { %v3468_v10 = vpop.f32.mrb[12].mxu1 }
 0x54b   : > { %v3469_v11 = vadd.f32 %v3468_v10, %v3401_v6  ;;  %v4275_v44 = vpop.f32.mrb[13].mxu1 }
 0x54d   : > { %v3472_v12 = vmax.f32 %v3469_v11, 0.0 }
 0x54f   : > { %4309 = vmatmul.mubr.f32.vlgmr.msra.gmra.mrb[12].mxu0 %v3472_v12 }
 0x622   : > { %v3556_v14 = vpop.f32.mrb[12].mxu0 }
 0x623   : > { %v3557_v15 = vadd.f32 %v3556_v14, %v3489_v7  ;;  %v4310_v16 = vpop.f32.mrb[13].mxu0 }
 0x625   : > { %3560 = vst [vmem:[%s378_s12] sm:$0x1] %v3557_v15 }
 0x626   : > { %5382 = shalt.err (!%p5379_p3)
}
 0x627   : > { %s5383_s13 = scalar_lea.hbm %s7505_s29, 16  ;;  %s5387_s22 = scalar_lea.hbm %s7558_s11, 32 }
 0x628   : > { %p5384_p4 = scmp.ne.s32.totalorder %s7505_s29, %s5383_s13  ;;  %p5388_p9 = scmp.lt.u32.totalorder %s7505_s29, %s7558_s11 }
 0x629   : > { %p5389_p10 = scmp.lt.u32.totalorder %s5387_s22, %s5383_s13  ;;  %p5391_p12 = scmp.lt.u32.totalorder %s5383_s13, %s7505_s29 }
 0x62a   : > { %p5385_p7 = pnand %p5384_p4, %p5535_p5 }
 0x62b   : > { %p5390_p11 = por %p5389_p10, %p5388_p9 }
 0x62c   : > { %p5386_p8 = pneg %p5385_p7 }
 0x62d   : > { %p5392_p13 = por %p5391_p12, %p5390_p11 }
 0x62f   : > { %p5393_p0 = pnand %p5392_p13, %p5386_p8 }
 0x631   : > { %5396 = shalt.err (!%p5393_p0)
}
 0x632   : > { %5327 = dma.vmem_to_hbm [thread:$0]  (%p5535_p5), %s7507_s24, 16, %s7505_s29, %s3562_s30  }
 0x633 PF: > { %p5333_p1 = scmp.ge.s32.totalorder %s5431_s20, 2  ;;  %s3586_s26 = sand.u32 1, %s5419_s17  }
 0x634   : > { %s3587_s14 = scalar_lea.sflag [#allocation4], %s3586_s26 }
 0x635   : > { %p5330_p2 = pnand %p5333_p1, %p5539_p6 }
 0x637   : > { %5414 = dma.done.wait (!%p5330_p2), %s3587_s14, 16  }
 0x638   : > { %5416 = vsyncadd (!%p5330_p2), %s3587_s14, 4294967280  ;;  %s7562_s15 = sld [smem:[#allocation6_spill]]  ;;  %p21_p3 = scmp.ge.s32.totalorder %s5522_s23, 4  }
 0x639   : > { %s7563_s17 = smov %s5423_s18  ;;  %s7564_s18 = smov %s5427_s19 }
 0x63a   : > { %s7566_s20 = smov %s5522_s23  ;;  %23 = sbr.rel (!%p21_p3) target bundleno = 3 (0x3), region = 111 }
 0x63e   : > { %s7565_s19 = smov %s7562_s15 }
 0x641   :  { %3591 = vsyncpa [#allocation4], 1 }
 0x642   :  { %3593 = vsyncpa [#allocation4 + $0x1], 1 }

</bundles_post_ra>
